<compile_context>
chip_gen: v5e
topology: v5e:2x2
jax: 0.10.0
libtpu: 0.0.40
codegen_flags: <defaults>
</compile_context>

<pallas_src>
import numpy as np
import jax
import jax.numpy as jnp
from jax.experimental import pallas as pl
from jax.experimental.pallas import tpu as pltpu


def _conv_block_se_kernel(
    x_ref,      # (BB, H, W, Cin)   f32 input block (unpadded)
    w1_ref,     # (9, Cin, Cout)    bf16 conv1 taps, (dy, dx) row-major
    b1_ref,     # (1, Cout)         f32
    w2_ref,     # (9, Cout, Cout)   bf16 conv2 taps
    b2_ref,     # (1, Cout)         f32
    wsa_ref,    # (1, Cout)         f32 spatial-attention 1x1 conv weights
    bsa_ref,    # (1, 1)            f32 in SMEM (scalar)
    wfc1_ref,   # (Cout, Chid)      f32 SE squeeze
    bfc1_ref,   # (1, Chid)         f32
    wfc2_ref,   # (Chid, Cout)      f32 SE excite
    bfc2_ref,   # (1, Cout)         f32
    o_ref,      # (BB, H, W, Cout)  f32 output block
    xpad_ref,   # scratch (BB, H+2, W+2, Cin)  f32, zero-haloed input
    y1pad_ref,  # scratch (BB, H+2, W+2, Cout) f32, zero-haloed conv1 output
):
    BB, H, W, Cout = o_ref.shape
    Cin = x_ref.shape[-1]
    M = BB * H * W
    f32 = jnp.float32
    bf16 = jnp.bfloat16

    # ---- stage the input into a zero-haloed VMEM buffer (halo only) ----
    zrow_x = jnp.zeros((BB, 1, W + 2, Cin), f32)
    zcol_x = jnp.zeros((BB, H + 2, 1, Cin), f32)
    xpad_ref[:, 0:1, :, :] = zrow_x
    xpad_ref[:, H + 1:H + 2, :, :] = zrow_x
    xpad_ref[:, :, 0:1, :] = zcol_x
    xpad_ref[:, :, W + 1:W + 2, :] = zcol_x
    xpad_ref[:, 1:H + 1, 1:W + 1, :] = x_ref[...]

    # halo of the conv1-output buffer (interior is fully overwritten below)
    zrow_y = jnp.zeros((BB, 1, W + 2, Cout), f32)
    zcol_y = jnp.zeros((BB, H + 2, 1, Cout), f32)
    y1pad_ref[:, 0:1, :, :] = zrow_y
    y1pad_ref[:, H + 1:H + 2, :, :] = zrow_y
    y1pad_ref[:, :, 0:1, :] = zcol_y
    y1pad_ref[:, :, W + 1:W + 2, :] = zcol_y

    # ---- conv1 (3x3 'same') + ReLU: 9 whole-image per-tap matmuls ----
    acc1 = jnp.zeros((M, Cout), f32)
    for dy in range(3):
        for dx in range(3):
            lhs = xpad_ref[:, dy:dy + H, dx:dx + W, :]        # (BB, H, W, Cin)
            lhs = lhs.reshape(M, Cin).astype(bf16)
            acc1 += jnp.dot(lhs, w1_ref[dy * 3 + dx],
                            preferred_element_type=f32)
    y1 = jnp.maximum(acc1 + b1_ref[...], 0.0)                 # (M, Cout)
    y1pad_ref[:, 1:H + 1, 1:W + 1, :] = y1.reshape(BB, H, W, Cout)

    # ---- conv2 (3x3 'same') + ReLU ----
    acc2 = jnp.zeros((M, Cout), f32)
    for dy in range(3):
        for dx in range(3):
            lhs = y1pad_ref[:, dy:dy + H, dx:dx + W, :]       # (BB, H, W, Cout)
            lhs = lhs.reshape(M, Cout).astype(bf16)
            acc2 += jnp.dot(lhs, w2_ref[dy * 3 + dx],
                            preferred_element_type=f32)
    y2 = jnp.maximum(acc2 + b2_ref[...], 0.0)                 # (M, Cout)

    # ---- spatial attention: VPU multiply + lane reduce, one sigmoid pass ----
    logit = jnp.sum(y2 * wsa_ref[...], axis=-1, keepdims=True) + bsa_ref[0, 0]
    y2 = y2 * jax.nn.sigmoid(logit)                           # (M, Cout)

    # ---- squeeze-excitation channel attention (per batch element) ----
    # TODO(synk): Dropout in SqueezeExcitation is a no-op at inference; training-mode dropout not implemented.
    y2b = y2.reshape(BB, H * W, Cout)
    pooled = jnp.sum(y2b, axis=1) * (1.0 / (H * W))           # (BB, Cout)
    hid = jnp.maximum(
        jnp.dot(pooled, wfc1_ref[...], preferred_element_type=f32)
        + bfc1_ref[...], 0.0)                                 # (BB, Chid)
    scale = jax.nn.sigmoid(
        jnp.dot(hid, wfc2_ref[...], preferred_element_type=f32)
        + bfc2_ref[...])                                      # (BB, Cout)
    out = y2b * scale[:, None, :]                             # (BB, H*W, Cout)
    o_ref[...] = out.reshape(BB, H, W, Cout).astype(o_ref.dtype)


def conv_block_with_se(x_nchw, params, *, batch_block=1):
    """x_nchw: (N, Cin, H, W) float32. Returns (N, Cout, H, W) float32."""
    N, Cin, H, W = x_nchw.shape
    Cout = params["b1"].shape[-1]
    Chid = params["bfc1"].shape[-1]
    BB = max(1, min(batch_block, N))
    assert N % BB == 0, "batch_block must divide N"

    x_nhwc = jnp.transpose(x_nchw, (0, 2, 3, 1))              # NCHW -> NHWC

    # Conv weights flattened to (9, Cin, Cout), tap order (dy, dx) row-major,
    # pre-cast to bf16 for the MXU (accumulation stays f32 in-kernel).
    w1 = params["w1"].reshape(9, Cin, Cout).astype(jnp.bfloat16)
    w2 = params["w2"].reshape(9, Cout, Cout).astype(jnp.bfloat16)
    wsa_row = params["wsa"].reshape(1, Cout)                  # (Cout,1) -> (1,Cout)

    grid_spec = pltpu.PrefetchScalarGridSpec(
        num_scalar_prefetch=0,
        grid=(N // BB,),
        in_specs=[
            pl.BlockSpec((BB, H, W, Cin), lambda b: (b, 0, 0, 0)),
            pl.BlockSpec((9, Cin, Cout), lambda b: (0, 0, 0)),
            pl.BlockSpec((1, Cout), lambda b: (0, 0)),
            pl.BlockSpec((9, Cout, Cout), lambda b: (0, 0, 0)),
            pl.BlockSpec((1, Cout), lambda b: (0, 0)),
            pl.BlockSpec((1, Cout), lambda b: (0, 0)),
            pl.BlockSpec(memory_space=pltpu.MemorySpace.SMEM),   # bsa scalar
            pl.BlockSpec((Cout, Chid), lambda b: (0, 0)),
            pl.BlockSpec((1, Chid), lambda b: (0, 0)),
            pl.BlockSpec((Chid, Cout), lambda b: (0, 0)),
            pl.BlockSpec((1, Cout), lambda b: (0, 0)),
        ],
        out_specs=pl.BlockSpec((BB, H, W, Cout), lambda b: (b, 0, 0, 0)),
        scratch_shapes=[
            pltpu.VMEM((BB, H + 2, W + 2, Cin), jnp.float32),
            pltpu.VMEM((BB, H + 2, W + 2, Cout), jnp.float32),
        ],
    )

    out_nhwc = pl.pallas_call(
        _conv_block_se_kernel,
        out_shape=jax.ShapeDtypeStruct((N, H, W, Cout), jnp.float32),
        grid_spec=grid_spec,
        compiler_params=pltpu.CompilerParams(
            dimension_semantics=("parallel",)),   # batch steps are independent
    )(x_nhwc, w1, params["b1"], w2, params["b2"],
      wsa_row, params["bsa"],
      params["wfc1"], params["bfc1"], params["wfc2"], params["bfc2"])

    return jnp.transpose(out_nhwc, (0, 3, 1, 2))              # back to NCHW


def _reference_jax(x_nchw, p):
    """Plain-JAX reference, numerically mirroring the PyTorch forward (f32)."""
    x = jnp.transpose(x_nchw, (0, 2, 3, 1))                   # NHWC
    dn = ("NHWC", "HWIO", "NHWC")
    y = jax.lax.conv_general_dilated(x, p["w1"], (1, 1), "SAME",
                                     dimension_numbers=dn) + p["b1"]
    y = jax.nn.relu(y)
    y = jax.lax.conv_general_dilated(y, p["w2"], (1, 1), "SAME",
                                     dimension_numbers=dn) + p["b2"]
    y = jax.nn.relu(y)
    sa = jax.nn.sigmoid(jnp.einsum("nhwc,co->nhwo", y, p["wsa"]) + p["bsa"][0, 0])
    y = y * sa
    pooled = jnp.mean(y, axis=(1, 2))                         # (N, Cout)
    hid = jax.nn.relu(pooled @ p["wfc1"] + p["bfc1"])
    scale = jax.nn.sigmoid(hid @ p["wfc2"] + p["bfc2"])       # (N, Cout)
    y = y * scale[:, None, None, :]
    return jnp.transpose(y, (0, 3, 1, 2))


if __name__ == "__main__":
    # Small shapes consistent with the module:
    #   in_channels=4, out_channels=32 -> SE reduction = 32 // 16 = 2, hidden = 16
    N, Cin, H, W = 2, 4, 16, 16
    Cout = 32
    reduction = Cout // 16
    Chid = Cout // reduction

    key = jax.random.PRNGKey(0)
    k = jax.random.split(key, 11)
    params = {
        "w1":   jax.random.normal(k[0], (3, 3, Cin, Cout), jnp.float32) * 0.2,
        "b1":   jax.random.normal(k[1], (1, Cout), jnp.float32) * 0.1,
        "w2":   jax.random.normal(k[2], (3, 3, Cout, Cout), jnp.float32) * 0.1,
        "b2":   jax.random.normal(k[3], (1, Cout), jnp.float32) * 0.1,
        "wsa":  jax.random.normal(k[4], (Cout, 1), jnp.float32) * 0.2,
        "bsa":  jax.random.normal(k[5], (1, 1), jnp.float32) * 0.1,
        "wfc1": jax.random.normal(k[6], (Cout, Chid), jnp.float32) * 0.2,
        "bfc1": jax.random.normal(k[7], (1, Chid), jnp.float32) * 0.1,
        "wfc2": jax.random.normal(k[8], (Chid, Cout), jnp.float32) * 0.2,
        "bfc2": jax.random.normal(k[9], (1, Cout), jnp.float32) * 0.1,
    }
    x = jax.random.normal(k[10], (N, Cin, H, W), jnp.float32)

    out = jax.block_until_ready(conv_block_with_se(x, params))
    assert out.shape == (N, Cout, H, W), out.shape

    ref = jax.block_until_ready(_reference_jax(x, params))
    # Tolerance accounts for bf16 MXU operands (f32 accumulation) in the kernel.
    np.testing.assert_allclose(np.asarray(out), np.asarray(ref),
                               atol=5e-2, rtol=5e-2)
    print("KERNEL_OK")
</pallas_src>

<mosaic_0001>
module attributes {stable_mosaic.version = 11 : i64} {
  func.func @_conv_block_se_kernel(%arg0: i32, %arg1: memref<1x16x16x4xf32, #tpu.memory_space<vmem>>, %arg2: memref<9x4x32xbf16, #tpu.memory_space<vmem>>, %arg3: memref<1x32xf32, #tpu.memory_space<vmem>>, %arg4: memref<9x32x32xbf16, #tpu.memory_space<vmem>>, %arg5: memref<1x32xf32, #tpu.memory_space<vmem>>, %arg6: memref<1x32xf32, #tpu.memory_space<vmem>>, %arg7: memref<1x1xf32, #tpu.memory_space<smem>>, %arg8: memref<32x16xf32, #tpu.memory_space<vmem>>, %arg9: memref<1x16xf32, #tpu.memory_space<vmem>>, %arg10: memref<16x32xf32, #tpu.memory_space<vmem>>, %arg11: memref<1x32xf32, #tpu.memory_space<vmem>>, %arg12: memref<1x16x16x32xf32, #tpu.memory_space<vmem>>, %arg13: memref<1x18x18x4xf32, #tpu.memory_space<vmem>>, %arg14: memref<1x18x18x32xf32, #tpu.memory_space<vmem>>) attributes {dimension_semantics = [#tpu.dimension_semantics<parallel>], iteration_bounds = array<i64: 2>, scalar_prefetch = 0 : i64, scratch_operands = 2 : i64, tpu.core_type = #tpu.core_type<tc>, window_params = [{transform_indices = @transform_0, window_bounds = array<i64: 1, 16, 16, 4>}, {pipeline_mode = #tpu.pipeline_mode<synchronous>, transform_indices = @transform_1, window_bounds = array<i64: 9, 4, 32>}, {pipeline_mode = #tpu.pipeline_mode<synchronous>, transform_indices = @transform_2, window_bounds = array<i64: 1, 32>}, {pipeline_mode = #tpu.pipeline_mode<synchronous>, transform_indices = @transform_3, window_bounds = array<i64: 9, 32, 32>}, {pipeline_mode = #tpu.pipeline_mode<synchronous>, transform_indices = @transform_4, window_bounds = array<i64: 1, 32>}, {pipeline_mode = #tpu.pipeline_mode<synchronous>, transform_indices = @transform_5, window_bounds = array<i64: 1, 32>}, {transform_indices = @transform_6, window_bounds = array<i64: 1, 1>}, {pipeline_mode = #tpu.pipeline_mode<synchronous>, transform_indices = @transform_7, window_bounds = array<i64: 32, 16>}, {pipeline_mode = #tpu.pipeline_mode<synchronous>, transform_indices = @transform_8, window_bounds = array<i64: 1, 16>}, {pipeline_mode = #tpu.pipeline_mode<synchronous>, transform_indices = @transform_9, window_bounds = array<i64: 16, 32>}, {pipeline_mode = #tpu.pipeline_mode<synchronous>, transform_indices = @transform_10, window_bounds = array<i64: 1, 32>}, {transform_indices = @transform_11, window_bounds = array<i64: 1, 16, 16, 32>}]} {
    %cst = arith.constant 0.000000e+00 : f32
    %0 = vector.broadcast %cst : f32 to vector<1x1x18x4xf32>
    %cst_0 = arith.constant 0.000000e+00 : f32
    %1 = vector.broadcast %cst_0 : f32 to vector<1x18x1x4xf32>
    %c0 = arith.constant 0 : index
    %c0_1 = arith.constant 0 : index
    %c0_2 = arith.constant 0 : index
    %c0_3 = arith.constant 0 : index
    %2 = vector.load %arg13[%c0, %c0_1, %c0_2, %c0_3] : memref<1x18x18x4xf32, #tpu.memory_space<vmem>>, vector<1x1x18x4xf32>
    tpu.vector_store %arg13[%c0, %c0_1, %c0_2, %c0_3], %0 {strides = array<i32>} : memref<1x18x18x4xf32, #tpu.memory_space<vmem>>, vector<1x1x18x4xf32>,
    %c0_4 = arith.constant 0 : index
    %c17 = arith.constant 17 : index
    %c0_5 = arith.constant 0 : index
    %c0_6 = arith.constant 0 : index
    %3 = vector.load %arg13[%c0_4, %c17, %c0_5, %c0_6] : memref<1x18x18x4xf32, #tpu.memory_space<vmem>>, vector<1x1x18x4xf32>
    tpu.vector_store %arg13[%c0_4, %c17, %c0_5, %c0_6], %0 {strides = array<i32>} : memref<1x18x18x4xf32, #tpu.memory_space<vmem>>, vector<1x1x18x4xf32>,
    %c0_7 = arith.constant 0 : index
    %c0_8 = arith.constant 0 : index
    %c0_9 = arith.constant 0 : index
    %c0_10 = arith.constant 0 : index
    %4 = vector.load %arg13[%c0_7, %c0_8, %c0_9, %c0_10] : memref<1x18x18x4xf32, #tpu.memory_space<vmem>>, vector<1x18x1x4xf32>
    tpu.vector_store %arg13[%c0_7, %c0_8, %c0_9, %c0_10], %1 {strides = array<i32>} : memref<1x18x18x4xf32, #tpu.memory_space<vmem>>, vector<1x18x1x4xf32>,
    %c0_11 = arith.constant 0 : index
    %c0_12 = arith.constant 0 : index
    %c17_13 = arith.constant 17 : index
    %c0_14 = arith.constant 0 : index
    %5 = vector.load %arg13[%c0_11, %c0_12, %c17_13, %c0_14] : memref<1x18x18x4xf32, #tpu.memory_space<vmem>>, vector<1x18x1x4xf32>
    tpu.vector_store %arg13[%c0_11, %c0_12, %c17_13, %c0_14], %1 {strides = array<i32>} : memref<1x18x18x4xf32, #tpu.memory_space<vmem>>, vector<1x18x1x4xf32>,
    %c0_15 = arith.constant 0 : index
    %c0_16 = arith.constant 0 : index
    %c0_17 = arith.constant 0 : index
    %c0_18 = arith.constant 0 : index
    %6 = vector.load %arg1[%c0_15, %c0_16, %c0_17, %c0_18] : memref<1x16x16x4xf32, #tpu.memory_space<vmem>>, vector<1x16x16x4xf32>
    %c0_19 = arith.constant 0 : index
    %c1 = arith.constant 1 : index
    %c1_20 = arith.constant 1 : index
    %c0_21 = arith.constant 0 : index
    %7 = vector.load %arg13[%c0_19, %c1, %c1_20, %c0_21] : memref<1x18x18x4xf32, #tpu.memory_space<vmem>>, vector<1x16x16x4xf32>
    tpu.vector_store %arg13[%c0_19, %c1, %c1_20, %c0_21], %6 {strides = array<i32>} : memref<1x18x18x4xf32, #tpu.memory_space<vmem>>, vector<1x16x16x4xf32>,
    %cst_22 = arith.constant 0.000000e+00 : f32
    %8 = vector.broadcast %cst_22 : f32 to vector<1x1x18x32xf32>
    %cst_23 = arith.constant 0.000000e+00 : f32
    %9 = vector.broadcast %cst_23 : f32 to vector<1x18x1x32xf32>
    %c0_24 = arith.constant 0 : index
    %c0_25 = arith.constant 0 : index
    %c0_26 = arith.constant 0 : index
    %c0_27 = arith.constant 0 : index
    %10 = vector.load %arg14[%c0_24, %c0_25, %c0_26, %c0_27] : memref<1x18x18x32xf32, #tpu.memory_space<vmem>>, vector<1x1x18x32xf32>
    tpu.vector_store %arg14[%c0_24, %c0_25, %c0_26, %c0_27], %8 {strides = array<i32>} : memref<1x18x18x32xf32, #tpu.memory_space<vmem>>, vector<1x1x18x32xf32>,
    %c0_28 = arith.constant 0 : index
    %c17_29 = arith.constant 17 : index
    %c0_30 = arith.constant 0 : index
    %c0_31 = arith.constant 0 : index
    %11 = vector.load %arg14[%c0_28, %c17_29, %c0_30, %c0_31] : memref<1x18x18x32xf32, #tpu.memory_space<vmem>>, vector<1x1x18x32xf32>
    tpu.vector_store %arg14[%c0_28, %c17_29, %c0_30, %c0_31], %8 {strides = array<i32>} : memref<1x18x18x32xf32, #tpu.memory_space<vmem>>, vector<1x1x18x32xf32>,
    %c0_32 = arith.constant 0 : index
    %c0_33 = arith.constant 0 : index
    %c0_34 = arith.constant 0 : index
    %c0_35 = arith.constant 0 : index
    %12 = vector.load %arg14[%c0_32, %c0_33, %c0_34, %c0_35] : memref<1x18x18x32xf32, #tpu.memory_space<vmem>>, vector<1x18x1x32xf32>
    tpu.vector_store %arg14[%c0_32, %c0_33, %c0_34, %c0_35], %9 {strides = array<i32>} : memref<1x18x18x32xf32, #tpu.memory_space<vmem>>, vector<1x18x1x32xf32>,
    %c0_36 = arith.constant 0 : index
    %c0_37 = arith.constant 0 : index
    %c17_38 = arith.constant 17 : index
    %c0_39 = arith.constant 0 : index
    %13 = vector.load %arg14[%c0_36, %c0_37, %c17_38, %c0_39] : memref<1x18x18x32xf32, #tpu.memory_space<vmem>>, vector<1x18x1x32xf32>
    tpu.vector_store %arg14[%c0_36, %c0_37, %c17_38, %c0_39], %9 {strides = array<i32>} : memref<1x18x18x32xf32, #tpu.memory_space<vmem>>, vector<1x18x1x32xf32>,
    %cst_40 = arith.constant 0.000000e+00 : f32
    %14 = vector.broadcast %cst_40 : f32 to vector<256x32xf32>
    %c0_41 = arith.constant 0 : index
    %c0_42 = arith.constant 0 : index
    %c0_43 = arith.constant 0 : index
    %c0_44 = arith.constant 0 : index
    %15 = vector.load %arg13[%c0_41, %c0_42, %c0_43, %c0_44] : memref<1x18x18x4xf32, #tpu.memory_space<vmem>>, vector<1x16x16x4xf32>
    %16 = vector.shape_cast %15 : vector<1x16x16x4xf32> to vector<256x4xf32>
    %17 = arith.truncf %16 : vector<256x4xf32> to vector<256x4xbf16>
    %c0_45 = arith.constant 0 : index
    %c0_46 = arith.constant 0 : index
    %c0_47 = arith.constant 0 : index
    %18 = vector.load %arg2[%c0_45, %c0_46, %c0_47] : memref<9x4x32xbf16, #tpu.memory_space<vmem>>, vector<1x4x32xbf16>
    %19 = vector.shape_cast %18 : vector<1x4x32xbf16> to vector<4x32xbf16>
    %cst_48 = arith.constant dense<0.000000e+00> : vector<256x32xf32>
    %20 = tpu.matmul %17, %19, %cst_48 {dimension_numbers = #tpu.dot_dimension_numbers<[1], [0], [0], [1], [0, 0, 1, 1], [], []>} : vector<256x4xbf16>, vector<4x32xbf16>, vector<256x32xf32> -> vector<256x32xf32>
    %21 = arith.addf %14, %20 : vector<256x32xf32>
    %c0_49 = arith.constant 0 : index
    %c0_50 = arith.constant 0 : index
    %c1_51 = arith.constant 1 : index
    %c0_52 = arith.constant 0 : index
    %22 = vector.load %arg13[%c0_49, %c0_50, %c1_51, %c0_52] : memref<1x18x18x4xf32, #tpu.memory_space<vmem>>, vector<1x16x16x4xf32>
    %23 = vector.shape_cast %22 : vector<1x16x16x4xf32> to vector<256x4xf32>
    %24 = arith.truncf %23 : vector<256x4xf32> to vector<256x4xbf16>
    %c1_53 = arith.constant 1 : index
    %c0_54 = arith.constant 0 : index
    %c0_55 = arith.constant 0 : index
    %25 = vector.load %arg2[%c1_53, %c0_54, %c0_55] : memref<9x4x32xbf16, #tpu.memory_space<vmem>>, vector<1x4x32xbf16>
    %26 = vector.shape_cast %25 : vector<1x4x32xbf16> to vector<4x32xbf16>
    %cst_56 = arith.constant dense<0.000000e+00> : vector<256x32xf32>
    %27 = tpu.matmul %24, %26, %cst_56 {dimension_numbers = #tpu.dot_dimension_numbers<[1], [0], [0], [1], [0, 0, 1, 1], [], []>} : vector<256x4xbf16>, vector<4x32xbf16>, vector<256x32xf32> -> vector<256x32xf32>
    %28 = arith.addf %21, %27 : vector<256x32xf32>
    %c0_57 = arith.constant 0 : index
    %c0_58 = arith.constant 0 : index
    %c2 = arith.constant 2 : index
    %c0_59 = arith.constant 0 : index
    %29 = vector.load %arg13[%c0_57, %c0_58, %c2, %c0_59] : memref<1x18x18x4xf32, #tpu.memory_space<vmem>>, vector<1x16x16x4xf32>
    %30 = vector.shape_cast %29 : vector<1x16x16x4xf32> to vector<256x4xf32>
    %31 = arith.truncf %30 : vector<256x4xf32> to vector<256x4xbf16>
    %c2_60 = arith.constant 2 : index
    %c0_61 = arith.constant 0 : index
    %c0_62 = arith.constant 0 : index
    %32 = vector.load %arg2[%c2_60, %c0_61, %c0_62] : memref<9x4x32xbf16, #tpu.memory_space<vmem>>, vector<1x4x32xbf16>
    %33 = vector.shape_cast %32 : vector<1x4x32xbf16> to vector<4x32xbf16>
    %cst_63 = arith.constant dense<0.000000e+00> : vector<256x32xf32>
    %34 = tpu.matmul %31, %33, %cst_63 {dimension_numbers = #tpu.dot_dimension_numbers<[1], [0], [0], [1], [0, 0, 1, 1], [], []>} : vector<256x4xbf16>, vector<4x32xbf16>, vector<256x32xf32> -> vector<256x32xf32>
    %35 = arith.addf %28, %34 : vector<256x32xf32>
    %c0_64 = arith.constant 0 : index
    %c1_65 = arith.constant 1 : index
    %c0_66 = arith.constant 0 : index
    %c0_67 = arith.constant 0 : index
    %36 = vector.load %arg13[%c0_64, %c1_65, %c0_66, %c0_67] : memref<1x18x18x4xf32, #tpu.memory_space<vmem>>, vector<1x16x16x4xf32>
    %37 = vector.shape_cast %36 : vector<1x16x16x4xf32> to vector<256x4xf32>
    %38 = arith.truncf %37 : vector<256x4xf32> to vector<256x4xbf16>
    %c3 = arith.constant 3 : index
    %c0_68 = arith.constant 0 : index
    %c0_69 = arith.constant 0 : index
    %39 = vector.load %arg2[%c3, %c0_68, %c0_69] : memref<9x4x32xbf16, #tpu.memory_space<vmem>>, vector<1x4x32xbf16>
    %40 = vector.shape_cast %39 : vector<1x4x32xbf16> to vector<4x32xbf16>
    %cst_70 = arith.constant dense<0.000000e+00> : vector<256x32xf32>
    %41 = tpu.matmul %38, %40, %cst_70 {dimension_numbers = #tpu.dot_dimension_numbers<[1], [0], [0], [1], [0, 0, 1, 1], [], []>} : vector<256x4xbf16>, vector<4x32xbf16>, vector<256x32xf32> -> vector<256x32xf32>
    %42 = arith.addf %35, %41 : vector<256x32xf32>
    %c0_71 = arith.constant 0 : index
    %c1_72 = arith.constant 1 : index
    %c1_73 = arith.constant 1 : index
    %c0_74 = arith.constant 0 : index
    %43 = vector.load %arg13[%c0_71, %c1_72, %c1_73, %c0_74] : memref<1x18x18x4xf32, #tpu.memory_space<vmem>>, vector<1x16x16x4xf32>
    %44 = vector.shape_cast %43 : vector<1x16x16x4xf32> to vector<256x4xf32>
    %45 = arith.truncf %44 : vector<256x4xf32> to vector<256x4xbf16>
    %c4 = arith.constant 4 : index
    %c0_75 = arith.constant 0 : index
    %c0_76 = arith.constant 0 : index
    %46 = vector.load %arg2[%c4, %c0_75, %c0_76] : memref<9x4x32xbf16, #tpu.memory_space<vmem>>, vector<1x4x32xbf16>
    %47 = vector.shape_cast %46 : vector<1x4x32xbf16> to vector<4x32xbf16>
    %cst_77 = arith.constant dense<0.000000e+00> : vector<256x32xf32>
    %48 = tpu.matmul %45, %47, %cst_77 {dimension_numbers = #tpu.dot_dimension_numbers<[1], [0], [0], [1], [0, 0, 1, 1], [], []>} : vector<256x4xbf16>, vector<4x32xbf16>, vector<256x32xf32> -> vector<256x32xf32>
    %49 = arith.addf %42, %48 : vector<256x32xf32>
    %c0_78 = arith.constant 0 : index
    %c1_79 = arith.constant 1 : index
    %c2_80 = arith.constant 2 : index
    %c0_81 = arith.constant 0 : index
    %50 = vector.load %arg13[%c0_78, %c1_79, %c2_80, %c0_81] : memref<1x18x18x4xf32, #tpu.memory_space<vmem>>, vector<1x16x16x4xf32>
    %51 = vector.shape_cast %50 : vector<1x16x16x4xf32> to vector<256x4xf32>
    %52 = arith.truncf %51 : vector<256x4xf32> to vector<256x4xbf16>
    %c5 = arith.constant 5 : index
    %c0_82 = arith.constant 0 : index
    %c0_83 = arith.constant 0 : index
    %53 = vector.load %arg2[%c5, %c0_82, %c0_83] : memref<9x4x32xbf16, #tpu.memory_space<vmem>>, vector<1x4x32xbf16>
    %54 = vector.shape_cast %53 : vector<1x4x32xbf16> to vector<4x32xbf16>
    %cst_84 = arith.constant dense<0.000000e+00> : vector<256x32xf32>
    %55 = tpu.matmul %52, %54, %cst_84 {dimension_numbers = #tpu.dot_dimension_numbers<[1], [0], [0], [1], [0, 0, 1, 1], [], []>} : vector<256x4xbf16>, vector<4x32xbf16>, vector<256x32xf32> -> vector<256x32xf32>
    %56 = arith.addf %49, %55 : vector<256x32xf32>
    %c0_85 = arith.constant 0 : index
    %c2_86 = arith.constant 2 : index
    %c0_87 = arith.constant 0 : index
    %c0_88 = arith.constant 0 : index
    %57 = vector.load %arg13[%c0_85, %c2_86, %c0_87, %c0_88] : memref<1x18x18x4xf32, #tpu.memory_space<vmem>>, vector<1x16x16x4xf32>
    %58 = vector.shape_cast %57 : vector<1x16x16x4xf32> to vector<256x4xf32>
    %59 = arith.truncf %58 : vector<256x4xf32> to vector<256x4xbf16>
    %c6 = arith.constant 6 : index
    %c0_89 = arith.constant 0 : index
    %c0_90 = arith.constant 0 : index
    %60 = vector.load %arg2[%c6, %c0_89, %c0_90] : memref<9x4x32xbf16, #tpu.memory_space<vmem>>, vector<1x4x32xbf16>
    %61 = vector.shape_cast %60 : vector<1x4x32xbf16> to vector<4x32xbf16>
    %cst_91 = arith.constant dense<0.000000e+00> : vector<256x32xf32>
    %62 = tpu.matmul %59, %61, %cst_91 {dimension_numbers = #tpu.dot_dimension_numbers<[1], [0], [0], [1], [0, 0, 1, 1], [], []>} : vector<256x4xbf16>, vector<4x32xbf16>, vector<256x32xf32> -> vector<256x32xf32>
    %63 = arith.addf %56, %62 : vector<256x32xf32>
    %c0_92 = arith.constant 0 : index
    %c2_93 = arith.constant 2 : index
    %c1_94 = arith.constant 1 : index
    %c0_95 = arith.constant 0 : index
    %64 = vector.load %arg13[%c0_92, %c2_93, %c1_94, %c0_95] : memref<1x18x18x4xf32, #tpu.memory_space<vmem>>, vector<1x16x16x4xf32>
    %65 = vector.shape_cast %64 : vector<1x16x16x4xf32> to vector<256x4xf32>
    %66 = arith.truncf %65 : vector<256x4xf32> to vector<256x4xbf16>
    %c7 = arith.constant 7 : index
    %c0_96 = arith.constant 0 : index
    %c0_97 = arith.constant 0 : index
    %67 = vector.load %arg2[%c7, %c0_96, %c0_97] : memref<9x4x32xbf16, #tpu.memory_space<vmem>>, vector<1x4x32xbf16>
    %68 = vector.shape_cast %67 : vector<1x4x32xbf16> to vector<4x32xbf16>
    %cst_98 = arith.constant dense<0.000000e+00> : vector<256x32xf32>
    %69 = tpu.matmul %66, %68, %cst_98 {dimension_numbers = #tpu.dot_dimension_numbers<[1], [0], [0], [1], [0, 0, 1, 1], [], []>} : vector<256x4xbf16>, vector<4x32xbf16>, vector<256x32xf32> -> vector<256x32xf32>
    %70 = arith.addf %63, %69 : vector<256x32xf32>
    %c0_99 = arith.constant 0 : index
    %c2_100 = arith.constant 2 : index
    %c2_101 = arith.constant 2 : index
    %c0_102 = arith.constant 0 : index
    %71 = vector.load %arg13[%c0_99, %c2_100, %c2_101, %c0_102] : memref<1x18x18x4xf32, #tpu.memory_space<vmem>>, vector<1x16x16x4xf32>
    %72 = vector.shape_cast %71 : vector<1x16x16x4xf32> to vector<256x4xf32>
    %73 = arith.truncf %72 : vector<256x4xf32> to vector<256x4xbf16>
    %c8 = arith.constant 8 : index
    %c0_103 = arith.constant 0 : index
    %c0_104 = arith.constant 0 : index
    %74 = vector.load %arg2[%c8, %c0_103, %c0_104] : memref<9x4x32xbf16, #tpu.memory_space<vmem>>, vector<1x4x32xbf16>
    %75 = vector.shape_cast %74 : vector<1x4x32xbf16> to vector<4x32xbf16>
    %cst_105 = arith.constant dense<0.000000e+00> : vector<256x32xf32>
    %76 = tpu.matmul %73, %75, %cst_105 {dimension_numbers = #tpu.dot_dimension_numbers<[1], [0], [0], [1], [0, 0, 1, 1], [], []>} : vector<256x4xbf16>, vector<4x32xbf16>, vector<256x32xf32> -> vector<256x32xf32>
    %77 = arith.addf %70, %76 : vector<256x32xf32>
    %c0_106 = arith.constant 0 : index
    %c0_107 = arith.constant 0 : index
    %78 = vector.load %arg3[%c0_106, %c0_107] : memref<1x32xf32, #tpu.memory_space<vmem>>, vector<1x32xf32>
    %79 = vector.broadcast %78 : vector<1x32xf32> to vector<256x32xf32>
    %80 = arith.addf %77, %79 : vector<256x32xf32>
    %cst_108 = arith.constant 0.000000e+00 : f32
    %81 = vector.broadcast %cst_108 : f32 to vector<256x32xf32>
    %82 = arith.maximumf %80, %81 : vector<256x32xf32>
    %83 = vector.shape_cast %82 : vector<256x32xf32> to vector<1x16x16x32xf32>
    %c0_109 = arith.constant 0 : index
    %c1_110 = arith.constant 1 : index
    %c1_111 = arith.constant 1 : index
    %c0_112 = arith.constant 0 : index
    %84 = vector.load %arg14[%c0_109, %c1_110, %c1_111, %c0_112] : memref<1x18x18x32xf32, #tpu.memory_space<vmem>>, vector<1x16x16x32xf32>
    tpu.vector_store %arg14[%c0_109, %c1_110, %c1_111, %c0_112], %83 {strides = array<i32>} : memref<1x18x18x32xf32, #tpu.memory_space<vmem>>, vector<1x16x16x32xf32>,
    %cst_113 = arith.constant 0.000000e+00 : f32
    %85 = vector.broadcast %cst_113 : f32 to vector<256x32xf32>
    %c0_114 = arith.constant 0 : index
    %c0_115 = arith.constant 0 : index
    %c0_116 = arith.constant 0 : index
    %c0_117 = arith.constant 0 : index
    %86 = vector.load %arg14[%c0_114, %c0_115, %c0_116, %c0_117] : memref<1x18x18x32xf32, #tpu.memory_space<vmem>>, vector<1x16x16x32xf32>
    %87 = vector.shape_cast %86 : vector<1x16x16x32xf32> to vector<256x32xf32>
    %88 = arith.truncf %87 : vector<256x32xf32> to vector<256x32xbf16>
    %c0_118 = arith.constant 0 : index
    %c0_119 = arith.constant 0 : index
    %c0_120 = arith.constant 0 : index
    %89 = vector.load %arg4[%c0_118, %c0_119, %c0_120] : memref<9x32x32xbf16, #tpu.memory_space<vmem>>, vector<1x32x32xbf16>
    %90 = vector.shape_cast %89 : vector<1x32x32xbf16> to vector<32x32xbf16>
    %cst_121 = arith.constant dense<0.000000e+00> : vector<256x32xf32>
    %91 = tpu.matmul %88, %90, %cst_121 {dimension_numbers = #tpu.dot_dimension_numbers<[1], [0], [0], [1], [0, 0, 1, 1], [], []>} : vector<256x32xbf16>, vector<32x32xbf16>, vector<256x32xf32> -> vector<256x32xf32>
    %92 = arith.addf %85, %91 : vector<256x32xf32>
    %c0_122 = arith.constant 0 : index
    %c0_123 = arith.constant 0 : index
    %c1_124 = arith.constant 1 : index
    %c0_125 = arith.constant 0 : index
    %93 = vector.load %arg14[%c0_122, %c0_123, %c1_124, %c0_125] : memref<1x18x18x32xf32, #tpu.memory_space<vmem>>, vector<1x16x16x32xf32>
    %94 = vector.shape_cast %93 : vector<1x16x16x32xf32> to vector<256x32xf32>
    %95 = arith.truncf %94 : vector<256x32xf32> to vector<256x32xbf16>
    %c1_126 = arith.constant 1 : index
    %c0_127 = arith.constant 0 : index
    %c0_128 = arith.constant 0 : index
    %96 = vector.load %arg4[%c1_126, %c0_127, %c0_128] : memref<9x32x32xbf16, #tpu.memory_space<vmem>>, vector<1x32x32xbf16>
    %97 = vector.shape_cast %96 : vector<1x32x32xbf16> to vector<32x32xbf16>
    %cst_129 = arith.constant dense<0.000000e+00> : vector<256x32xf32>
    %98 = tpu.matmul %95, %97, %cst_129 {dimension_numbers = #tpu.dot_dimension_numbers<[1], [0], [0], [1], [0, 0, 1, 1], [], []>} : vector<256x32xbf16>, vector<32x32xbf16>, vector<256x32xf32> -> vector<256x32xf32>
    %99 = arith.addf %92, %98 : vector<256x32xf32>
    %c0_130 = arith.constant 0 : index
    %c0_131 = arith.constant 0 : index
    %c2_132 = arith.constant 2 : index
    %c0_133 = arith.constant 0 : index
    %100 = vector.load %arg14[%c0_130, %c0_131, %c2_132, %c0_133] : memref<1x18x18x32xf32, #tpu.memory_space<vmem>>, vector<1x16x16x32xf32>
    %101 = vector.shape_cast %100 : vector<1x16x16x32xf32> to vector<256x32xf32>
    %102 = arith.truncf %101 : vector<256x32xf32> to vector<256x32xbf16>
    %c2_134 = arith.constant 2 : index
    %c0_135 = arith.constant 0 : index
    %c0_136 = arith.constant 0 : index
    %103 = vector.load %arg4[%c2_134, %c0_135, %c0_136] : memref<9x32x32xbf16, #tpu.memory_space<vmem>>, vector<1x32x32xbf16>
    %104 = vector.shape_cast %103 : vector<1x32x32xbf16> to vector<32x32xbf16>
    %cst_137 = arith.constant dense<0.000000e+00> : vector<256x32xf32>
    %105 = tpu.matmul %102, %104, %cst_137 {dimension_numbers = #tpu.dot_dimension_numbers<[1], [0], [0], [1], [0, 0, 1, 1], [], []>} : vector<256x32xbf16>, vector<32x32xbf16>, vector<256x32xf32> -> vector<256x32xf32>
    %106 = arith.addf %99, %105 : vector<256x32xf32>
    %c0_138 = arith.constant 0 : index
    %c1_139 = arith.constant 1 : index
    %c0_140 = arith.constant 0 : index
    %c0_141 = arith.constant 0 : index
    %107 = vector.load %arg14[%c0_138, %c1_139, %c0_140, %c0_141] : memref<1x18x18x32xf32, #tpu.memory_space<vmem>>, vector<1x16x16x32xf32>
    %108 = vector.shape_cast %107 : vector<1x16x16x32xf32> to vector<256x32xf32>
    %109 = arith.truncf %108 : vector<256x32xf32> to vector<256x32xbf16>
    %c3_142 = arith.constant 3 : index
    %c0_143 = arith.constant 0 : index
    %c0_144 = arith.constant 0 : index
    %110 = vector.load %arg4[%c3_142, %c0_143, %c0_144] : memref<9x32x32xbf16, #tpu.memory_space<vmem>>, vector<1x32x32xbf16>
    %111 = vector.shape_cast %110 : vector<1x32x32xbf16> to vector<32x32xbf16>
    %cst_145 = arith.constant dense<0.000000e+00> : vector<256x32xf32>
    %112 = tpu.matmul %109, %111, %cst_145 {dimension_numbers = #tpu.dot_dimension_numbers<[1], [0], [0], [1], [0, 0, 1, 1], [], []>} : vector<256x32xbf16>, vector<32x32xbf16>, vector<256x32xf32> -> vector<256x32xf32>
    %113 = arith.addf %106, %112 : vector<256x32xf32>
    %c0_146 = arith.constant 0 : index
    %c1_147 = arith.constant 1 : index
    %c1_148 = arith.constant 1 : index
    %c0_149 = arith.constant 0 : index
    %114 = vector.load %arg14[%c0_146, %c1_147, %c1_148, %c0_149] : memref<1x18x18x32xf32, #tpu.memory_space<vmem>>, vector<1x16x16x32xf32>
    %115 = vector.shape_cast %114 : vector<1x16x16x32xf32> to vector<256x32xf32>
    %116 = arith.truncf %115 : vector<256x32xf32> to vector<256x32xbf16>
    %c4_150 = arith.constant 4 : index
    %c0_151 = arith.constant 0 : index
    %c0_152 = arith.constant 0 : index
    %117 = vector.load %arg4[%c4_150, %c0_151, %c0_152] : memref<9x32x32xbf16, #tpu.memory_space<vmem>>, vector<1x32x32xbf16>
    %118 = vector.shape_cast %117 : vector<1x32x32xbf16> to vector<32x32xbf16>
    %cst_153 = arith.constant dense<0.000000e+00> : vector<256x32xf32>
    %119 = tpu.matmul %116, %118, %cst_153 {dimension_numbers = #tpu.dot_dimension_numbers<[1], [0], [0], [1], [0, 0, 1, 1], [], []>} : vector<256x32xbf16>, vector<32x32xbf16>, vector<256x32xf32> -> vector<256x32xf32>
    %120 = arith.addf %113, %119 : vector<256x32xf32>
    %c0_154 = arith.constant 0 : index
    %c1_155 = arith.constant 1 : index
    %c2_156 = arith.constant 2 : index
    %c0_157 = arith.constant 0 : index
    %121 = vector.load %arg14[%c0_154, %c1_155, %c2_156, %c0_157] : memref<1x18x18x32xf32, #tpu.memory_space<vmem>>, vector<1x16x16x32xf32>
    %122 = vector.shape_cast %121 : vector<1x16x16x32xf32> to vector<256x32xf32>
    %123 = arith.truncf %122 : vector<256x32xf32> to vector<256x32xbf16>
    %c5_158 = arith.constant 5 : index
    %c0_159 = arith.constant 0 : index
    %c0_160 = arith.constant 0 : index
    %124 = vector.load %arg4[%c5_158, %c0_159, %c0_160] : memref<9x32x32xbf16, #tpu.memory_space<vmem>>, vector<1x32x32xbf16>
    %125 = vector.shape_cast %124 : vector<1x32x32xbf16> to vector<32x32xbf16>
    %cst_161 = arith.constant dense<0.000000e+00> : vector<256x32xf32>
    %126 = tpu.matmul %123, %125, %cst_161 {dimension_numbers = #tpu.dot_dimension_numbers<[1], [0], [0], [1], [0, 0, 1, 1], [], []>} : vector<256x32xbf16>, vector<32x32xbf16>, vector<256x32xf32> -> vector<256x32xf32>
    %127 = arith.addf %120, %126 : vector<256x32xf32>
    %c0_162 = arith.constant 0 : index
    %c2_163 = arith.constant 2 : index
    %c0_164 = arith.constant 0 : index
    %c0_165 = arith.constant 0 : index
    %128 = vector.load %arg14[%c0_162, %c2_163, %c0_164, %c0_165] : memref<1x18x18x32xf32, #tpu.memory_space<vmem>>, vector<1x16x16x32xf32>
    %129 = vector.shape_cast %128 : vector<1x16x16x32xf32> to vector<256x32xf32>
    %130 = arith.truncf %129 : vector<256x32xf32> to vector<256x32xbf16>
    %c6_166 = arith.constant 6 : index
    %c0_167 = arith.constant 0 : index
    %c0_168 = arith.constant 0 : index
    %131 = vector.load %arg4[%c6_166, %c0_167, %c0_168] : memref<9x32x32xbf16, #tpu.memory_space<vmem>>, vector<1x32x32xbf16>
    %132 = vector.shape_cast %131 : vector<1x32x32xbf16> to vector<32x32xbf16>
    %cst_169 = arith.constant dense<0.000000e+00> : vector<256x32xf32>
    %133 = tpu.matmul %130, %132, %cst_169 {dimension_numbers = #tpu.dot_dimension_numbers<[1], [0], [0], [1], [0, 0, 1, 1], [], []>} : vector<256x32xbf16>, vector<32x32xbf16>, vector<256x32xf32> -> vector<256x32xf32>
    %134 = arith.addf %127, %133 : vector<256x32xf32>
    %c0_170 = arith.constant 0 : index
    %c2_171 = arith.constant 2 : index
    %c1_172 = arith.constant 1 : index
    %c0_173 = arith.constant 0 : index
    %135 = vector.load %arg14[%c0_170, %c2_171, %c1_172, %c0_173] : memref<1x18x18x32xf32, #tpu.memory_space<vmem>>, vector<1x16x16x32xf32>
    %136 = vector.shape_cast %135 : vector<1x16x16x32xf32> to vector<256x32xf32>
    %137 = arith.truncf %136 : vector<256x32xf32> to vector<256x32xbf16>
    %c7_174 = arith.constant 7 : index
    %c0_175 = arith.constant 0 : index
    %c0_176 = arith.constant 0 : index
    %138 = vector.load %arg4[%c7_174, %c0_175, %c0_176] : memref<9x32x32xbf16, #tpu.memory_space<vmem>>, vector<1x32x32xbf16>
    %139 = vector.shape_cast %138 : vector<1x32x32xbf16> to vector<32x32xbf16>
    %cst_177 = arith.constant dense<0.000000e+00> : vector<256x32xf32>
    %140 = tpu.matmul %137, %139, %cst_177 {dimension_numbers = #tpu.dot_dimension_numbers<[1], [0], [0], [1], [0, 0, 1, 1], [], []>} : vector<256x32xbf16>, vector<32x32xbf16>, vector<256x32xf32> -> vector<256x32xf32>
    %141 = arith.addf %134, %140 : vector<256x32xf32>
    %c0_178 = arith.constant 0 : index
    %c2_179 = arith.constant 2 : index
    %c2_180 = arith.constant 2 : index
    %c0_181 = arith.constant 0 : index
    %142 = vector.load %arg14[%c0_178, %c2_179, %c2_180, %c0_181] : memref<1x18x18x32xf32, #tpu.memory_space<vmem>>, vector<1x16x16x32xf32>
    %143 = vector.shape_cast %142 : vector<1x16x16x32xf32> to vector<256x32xf32>
    %144 = arith.truncf %143 : vector<256x32xf32> to vector<256x32xbf16>
    %c8_182 = arith.constant 8 : index
    %c0_183 = arith.constant 0 : index
    %c0_184 = arith.constant 0 : index
    %145 = vector.load %arg4[%c8_182, %c0_183, %c0_184] : memref<9x32x32xbf16, #tpu.memory_space<vmem>>, vector<1x32x32xbf16>
    %146 = vector.shape_cast %145 : vector<1x32x32xbf16> to vector<32x32xbf16>
    %cst_185 = arith.constant dense<0.000000e+00> : vector<256x32xf32>
    %147 = tpu.matmul %144, %146, %cst_185 {dimension_numbers = #tpu.dot_dimension_numbers<[1], [0], [0], [1], [0, 0, 1, 1], [], []>} : vector<256x32xbf16>, vector<32x32xbf16>, vector<256x32xf32> -> vector<256x32xf32>
    %148 = arith.addf %141, %147 : vector<256x32xf32>
    %c0_186 = arith.constant 0 : index
    %c0_187 = arith.constant 0 : index
    %149 = vector.load %arg5[%c0_186, %c0_187] : memref<1x32xf32, #tpu.memory_space<vmem>>, vector<1x32xf32>
    %150 = vector.broadcast %149 : vector<1x32xf32> to vector<256x32xf32>
    %151 = arith.addf %148, %150 : vector<256x32xf32>
    %cst_188 = arith.constant 0.000000e+00 : f32
    %152 = vector.broadcast %cst_188 : f32 to vector<256x32xf32>
    %153 = arith.maximumf %151, %152 : vector<256x32xf32>
    %c0_189 = arith.constant 0 : index
    %c0_190 = arith.constant 0 : index
    %154 = vector.load %arg6[%c0_189, %c0_190] : memref<1x32xf32, #tpu.memory_space<vmem>>, vector<1x32xf32>
    %155 = vector.broadcast %154 : vector<1x32xf32> to vector<256x32xf32>
    %156 = arith.mulf %153, %155 : vector<256x32xf32>
    %cst_191 = arith.constant dense<0.000000e+00> : vector<256xf32>
    %157 = vector.multi_reduction <add>, %156, %cst_191 [1] : vector<256x32xf32> to vector<256xf32>
    %158 = vector.shape_cast %157 : vector<256xf32> to vector<256x1xf32>
    %c0_192 = arith.constant 0 : index
    %c0_193 = arith.constant 0 : index
    %159 = memref.load %arg7[%c0_192, %c0_193] : memref<1x1xf32, #tpu.memory_space<smem>>
    %160 = vector.broadcast %159 : f32 to vector<256x1xf32>
    %161 = arith.addf %158, %160 : vector<256x1xf32>
    %162 = arith.negf %161 : vector<256x1xf32>
    %163 = math.exp %162 : vector<256x1xf32>
    %cst_194 = arith.constant 1.000000e+00 : f32
    %164 = vector.broadcast %cst_194 : f32 to vector<256x1xf32>
    %165 = arith.addf %164, %163 : vector<256x1xf32>
    %166 = arith.divf %164, %165 : vector<256x1xf32>
    %167 = vector.broadcast %166 : vector<256x1xf32> to vector<256x32xf32>
    %168 = arith.mulf %153, %167 : vector<256x32xf32>
    %169 = vector.shape_cast %168 : vector<256x32xf32> to vector<1x256x32xf32>
    %cst_195 = arith.constant dense<0.000000e+00> : vector<1x32xf32>
    %170 = vector.multi_reduction <add>, %169, %cst_195 [1] : vector<1x256x32xf32> to vector<1x32xf32>
    %cst_196 = arith.constant 3.906250e-03 : f32
    %171 = vector.broadcast %cst_196 : f32 to vector<1x32xf32>
    %172 = arith.mulf %170, %171 : vector<1x32xf32>
    %c0_197 = arith.constant 0 : index
    %c0_198 = arith.constant 0 : index
    %173 = vector.load %arg8[%c0_197, %c0_198] : memref<32x16xf32, #tpu.memory_space<vmem>>, vector<32x16xf32>
    %cst_199 = arith.constant dense<0.000000e+00> : vector<1x16xf32>
    %174 = tpu.matmul %172, %173, %cst_199 {dimension_numbers = #tpu.dot_dimension_numbers<[1], [0], [0], [1], [0, 0, 1, 1], [], []>} : vector<1x32xf32>, vector<32x16xf32>, vector<1x16xf32> -> vector<1x16xf32>
    %c0_200 = arith.constant 0 : index
    %c0_201 = arith.constant 0 : index
    %175 = vector.load %arg9[%c0_200, %c0_201] : memref<1x16xf32, #tpu.memory_space<vmem>>, vector<1x16xf32>
    %176 = arith.addf %174, %175 : vector<1x16xf32>
    %cst_202 = arith.constant 0.000000e+00 : f32
    %177 = vector.broadcast %cst_202 : f32 to vector<1x16xf32>
    %178 = arith.maximumf %176, %177 : vector<1x16xf32>
    %c0_203 = arith.constant 0 : index
    %c0_204 = arith.constant 0 : index
    %179 = vector.load %arg10[%c0_203, %c0_204] : memref<16x32xf32, #tpu.memory_space<vmem>>, vector<16x32xf32>
    %cst_205 = arith.constant dense<0.000000e+00> : vector<1x32xf32>
    %180 = tpu.matmul %178, %179, %cst_205 {dimension_numbers = #tpu.dot_dimension_numbers<[1], [0], [0], [1], [0, 0, 1, 1], [], []>} : vector<1x16xf32>, vector<16x32xf32>, vector<1x32xf32> -> vector<1x32xf32>
    %c0_206 = arith.constant 0 : index
    %c0_207 = arith.constant 0 : index
    %181 = vector.load %arg11[%c0_206, %c0_207] : memref<1x32xf32, #tpu.memory_space<vmem>>, vector<1x32xf32>
    %182 = arith.addf %180, %181 : vector<1x32xf32>
    %183 = arith.negf %182 : vector<1x32xf32>
    %184 = math.exp %183 : vector<1x32xf32>
    %cst_208 = arith.constant 1.000000e+00 : f32
    %185 = vector.broadcast %cst_208 : f32 to vector<1x32xf32>
    %186 = arith.addf %185, %184 : vector<1x32xf32>
    %187 = arith.divf %185, %186 : vector<1x32xf32>
    %188 = vector.shape_cast %187 : vector<1x32xf32> to vector<1x1x32xf32>
    %189 = vector.broadcast %188 : vector<1x1x32xf32> to vector<1x256x32xf32>
    %190 = arith.mulf %169, %189 : vector<1x256x32xf32>
    %191 = vector.shape_cast %190 : vector<1x256x32xf32> to vector<1x16x16x32xf32>
    %c0_209 = arith.constant 0 : index
    %c0_210 = arith.constant 0 : index
    %c0_211 = arith.constant 0 : index
    %c0_212 = arith.constant 0 : index
    %192 = vector.load %arg12[%c0_209, %c0_210, %c0_211, %c0_212] : memref<1x16x16x32xf32, #tpu.memory_space<vmem>>, vector<1x16x16x32xf32>
    tpu.vector_store %arg12[%c0_209, %c0_210, %c0_211, %c0_212], %191 {strides = array<i32>} : memref<1x16x16x32xf32, #tpu.memory_space<vmem>>, vector<1x16x16x32xf32>,
    return
  }
  func.func @transform_0(%arg0: i32) -> (i32, i32, i32, i32) {
    %c0_i32 = arith.constant 0 : i32
    %c0_i32_0 = arith.constant 0 : i32
    %c0_i32_1 = arith.constant 0 : i32
    %c0_i32_2 = arith.constant 0 : i32
    return %arg0, %c0_i32, %c0_i32_0, %c0_i32_1 : i32, i32, i32, i32
  }
  func.func @transform_1(%arg0: i32) -> (i32, i32, i32) {
    %c0_i32 = arith.constant 0 : i32
    %c0_i32_0 = arith.constant 0 : i32
    %c0_i32_1 = arith.constant 0 : i32
    %c0_i32_2 = arith.constant 0 : i32
    return %c0_i32, %c0_i32_0, %c0_i32_1 : i32, i32, i32
  }
  func.func @transform_2(%arg0: i32) -> (i32, i32) {
    %c0_i32 = arith.constant 0 : i32
    %c0_i32_0 = arith.constant 0 : i32
    %c0_i32_1 = arith.constant 0 : i32
    return %c0_i32, %c0_i32_0 : i32, i32
  }
  func.func @transform_3(%arg0: i32) -> (i32, i32, i32) {
    %c0_i32 = arith.constant 0 : i32
    %c0_i32_0 = arith.constant 0 : i32
    %c0_i32_1 = arith.constant 0 : i32
    %c0_i32_2 = arith.constant 0 : i32
    return %c0_i32, %c0_i32_0, %c0_i32_1 : i32, i32, i32
  }
  func.func @transform_4(%arg0: i32) -> (i32, i32) {
    %c0_i32 = arith.constant 0 : i32
    %c0_i32_0 = arith.constant 0 : i32
    %c0_i32_1 = arith.constant 0 : i32
    return %c0_i32, %c0_i32_0 : i32, i32
  }
  func.func @transform_5(%arg0: i32) -> (i32, i32) {
    %c0_i32 = arith.constant 0 : i32
    %c0_i32_0 = arith.constant 0 : i32
    %c0_i32_1 = arith.constant 0 : i32
    return %c0_i32, %c0_i32_0 : i32, i32
  }
  func.func @transform_6(%arg0: i32) -> (i32, i32) {
    %c0_i32 = arith.constant 0 : i32
    %c0_i32_0 = arith.constant 0 : i32
    %c0_i32_1 = arith.constant 0 : i32
    return %c0_i32, %c0_i32_0 : i32, i32
  }
  func.func @transform_7(%arg0: i32) -> (i32, i32) {
    %c0_i32 = arith.constant 0 : i32
    %c0_i32_0 = arith.constant 0 : i32
    %c0_i32_1 = arith.constant 0 : i32
    return %c0_i32, %c0_i32_0 : i32, i32
  }
  func.func @transform_8(%arg0: i32) -> (i32, i32) {
    %c0_i32 = arith.constant 0 : i32
    %c0_i32_0 = arith.constant 0 : i32
    %c0_i32_1 = arith.constant 0 : i32
    return %c0_i32, %c0_i32_0 : i32, i32
  }
  func.func @transform_9(%arg0: i32) -> (i32, i32) {
    %c0_i32 = arith.constant 0 : i32
    %c0_i32_0 = arith.constant 0 : i32
    %c0_i32_1 = arith.constant 0 : i32
    return %c0_i32, %c0_i32_0 : i32, i32
  }
  func.func @transform_10(%arg0: i32) -> (i32, i32) {
    %c0_i32 = arith.constant 0 : i32
    %c0_i32_0 = arith.constant 0 : i32
    %c0_i32_1 = arith.constant 0 : i32
    return %c0_i32, %c0_i32_0 : i32, i32
  }
  func.func @transform_11(%arg0: i32) -> (i32, i32, i32, i32) {
    %c0_i32 = arith.constant 0 : i32
    %c0_i32_0 = arith.constant 0 : i32
    %c0_i32_1 = arith.constant 0 : i32
    %c0_i32_2 = arith.constant 0 : i32
    return %arg0, %c0_i32, %c0_i32_0, %c0_i32_1 : i32, i32, i32, i32
  }
}

</mosaic_0001>

<bundles_post_ra>
// kernel: tpu_custom_call.1
= control target key start
LH: loop header
LB: loop body
LE: loop exit
PB: predicated region body
PF: predicated region fallthrough
CT: control target
= control target key end

     0   :  { %s9678_s0 = inlined_call_operand.vmem [shape: f32[2,16,16,4], index: 0, kind: input, shape index: {}]   ;;  %s9679_s1 = inlined_call_operand.vmem [shape: bf16[9,4,32], index: 1, kind: input, shape index: {}]   ;;  %s9680_s2 = inlined_call_operand.vmem [shape: f32[1,32], index: 2, kind: input, shape index: {}]   ;;  %s9681_s3 = inlined_call_operand.vmem [shape: bf16[9,32,32], index: 3, kind: input, shape index: {}]   ;;  %s9682_s4 = inlined_call_operand.vmem [shape: f32[1,32], index: 4, kind: input, shape index: {}]   ;;  %s9683_s5 = inlined_call_operand.vmem [shape: f32[1,32], index: 5, kind: input, shape index: {}]   ;;  %s9684_s6 = inlined_call_operand.<no memory space> [shape: f32[1,1], index: 6, kind: input, shape index: {}]   ;;  %s9685_s7 = inlined_call_operand.vmem [shape: f32[32,16], index: 7, kind: input, shape index: {}]   ;;  %s9686_s8 = inlined_call_operand.vmem [shape: f32[1,16], index: 8, kind: input, shape index: {}]   ;;  %s9687_s9 = inlined_call_operand.vmem [shape: f32[16,32], index: 9, kind: input, shape index: {}]   ;;  %s9688_s10 = inlined_call_operand.vmem [shape: f32[1,32], index: 10, kind: input, shape index: {}]   ;;  %s9689_s11 = inlined_call_operand.hbm [shape: f32[2,16,16,32], index: 11, kind: output, shape index: {}]  }
   0x1   :  { %16 = sst [smem:[#allocation4]] %s9684_s6 }
   0x2   :  { %17 = vsyncpa [#allocation6], 0 }
   0x3   :  { %19 = vsyncpa [#allocation6 + $0x1], 0  ;;  %s6561_s19 = smov 0   ;;  %s6563_s20 = smov 0  }
   0x4   :  { %s6565_s21 = smov 0   ;;  %s6567_s22 = smov 0  }
   0x5 LB: > { %s6582_s6 = sadd.s32 4294967295, %s6493_s22   ;;  %s5784_s23 = sadd.s32 4294967294, %s6493_s22   ;;  %s6493_s22 = sphi %s6567_s22, %s9934_s22   ;;  %s6489_s21 = sphi %s6565_s21, %s9933_s21   ;;  %s6485_s20 = sphi %s6563_s20, %s9932_s20   ;;  %s6481_s19 = sphi %s6561_s19, %s9931_s19  }
   0x6   : > { %s6586_s24 = sadd.s32 1, %s6493_s22   ;;  %s268_s25 = sadd.s32 1, %s6489_s21 }
   0x7   : > { %s265_s26 = ssub.s32 %s6493_s22, %s6586_s24  ;;  %p278_p0 = scmp.ne.s32.totalorder %s6489_s21, %s6485_s20 }
   0x8   : > { %p266_p1 = scmp.eq.s32.totalorder %s265_s26, 0  ;;  %p279_p2 = scmp.eq.s32.totalorder %s6582_s6, 1 }
   0x9   : > { %p284_p3 = scmp.ne.s32.totalorder %s6485_s20, %s6481_s19  ;;  %p285_p4 = scmp.eq.s32.totalorder %s5784_s23, 1 }
   0xa   : > { %s6597_s27 = scalar_select %p266_p1, %s6489_s21, %s268_s25  }
   0xb   : > { %p6599_p5 = por %p279_p2, %p278_p0  ;;  %p6603_p6 = por %p285_p4, %p284_p3 }
   0xc   : > { %p5787_p7 = scmp.ge.s32.totalorder %s6493_s22, 1  ;;  %p341_p8 = scmp.lt.s32.totalorder %s6493_s22, 3 }
   0xe   : > { %p342_p9 = pnand %p5787_p7, %p341_p8 }
  0x10   : > { %345 = sbr.rel (%p342_p9) target bundleno = 1993 (0x7c9), region = 64 }
  0x15   : > { %v5791_v0 = vld [vmem:[%s9679_s1 + $0x2] sm:$0x3]  ;;  %vm691_vm0 = vcmask 1041408   ;;  %v592_v1 = vld [vmem:[%s9679_s1] sm:$0x3]  ;;  %vm387_vm1 = vcmask 31744  }
  0x16   : > { %v693_v2 = vsel %vm691_vm0, %v5791_v0, 0  ;;  %v833_v3 = vsel %vm691_vm0, %v592_v1, 0  ;;  %vm390_vm2 = vcmask 25600   ;;  %v9690_v4 = vmov 0.0   ;;  %v5858_v6 = vld [vmem:[%s9679_s1 + $0x8] sm:$0x3] }
  0x17   : > { %702 = vmatpush.bf16.msra.mxu0 %v693_v2  ;;  %842 = vmatpush.bf16.msra.mxu1 %v833_v3  ;;  %388 = vst.msk [vmem:[#allocation2] sm:$0xff] %vm387_vm1, %v9690_v4  ;;  %vm396_vm3 = vcmask 24576   ;;  %v1467_v8 = vsel %vm691_vm0, %v5858_v6, 0  ;;  %p381_p10 = scmp.lt.s32.totalorder %s6582_s6, 1  ;;  %v5824_v13 = vld [vmem:[%s9679_s1 + $0x4] sm:$0x3] }
  0x18   : > { %389 = vst.msk [vmem:[#allocation2 + $0x8] sm:$0xff] %vm387_vm1, %v9690_v4  ;;  %6251 = vmatpush.bf16.msra.mxu2 %v693_v2  ;;  %6252 = vmatpush.bf16.msra.mxu3 %v833_v3  ;;  %v5841_v14 = vld [vmem:[%s9679_s1 + $0x6] sm:$0x3]  ;;  %v1023_v15 = vsel %vm691_vm0, %v5824_v13, 0  ;;  %vm498_vm4 = vcmask 261120   ;;  %vm501_vm5 = vcmask 254976  }
  0x19   : > { %391 = vst.msk [vmem:[#allocation2 + $0x10] sm:$0x3] %vm390_vm2, %v9690_v4  ;;  %s382_s17 = scalar_select %p381_p10, %s6582_s6, 1  ;;  %v1245_v16 = vsel %vm691_vm0, %v5841_v14, 0  ;;  %vm507_vm6 = vcmask 253952  }
  0x1a   : > { %395 = vst.msk [vmem:[#allocation2 + $0x1a8] sm:$0x3] %vm390_vm2, %v9690_v4  ;;  %s6250_s30 = sshll.u32 %s6582_s6, 8  ;;  %s6451_s12 = scalar_lea.hbm %s9689_s11, 512 }
  0x1b   : > { %415 = vst.msk [vmem:[#allocation2 + $0x11] sm:$0x1] %vm396_vm3, %v9690_v4  ;;  %1476 = vmatpush.bf16.msrb.mxu0 %v1467_v8  ;;  %s6231_s18 = sshll.u32 %s382_s17, 8  ;;  %s5718_s13 = scalar_lea.hbm %s9689_s11, %s6250_s30 }
  0x1c   : > { %393 = vst.msk [vmem:[#allocation2 + $0x198] sm:$0xff] %vm387_vm1, %v9690_v4  ;;  %s6700_s26 = scalar_lea.vmem %s9678_s0, %s6231_s18  ;;  %1032 = vmatpush.bf16.msrb.mxu2 %v1023_v15  ;;  %1254 = vmatpush.bf16.msrb.mxu3 %v1245_v16  ;;  %s378_s18 = sand.u32 1, %s6485_s20  }
  0x1d   : > { %394 = vst.msk [vmem:[#allocation2 + $0x1a0] sm:$0xff] %vm387_vm1, %v9690_v4  ;;  %v449_v17 = vld [vmem:[%s6700_s26 + $0x80] sm:$0xff]  ;;  %v450_v18 = vld [vmem:[%s6700_s26 + $0x88] sm:$0xff]  ;;  %v451_v21 = vld [vmem:[%s6700_s26 + $0x90] sm:$0xff]  ;;  %s5788_s23 = sshll.u32 %s378_s18, 8  ;;  %s5707_s15 = scalar_lea.sflag [#allocation6], %s378_s18 }
  0x1e   : > { %397 = vst.msk [vmem:[#allocation2] sm:$0x1] %vm396_vm3, %v9690_v4  ;;  %v433_v19 = vld [vmem:[%s6700_s26] sm:$0xff]  ;;  %v434_v20 = vld [vmem:[%s6700_s26 + $0x8] sm:$0xff]  ;;  %v452_v22 = vld [vmem:[%s6700_s26 + $0x98] sm:$0xff]  ;;  %s9524_s25 = scalar_lea.vmem [#allocation5], %s5788_s23 }
  0x1f   : > { %v593_v5 = vld [vmem:[#allocation2 + $0x1] sm:$0xff]  ;;  %398 = vst.msk [vmem:[#allocation2 + $0x18] sm:$0x1] %vm396_vm3, %v9690_v4  ;;  %v435_v23 = vld [vmem:[%s6700_s26 + $0x10] sm:$0xff]  ;;  %v436_v24 = vld [vmem:[%s6700_s26 + $0x18] sm:$0xff]  ;;  %s5719_s14 = sshll.u32 %s9524_s25, 4  ;;  %s5720_s14 = int_to_ptr.vmem [resolvable:$true] %s5719_s14 }
  0x20   : > { %v594_v7 = vld [vmem:[#allocation2 + $0x9] sm:$0xff]  ;;  %399 = vst.msk [vmem:[#allocation2 + $0x30] sm:$0x1] %vm396_vm3, %v9690_v4  ;;  %v453_v25 = vld [vmem:[%s6700_s26 + $0xa0] sm:$0xff]  ;;  %v456_v42 = vld [vmem:[%s6700_s26 + $0xb8] sm:$0xff] }
  0x21   : > { %v625_v9 = vpack.c.bf16 %v594_v7, %v593_v5  ;;  %400 = vst.msk [vmem:[#allocation2 + $0x48] sm:$0x1] %vm396_vm3, %v9690_v4  ;;  %v545_v10 = vld [vmem:[#allocation2 + $0x8] sm:$0xff]  ;;  %v437_v37 = vld [vmem:[%s6700_s26 + $0x20] sm:$0xff]  ;;  %v455_v41 = vld [vmem:[%s6700_s26 + $0xb0] sm:$0xff] }
  0x22   : > { %401 = vst.msk [vmem:[#allocation2 + $0x60] sm:$0x1] %vm396_vm3, %v9690_v4  ;;  %v454_v26 = vld [vmem:[%s6700_s26 + $0xa8] sm:$0xff]  ;;  %v439_v55 = vld [vmem:[%s6700_s26 + $0x30] sm:$0xff]  ;;  %v440_v56 = vld [vmem:[%s6700_s26 + $0x38] sm:$0xff] }
  0x23   : > { %5792 = vmatmul.msk.bf16.vlgmr.msra.gmra.mxu0 %vm387_vm1, %v625_v9  ;;  %402 = vst.msk [vmem:[#allocation2 + $0x78] sm:$0x1] %vm396_vm3, %v9690_v4  ;;  %v438_v40 = vld [vmem:[%s6700_s26 + $0x28] sm:$0xff]  ;;  %v457_v57 = vld [vmem:[%s6700_s26 + $0xc0] sm:$0xff] }
  0x24   : > { %403 = vst.msk [vmem:[#allocation2 + $0x90] sm:$0x1] %vm396_vm3, %v9690_v4  ;;  %v458_v58 = vld [vmem:[%s6700_s26 + $0xc8] sm:$0xff]  ;;  %v441_v8 = vld [vmem:[%s6700_s26 + $0x40] sm:$0xff] }
  0x25   : > { %404 = vst.msk [vmem:[#allocation2 + $0xa8] sm:$0x1] %vm396_vm3, %v9690_v4  ;;  %v544_v11 = vld [vmem:[#allocation2] sm:$0xff]  ;;  %v442_v9 = vld [vmem:[%s6700_s26 + $0x48] sm:$0xff] }
  0x26   : > { %405 = vst.msk [vmem:[#allocation2 + $0xc0] sm:$0x1] %vm396_vm3, %v9690_v4  ;;  %v576_v12 = vpack.c.bf16 %v545_v10, %v544_v11  ;;  %v459_v10 = vld [vmem:[%s6700_s26 + $0xd0] sm:$0xff]  ;;  %v460_v11 = vld [vmem:[%s6700_s26 + $0xd8] sm:$0xff] }
  0x27   : > { %406 = vst.msk [vmem:[#allocation2 + $0xd8] sm:$0x1] %vm396_vm3, %v9690_v4 }
  0x28   : > { %407 = vst.msk [vmem:[#allocation2 + $0xf0] sm:$0x1] %vm396_vm3, %v9690_v4  ;;  %5808 = vmatmul.msk.bf16.vlgmr.msra.gmra.mxu1 %vm387_vm1, %v576_v12 }
  0x29   : > { %408 = vst.msk [vmem:[#allocation2 + $0x108] sm:$0x1] %vm396_vm3, %v9690_v4 }
  0x2a   : > { %409 = vst.msk [vmem:[#allocation2 + $0x120] sm:$0x1] %vm396_vm3, %v9690_v4 }
  0x2b   : > { %410 = vst.msk [vmem:[#allocation2 + $0x138] sm:$0x1] %vm396_vm3, %v9690_v4 }
  0x2c   : > { %411 = vst.msk [vmem:[#allocation2 + $0x150] sm:$0x1] %vm396_vm3, %v9690_v4 }
  0x2d   : > { %412 = vst.msk [vmem:[#allocation2 + $0x168] sm:$0x1] %vm396_vm3, %v9690_v4 }
  0x2e   : > { %413 = vst.msk [vmem:[#allocation2 + $0x180] sm:$0x1] %vm396_vm3, %v9690_v4 }
  0x2f   : > { %416 = vst.msk [vmem:[#allocation2 + $0x29] sm:$0x1] %vm396_vm3, %v9690_v4 }
  0x30   : > { %417 = vst.msk [vmem:[#allocation2 + $0x41] sm:$0x1] %vm396_vm3, %v9690_v4 }
  0x31   : > { %418 = vst.msk [vmem:[#allocation2 + $0x59] sm:$0x1] %vm396_vm3, %v9690_v4 }
  0x32   : > { %419 = vst.msk [vmem:[#allocation2 + $0x71] sm:$0x1] %vm396_vm3, %v9690_v4 }
  0x33   : > { %420 = vst.msk [vmem:[#allocation2 + $0x89] sm:$0x1] %vm396_vm3, %v9690_v4 }
  0x34   : > { %421 = vst.msk [vmem:[#allocation2 + $0xa1] sm:$0x1] %vm396_vm3, %v9690_v4 }
  0x35   : > { %422 = vst.msk [vmem:[#allocation2 + $0xb9] sm:$0x1] %vm396_vm3, %v9690_v4 }
  0x36   : > { %423 = vst.msk [vmem:[#allocation2 + $0xd1] sm:$0x1] %vm396_vm3, %v9690_v4 }
  0x37   : > { %424 = vst.msk [vmem:[#allocation2 + $0xe9] sm:$0x1] %vm396_vm3, %v9690_v4 }
  0x38   : > { %425 = vst.msk [vmem:[#allocation2 + $0x101] sm:$0x1] %vm396_vm3, %v9690_v4 }
  0x39   : > { %426 = vst.msk [vmem:[#allocation2 + $0x119] sm:$0x1] %vm396_vm3, %v9690_v4 }
  0x3a   : > { %427 = vst.msk [vmem:[#allocation2 + $0x131] sm:$0x1] %vm396_vm3, %v9690_v4 }
  0x3b   : > { %428 = vst.msk [vmem:[#allocation2 + $0x149] sm:$0x1] %vm396_vm3, %v9690_v4 }
  0x3c   : > { %429 = vst.msk [vmem:[#allocation2 + $0x161] sm:$0x1] %vm396_vm3, %v9690_v4 }
  0x3d   : > { %430 = vst.msk [vmem:[#allocation2 + $0x179] sm:$0x1] %vm396_vm3, %v9690_v4 }
  0x3e   : > { %431 = vst.msk [vmem:[#allocation2 + $0x191] sm:$0x1] %vm396_vm3, %v9690_v4 }
  0x3f   : > { %432 = vst.msk [vmem:[#allocation2 + $0x1a9] sm:$0x1] %vm396_vm3, %v9690_v4 }
  0x40   : > { %414 = vst.msk [vmem:[#allocation2 + $0x198] sm:$0x1] %vm396_vm3, %v9690_v4 }
  0x41   : > { %482 = vst.msk [vmem:[#allocation2 + $0xd9] sm:$0xff] %vm387_vm1, %v449_v17 }
  0x42   : > { %483 = vst.msk [vmem:[#allocation2 + $0xe1] sm:$0xff] %vm387_vm1, %v450_v18 }
  0x43   : > { %466 = vst.msk [vmem:[#allocation2 + $0x19] sm:$0xff] %vm387_vm1, %v433_v19 }
  0x44   : > { %467 = vst.msk [vmem:[#allocation2 + $0x21] sm:$0xff] %vm387_vm1, %v434_v20 }
  0x45   : > { %484 = vst.msk [vmem:[#allocation2 + $0xf1] sm:$0xff] %vm387_vm1, %v451_v21 }
  0x46   : > { %485 = vst.msk [vmem:[#allocation2 + $0xf9] sm:$0xff] %vm387_vm1, %v452_v22 }
  0x47   : > { %468 = vst.msk [vmem:[#allocation2 + $0x31] sm:$0xff] %vm387_vm1, %v435_v23 }
  0x48   : > { %v611_v27 = vld [vmem:[#allocation2 + $0xd9] sm:$0xff]  ;;  %469 = vst.msk [vmem:[#allocation2 + $0x39] sm:$0xff] %vm387_vm1, %v436_v24  ;;  %v443_v24 = vld [vmem:[%s6700_s26 + $0x50] sm:$0xff] }
  0x49   : > { %v562_v28 = vld [vmem:[#allocation2 + $0xd8] sm:$0xff]  ;;  %v612_v29 = vld [vmem:[#allocation2 + $0xe1] sm:$0xff]  ;;  %486 = vst.msk [vmem:[#allocation2 + $0x109] sm:$0xff] %vm387_vm1, %v453_v25 }
  0x4a   : > { %v563_v30 = vld [vmem:[#allocation2 + $0xe0] sm:$0xff]  ;;  %v6739_v31 = vpack.c.bf16 %v612_v29, %v611_v27  ;;  %v546_v34 = vld [vmem:[#allocation2 + $0x18] sm:$0xff]  ;;  %487 = vst.msk [vmem:[#allocation2 + $0x111] sm:$0xff] %vm387_vm1, %v454_v26  ;;  %v462_v27 = vld [vmem:[%s6700_s26 + $0xe8] sm:$0xff] }
  0x4b   : > { %v6741_v32 = vpack.c.bf16 %v563_v30, %v562_v28  ;;  %v595_v33 = vld [vmem:[#allocation2 + $0x19] sm:$0xff]  ;;  %v596_v35 = vld [vmem:[#allocation2 + $0x21] sm:$0xff]  ;;  %470 = vst.msk [vmem:[#allocation2 + $0x49] sm:$0xff] %vm387_vm1, %v437_v37 }
  0x4c   : > { %v547_v36 = vld [vmem:[#allocation2 + $0x20] sm:$0xff]  ;;  %5801 = vmatmul.msk.bf16.vlgmr.msra.gmra.mxu2 %vm387_vm1, %v6739_v31  ;;  %v6749_v38 = vpack.c.bf16 %v596_v35, %v595_v33  ;;  %471 = vst.msk [vmem:[#allocation2 + $0x51] sm:$0xff] %vm387_vm1, %v438_v40  ;;  %v613_v43 = vld [vmem:[#allocation2 + $0xf1] sm:$0xff] }
  0x4d   : > { %5817 = vmatmul.msk.bf16.vlgmr.msra.gmra.mxu3 %vm387_vm1, %v6741_v32  ;;  %v6751_v39 = vpack.c.bf16 %v547_v36, %v546_v34  ;;  %488 = vst.msk [vmem:[#allocation2 + $0x121] sm:$0xff] %vm387_vm1, %v455_v41  ;;  %v614_v44 = vld [vmem:[#allocation2 + $0xf9] sm:$0xff]  ;;  %v564_v45 = vld [vmem:[#allocation2 + $0xf0] sm:$0xff] }
  0x4e   : > { %5793 = vmatmul.msk.bf16.gmra.mxu0 %vm387_vm1, %v6749_v38  ;;  %489 = vst.msk [vmem:[#allocation2 + $0x129] sm:$0xff] %vm387_vm1, %v456_v42  ;;  %v565_v46 = vld [vmem:[#allocation2 + $0xf8] sm:$0xff]  ;;  %v548_v49 = vld [vmem:[#allocation2 + $0x30] sm:$0xff]  ;;  %v6764_v51 = vpack.c.bf16 %v614_v44, %v613_v43  ;;  %v461_v26 = vld [vmem:[%s6700_s26 + $0xe0] sm:$0xff] }
  0x4f   : > { %5809 = vmatmul.msk.bf16.gmra.mxu1 %vm387_vm1, %v6751_v39  ;;  %v597_v47 = vld [vmem:[#allocation2 + $0x31] sm:$0xff]  ;;  %v598_v48 = vld [vmem:[#allocation2 + $0x39] sm:$0xff]  ;;  %v6766_v52 = vpack.c.bf16 %v565_v46, %v564_v45  ;;  %472 = vst.msk [vmem:[#allocation2 + $0x61] sm:$0xff] %vm387_vm1, %v439_v55  ;;  %v446_v45 = vld [vmem:[%s6700_s26 + $0x68] sm:$0xff] }
  0x50   : > { %v549_v50 = vld [vmem:[#allocation2 + $0x38] sm:$0xff]  ;;  %v6768_v53 = vpack.c.bf16 %v598_v48, %v597_v47  ;;  %473 = vst.msk [vmem:[#allocation2 + $0x69] sm:$0xff] %vm387_vm1, %v440_v56  ;;  %v615_v59 = vld [vmem:[#allocation2 + $0x109] sm:$0xff]  ;;  %v445_v44 = vld [vmem:[%s6700_s26 + $0x60] sm:$0xff] }
  0x51   : > { %v6770_v54 = vpack.c.bf16 %v549_v50, %v548_v49  ;;  %490 = vst.msk [vmem:[#allocation2 + $0x139] sm:$0xff] %vm387_vm1, %v457_v57  ;;  %v616_v60 = vld [vmem:[#allocation2 + $0x111] sm:$0xff]  ;;  %v566_v61 = vld [vmem:[#allocation2 + $0x108] sm:$0xff] }
  0x52   : > { %491 = vst.msk [vmem:[#allocation2 + $0x141] sm:$0xff] %vm387_vm1, %v458_v58  ;;  %v567_v62 = vld [vmem:[#allocation2 + $0x110] sm:$0xff]  ;;  %v550_v1 = vld [vmem:[#allocation2 + $0x48] sm:$0xff]  ;;  %v6788_v3 = vpack.c.bf16 %v616_v60, %v615_v59  ;;  %v444_v25 = vld [vmem:[%s6700_s26 + $0x58] sm:$0xff] }
  0x53   : > { %v599_v63 = vld [vmem:[#allocation2 + $0x49] sm:$0xff]  ;;  %v600_v0 = vld [vmem:[#allocation2 + $0x51] sm:$0xff]  ;;  %v6790_v5 = vpack.c.bf16 %v567_v62, %v566_v61  ;;  %474 = vst.msk [vmem:[#allocation2 + $0x79] sm:$0xff] %vm387_vm1, %v441_v8 }
  0x54   : > { %v551_v2 = vld [vmem:[#allocation2 + $0x50] sm:$0xff]  ;;  %v6792_v6 = vpack.c.bf16 %v600_v0, %v599_v63  ;;  %475 = vst.msk [vmem:[#allocation2 + $0x81] sm:$0xff] %vm387_vm1, %v442_v9  ;;  %v617_v12 = vld [vmem:[#allocation2 + $0x121] sm:$0xff]  ;;  %v448_v63 = vld [vmem:[%s6700_s26 + $0x78] sm:$0xff] }
  0x55   : > { %v6794_v7 = vpack.c.bf16 %v551_v2, %v550_v1  ;;  %492 = vst.msk [vmem:[#allocation2 + $0x151] sm:$0xff] %vm387_vm1, %v459_v10  ;;  %v618_v13 = vld [vmem:[#allocation2 + $0x129] sm:$0xff]  ;;  %v568_v14 = vld [vmem:[#allocation2 + $0x120] sm:$0xff] }
  0x56   : > { %493 = vst.msk [vmem:[#allocation2 + $0x159] sm:$0xff] %vm387_vm1, %v460_v11  ;;  %v569_v15 = vld [vmem:[#allocation2 + $0x128] sm:$0xff]  ;;  %v552_v18 = vld [vmem:[#allocation2 + $0x60] sm:$0xff]  ;;  %v6812_v20 = vpack.c.bf16 %v618_v13, %v617_v12  ;;  %v447_v62 = vld [vmem:[%s6700_s26 + $0x70] sm:$0xff] }
  0x57   : > { %v601_v16 = vld [vmem:[#allocation2 + $0x61] sm:$0xff]  ;;  %v602_v17 = vld [vmem:[#allocation2 + $0x69] sm:$0xff]  ;;  %v6814_v21 = vpack.c.bf16 %v569_v15, %v568_v14  ;;  %476 = vst.msk [vmem:[#allocation2 + $0x91] sm:$0xff] %vm387_vm1, %v443_v24 }
  0x58   : > { %v553_v19 = vld [vmem:[#allocation2 + $0x68] sm:$0xff]  ;;  %v6816_v22 = vpack.c.bf16 %v602_v17, %v601_v16  ;;  %477 = vst.msk [vmem:[#allocation2 + $0x99] sm:$0xff] %vm387_vm1, %v444_v25  ;;  %v619_v28 = vld [vmem:[#allocation2 + $0x139] sm:$0xff] }
  0x59   : > { %v6818_v23 = vpack.c.bf16 %v553_v19, %v552_v18  ;;  %494 = vst.msk [vmem:[#allocation2 + $0x169] sm:$0xff] %vm387_vm1, %v461_v26  ;;  %v620_v29 = vld [vmem:[#allocation2 + $0x141] sm:$0xff]  ;;  %v570_v30 = vld [vmem:[#allocation2 + $0x138] sm:$0xff]  ;;  %v5875_v24 = vld [vmem:[%s9679_s1 + $0xa] sm:$0x3] }
  0x5a   : > { %495 = vst.msk [vmem:[#allocation2 + $0x171] sm:$0xff] %vm387_vm1, %v462_v27  ;;  %v571_v33 = vld [vmem:[#allocation2 + $0x140] sm:$0xff]  ;;  %v554_v36 = vld [vmem:[#allocation2 + $0x78] sm:$0xff]  ;;  %v6836_v40 = vpack.c.bf16 %v620_v29, %v619_v28  ;;  %v5892_v25 = vld [vmem:[%s9679_s1 + $0xc] sm:$0x3]  ;;  %v1689_v27 = vsel %vm691_vm0, %v5875_v24, 0 }
  0x5b   : > { %v603_v34 = vld [vmem:[#allocation2 + $0x79] sm:$0xff]  ;;  %v604_v35 = vld [vmem:[#allocation2 + $0x81] sm:$0xff]  ;;  %v6838_v41 = vpack.c.bf16 %v571_v33, %v570_v30  ;;  %478 = vst.msk [vmem:[#allocation2 + $0xa9] sm:$0xff] %vm387_vm1, %v445_v44  ;;  %v5909_v26 = vld [vmem:[%s9679_s1 + $0xe] sm:$0x3]  ;;  %v1912_v28 = vsel %vm691_vm0, %v5892_v25, 0  ;;  %1698 = vmatpush.bf16.msrb.mxu1 %v1689_v27 }
  0x5c   : > { %5802 = vmatmul.msk.bf16.gmra.mxu2 %vm387_vm1, %v6764_v51  ;;  %v555_v37 = vld [vmem:[#allocation2 + $0x80] sm:$0xff]  ;;  %v6840_v42 = vpack.c.bf16 %v604_v35, %v603_v34  ;;  %479 = vst.msk [vmem:[#allocation2 + $0xb1] sm:$0xff] %vm387_vm1, %v446_v45  ;;  %v621_v46 = vld [vmem:[#allocation2 + $0x151] sm:$0xff]  ;;  %v2134_v29 = vsel %vm691_vm0, %v5909_v26, 0 }
  0x5d   : > { %5818 = vmatmul.msk.bf16.gmra.mxu3 %vm387_vm1, %v6766_v52  ;;  %v6842_v43 = vpack.c.bf16 %v555_v37, %v554_v36  ;;  %v622_v47 = vld [vmem:[#allocation2 + $0x159] sm:$0xff]  ;;  %v572_v48 = vld [vmem:[#allocation2 + $0x150] sm:$0xff]  ;;  %480 = vst.msk [vmem:[#allocation2 + $0xc1] sm:$0xff] %vm387_vm1, %v447_v62  ;;  %1921 = vmatpush.bf16.msra.mxu2 %v1912_v28  ;;  %v924_v34 = vld [vmem:[#allocation2 + $0x2] sm:$0xff] }
  0x5e   : > { %5794 = vmatmul.msk.bf16.gmra.mxu0 %vm387_vm1, %v6768_v53  ;;  %v573_v49 = vld [vmem:[#allocation2 + $0x158] sm:$0xff]  ;;  %v556_v56 = vld [vmem:[#allocation2 + $0x90] sm:$0xff]  ;;  %v6856_v58 = vpack.c.bf16 %v622_v47, %v621_v46  ;;  %481 = vst.msk [vmem:[#allocation2 + $0xc9] sm:$0xff] %vm387_vm1, %v448_v63  ;;  %2143 = vmatpush.bf16.msra.mxu3 %v2134_v29 }
  0x5f   : > { %5810 = vmatmul.msk.bf16.gmra.mxu1 %vm387_vm1, %v6770_v54  ;;  %v605_v50 = vld [vmem:[#allocation2 + $0x91] sm:$0xff]  ;;  %v606_v55 = vld [vmem:[#allocation2 + $0x99] sm:$0xff]  ;;  %v6858_v59 = vpack.c.bf16 %v573_v49, %v572_v48 }
  0x60   : > { %v557_v57 = vld [vmem:[#allocation2 + $0x98] sm:$0xff]  ;;  %v6860_v60 = vpack.c.bf16 %v606_v55, %v605_v50  ;;  %v623_v1 = vld [vmem:[#allocation2 + $0x169] sm:$0xff] }
  0x61   : > { %v6862_v61 = vpack.c.bf16 %v557_v57, %v556_v56  ;;  %v624_v2 = vld [vmem:[#allocation2 + $0x171] sm:$0xff]  ;;  %v574_v8 = vld [vmem:[#allocation2 + $0x168] sm:$0xff]  ;;  %v926_v55 = vld [vmem:[#allocation2 + $0x1a] sm:$0xff] }
  0x62   : > { %v575_v9 = vld [vmem:[#allocation2 + $0x170] sm:$0xff]  ;;  %v558_v14 = vld [vmem:[#allocation2 + $0xa8] sm:$0xff]  ;;  %v6878_v16 = vpack.c.bf16 %v624_v2, %v623_v1 }
  0x63   : > { %v607_v11 = vld [vmem:[#allocation2 + $0xa9] sm:$0xff]  ;;  %v608_v13 = vld [vmem:[#allocation2 + $0xb1] sm:$0xff]  ;;  %v6880_v17 = vpack.c.bf16 %v575_v9, %v574_v8 }
  0x64   : > { %v559_v15 = vld [vmem:[#allocation2 + $0xb0] sm:$0xff]  ;;  %v6882_v18 = vpack.c.bf16 %v608_v13, %v607_v11  ;;  %v609_v36 = vld [vmem:[#allocation2 + $0xc1] sm:$0xff] }
  0x65   : > { %v6884_v19 = vpack.c.bf16 %v559_v15, %v558_v14  ;;  %v5926_v30 = vld [vmem:[%s9679_s1 + $0x10] sm:$0x3]  ;;  %v560_v44 = vld [vmem:[#allocation2 + $0xc0] sm:$0xff]  ;;  %v561_v45 = vld [vmem:[#allocation2 + $0xc8] sm:$0xff] }
  0x66   : > { %v2356_v33 = vsel %vm691_vm0, %v5926_v30, 0  ;;  %v925_v35 = vld [vmem:[#allocation2 + $0xa] sm:$0xff]  ;;  %v6912_v48 = vpack.c.bf16 %v561_v45, %v560_v44  ;;  %v927_v56 = vld [vmem:[#allocation2 + $0x22] sm:$0xff]  ;;  %v928_v11 = vld [vmem:[#allocation2 + $0x32] sm:$0xff] }
  0x67   : > { %2365 = vmatpush.bf16.msra.mxu0 %v2356_v33  ;;  %v610_v37 = vld [vmem:[#allocation2 + $0xc9] sm:$0xff]  ;;  %v956_v46 = vpack.c.bf16 %v925_v35, %v924_v34  ;;  %v957_v57 = vpack.c.bf16 %v927_v56, %v926_v55  ;;  %v929_v13 = vld [vmem:[#allocation2 + $0x3a] sm:$0xff] }
  0x68   : > { %v6910_v47 = vpack.c.bf16 %v610_v37, %v609_v36  ;;  %v6939_v24 = vpack.c.bf16 %v929_v13, %v928_v11  ;;  %v930_v35 = vld [vmem:[#allocation2 + $0x4a] sm:$0xff]  ;;  %v931_v36 = vld [vmem:[#allocation2 + $0x52] sm:$0xff] }
  0x69   : > { %v6957_v45 = vpack.c.bf16 %v931_v36, %v930_v35  ;;  %v934_v36 = vld [vmem:[#allocation2 + $0x7a] sm:$0xff] }
  0x6c   : > { %5803 = vmatmul.msk.bf16.gmra.mxu2 %vm387_vm1, %v6788_v3 }
  0x6d   : > { %5819 = vmatmul.msk.bf16.gmra.mxu3 %vm387_vm1, %v6790_v5 }
  0x6e   : > { %5795 = vmatmul.msk.bf16.gmra.mxu0 %vm387_vm1, %v6792_v6 }
  0x6f   : > { %5811 = vmatmul.msk.bf16.gmra.mxu1 %vm387_vm1, %v6794_v7 }
  0x7c   : > { %5804 = vmatmul.msk.bf16.gmra.mxu2 %vm387_vm1, %v6812_v20 }
  0x7d   : > { %5820 = vmatmul.msk.bf16.gmra.mxu3 %vm387_vm1, %v6814_v21 }
  0x7e   : > { %5796 = vmatmul.msk.bf16.gmra.mxu0 %vm387_vm1, %v6816_v22 }
  0x7f   : > { %5812 = vmatmul.msk.bf16.gmra.mxu1 %vm387_vm1, %v6818_v23 }
  0x8c   : > { %5805 = vmatmul.msk.bf16.gmra.mxu2 %vm387_vm1, %v6836_v40 }
  0x8d   : > { %5821 = vmatmul.msk.bf16.gmra.mxu3 %vm387_vm1, %v6838_v41 }
  0x8e   : > { %5797 = vmatmul.msk.bf16.gmra.mxu0 %vm387_vm1, %v6840_v42 }
  0x8f   : > { %5813 = vmatmul.msk.bf16.gmra.mxu1 %vm387_vm1, %v6842_v43 }
  0x9c   : > { %5806 = vmatmul.msk.bf16.gmra.mxu2 %vm387_vm1, %v6856_v58 }
  0x9d   : > { %5822 = vmatmul.msk.bf16.gmra.mxu3 %vm387_vm1, %v6858_v59 }
  0x9e   : > { %5798 = vmatmul.msk.bf16.gmra.mxu0 %vm387_vm1, %v6860_v60 }
  0x9f   : > { %5814 = vmatmul.msk.bf16.gmra.mxu1 %vm387_vm1, %v6862_v61 }
  0xa0   : > { %v704_v0 = vpop.f32.mrf.mxu0 }
  0xa5   : > { %v844_v10 = vpop.f32.mrf.mxu1 }
  0xa6   : > { %v6876_v12 = vadd.f32 %v844_v10, %v704_v0 }
  0xa8   : > { %v6921_v49 = vpop.f32.mrf.mxu0 }
  0xac   : > { %5807 = vmatmul.msk.bf16.gmra.mxu2 %vm387_vm1, %v6878_v16 }
  0xad   : > { %5823 = vmatmul.msk.bf16.gmra.mxu3 %vm387_vm1, %v6880_v17  ;;  %v6923_v50 = vpop.f32.mrf.mxu1 }
  0xae   : > { %5799 = vmatmul.msk.bf16.gmra.mxu0 %vm387_vm1, %v6882_v18  ;;  %v847_v4 = vadd.f32 %v6923_v50, %v6921_v49 }
  0xaf   : > { %5815 = vmatmul.msk.bf16.gmra.mxu1 %vm387_vm1, %v6884_v19 }
  0xbc   : > { %5825 = vmatmul.msk.bf16.vlgmr.msrb.gmra.mxu2 %vm387_vm1, %v956_v46 }
  0xbd   : > { %5842 = vmatmul.msk.bf16.vlgmr.msrb.gmra.mxu3 %vm387_vm1, %v6751_v39 }
  0xbe   : > { %5800 = vmatmul.msk.bf16.gmra.mxu0 %vm387_vm1, %v6910_v47 }
  0xbf   : > { %5816 = vmatmul.msk.bf16.gmra.mxu1 %vm387_vm1, %v6912_v48 }
  0xcb   : > { %v709_v62 = vpop.f32.mrf.mxu0 }
  0xcc   : > { %v849_v63 = vpop.f32.mrf.mxu1  ;;  %5826 = vmatmul.msk.bf16.gmra.mxu2 %vm387_vm1, %v957_v57 }
  0xcd   : > { %5843 = vmatmul.msk.bf16.gmra.mxu3 %vm387_vm1, %v6770_v54  ;;  %v6928_v39 = vadd.f32 %v849_v63, %v709_v62 }
  0xce   : > { %5859 = vmatmul.msk.bf16.vlgmr.msrb.gmra.mxu0 %vm387_vm1, %v6749_v38 }
  0xcf   : > { %5876 = vmatmul.msk.bf16.vlgmr.msrb.gmra.mxu1 %vm387_vm1, %v957_v57  ;;  %v749_v0 = vpop.f32.mrf.mxu2 }
  0xd0   : > { %v889_v1 = vpop.f32.mrf.mxu3 }
  0xd1   : > { %v6933_v2 = vadd.f32 %v889_v1, %v749_v0 }
  0xd3   : > { %v711_v8 = vpop.f32.mrf.mxu0 }
  0xd4   : > { %v851_v9 = vpop.f32.mrf.mxu1 }
  0xd5   : > { %v6935_v10 = vadd.f32 %v851_v9, %v711_v8  ;;  %v932_v8 = vld [vmem:[#allocation2 + $0x62] sm:$0xff]  ;;  %v933_v9 = vld [vmem:[#allocation2 + $0x6a] sm:$0xff] }
  0xd7   : > { %v751_v14 = vpop.f32.mrf.mxu2 }
  0xd8   : > { %v891_v15 = vpop.f32.mrf.mxu3 }
  0xd9   : > { %v6937_v54 = vadd.f32 %v891_v15, %v751_v14  ;;  %v6975_v14 = vpack.c.bf16 %v933_v9, %v932_v8 }
  0xdb   : > { %v714_v25 = vpop.f32.mrf.mxu0 }
  0xdc   : > { %v854_v38 = vpop.f32.mrf.mxu1  ;;  %5827 = vmatmul.msk.bf16.gmra.mxu2 %vm387_vm1, %v6939_v24 }
  0xdd   : > { %5844 = vmatmul.msk.bf16.gmra.mxu3 %vm387_vm1, %v6794_v7  ;;  %v6945_v26 = vadd.f32 %v854_v38, %v714_v25 }
  0xde   : > { %5860 = vmatmul.msk.bf16.gmra.mxu0 %vm387_vm1, %v6768_v53 }
  0xdf   : > { %5877 = vmatmul.msk.bf16.gmra.mxu1 %vm387_vm1, %v6939_v24  ;;  %v754_v27 = vpop.f32.mrf.mxu2 }
  0xe0   : > { %v894_v28 = vpop.f32.mrf.mxu3 }
  0xe1   : > { %v6951_v29 = vadd.f32 %v894_v28, %v754_v27 }
  0xe3   : > { %v716_v30 = vpop.f32.mrf.mxu0 }
  0xe4   : > { %v856_v33 = vpop.f32.mrf.mxu1 }
  0xe5   : > { %v6953_v34 = vadd.f32 %v856_v33, %v716_v30 }
  0xe7   : > { %v756_v37 = vpop.f32.mrf.mxu2 }
  0xe8   : > { %v896_v7 = vpop.f32.mrf.mxu3 }
  0xe9   : > { %v6955_v44 = vadd.f32 %v896_v7, %v756_v37  ;;  %v935_v37 = vld [vmem:[#allocation2 + $0x82] sm:$0xff] }
  0xeb   : > { %v719_v53 = vpop.f32.mrf.mxu0 }
  0xec   : > { %v859_v46 = vpop.f32.mrf.mxu1  ;;  %5828 = vmatmul.msk.bf16.gmra.mxu2 %vm387_vm1, %v6957_v45 }
  0xed   : > { %5845 = vmatmul.msk.bf16.gmra.mxu3 %vm387_vm1, %v6818_v23  ;;  %v6963_v55 = vadd.f32 %v859_v46, %v719_v53  ;;  %v6993_v46 = vpack.c.bf16 %v935_v37, %v934_v36 }
  0xee   : > { %5861 = vmatmul.msk.bf16.gmra.mxu0 %vm387_vm1, %v6792_v6 }
  0xef   : > { %5878 = vmatmul.msk.bf16.gmra.mxu1 %vm387_vm1, %v6957_v45  ;;  %v759_v56 = vpop.f32.mrf.mxu2 }
  0xf0   : > { %v899_v57 = vpop.f32.mrf.mxu3 }
  0xf1   : > { %v6969_v62 = vadd.f32 %v899_v57, %v759_v56 }
  0xf3   : > { %v721_v63 = vpop.f32.mrf.mxu0 }
  0xf4   : > { %v861_v0 = vpop.f32.mrf.mxu1 }
  0xf5   : > { %v6971_v1 = vadd.f32 %v861_v0, %v721_v63 }
  0xf7   : > { %v761_v11 = vpop.f32.mrf.mxu2 }
  0xf8   : > { %v901_v23 = vpop.f32.mrf.mxu3 }
  0xf9   : > { %v6973_v13 = vadd.f32 %v901_v23, %v761_v11 }
  0xfb   : > { %v724_v6 = vpop.f32.mrf.mxu0 }
  0xfc   : > { %v864_v15 = vpop.f32.mrf.mxu1  ;;  %5829 = vmatmul.msk.bf16.gmra.mxu2 %vm387_vm1, %v6975_v14 }
  0xfd   : > { %5846 = vmatmul.msk.bf16.gmra.mxu3 %vm387_vm1, %v6842_v43  ;;  %v6981_v25 = vadd.f32 %v864_v15, %v724_v6  ;;  %v936_v6 = vld [vmem:[#allocation2 + $0x92] sm:$0xff]  ;;  %v937_v15 = vld [vmem:[#allocation2 + $0x9a] sm:$0xff] }
  0xfe   : > { %5862 = vmatmul.msk.bf16.gmra.mxu0 %vm387_vm1, %v6816_v22 }
  0xff   : > { %5879 = vmatmul.msk.bf16.gmra.mxu1 %vm387_vm1, %v6975_v14  ;;  %v764_v38 = vpop.f32.mrf.mxu2 }
 0x100   : > { %v904_v27 = vpop.f32.mrf.mxu3 }
 0x101   : > { %v6987_v28 = vadd.f32 %v904_v27, %v764_v38 }
 0x103   : > { %v726_v30 = vpop.f32.mrf.mxu0 }
 0x104   : > { %v866_v33 = vpop.f32.mrf.mxu1 }
 0x105   : > { %v6989_v35 = vadd.f32 %v866_v33, %v726_v30  ;;  %v7011_v30 = vpack.c.bf16 %v937_v15, %v936_v6 }
 0x107   : > { %v766_v7 = vpop.f32.mrf.mxu2 }
 0x108   : > { %v906_v43 = vpop.f32.mrf.mxu3 }
 0x109   : > { %v6991_v53 = vadd.f32 %v906_v43, %v766_v7 }
 0x10b   : > { %v729_v22 = vpop.f32.mrf.mxu0 }
 0x10c   : > { %v869_v56 = vpop.f32.mrf.mxu1  ;;  %5830 = vmatmul.msk.bf16.gmra.mxu2 %vm387_vm1, %v6993_v46 }
 0x10d   : > { %5847 = vmatmul.msk.bf16.gmra.mxu3 %vm387_vm1, %v6862_v61  ;;  %v6999_v57 = vadd.f32 %v869_v56, %v729_v22 }
 0x10e   : > { %5863 = vmatmul.msk.bf16.gmra.mxu0 %vm387_vm1, %v6840_v42 }
 0x10f   : > { %5880 = vmatmul.msk.bf16.gmra.mxu1 %vm387_vm1, %v6993_v46  ;;  %v769_v63 = vpop.f32.mrf.mxu2 }
 0x110   : > { %v909_v0 = vpop.f32.mrf.mxu3 }
 0x111   : > { %v7005_v8 = vadd.f32 %v909_v0, %v769_v63  ;;  %v938_v0 = vld [vmem:[#allocation2 + $0xaa] sm:$0xff] }
 0x113   : > { %v731_v9 = vpop.f32.mrf.mxu0 }
 0x114   : > { %v871_v11 = vpop.f32.mrf.mxu1 }
 0x115   : > { %v7007_v23 = vadd.f32 %v871_v11, %v731_v9  ;;  %v939_v9 = vld [vmem:[#allocation2 + $0xb2] sm:$0xff] }
 0x116   : > { %v7029_v15 = vpack.c.bf16 %v939_v9, %v938_v0  ;;  %v940_v0 = vld [vmem:[#allocation2 + $0xc2] sm:$0xff]  ;;  %v941_v9 = vld [vmem:[#allocation2 + $0xca] sm:$0xff] }
 0x117   : > { %v771_v38 = vpop.f32.mrf.mxu2 }
 0x118   : > { %v911_v61 = vpop.f32.mrf.mxu3 }
 0x119   : > { %v7009_v27 = vadd.f32 %v911_v61, %v771_v38 }
 0x11b   : > { %v734_v42 = vpop.f32.mrf.mxu0 }
 0x11c   : > { %v874_v33 = vpop.f32.mrf.mxu1  ;;  %5831 = vmatmul.msk.bf16.gmra.mxu2 %vm387_vm1, %v7011_v30 }
 0x11d   : > { %5848 = vmatmul.msk.bf16.gmra.mxu3 %vm387_vm1, %v6884_v19  ;;  %v7017_v36 = vadd.f32 %v874_v33, %v734_v42 }
 0x11e   : > { %5864 = vmatmul.msk.bf16.gmra.mxu0 %vm387_vm1, %v6860_v60 }
 0x11f   : > { %5881 = vmatmul.msk.bf16.gmra.mxu1 %vm387_vm1, %v7011_v30  ;;  %v774_v37 = vpop.f32.mrf.mxu2 }
 0x120   : > { %v914_v7 = vpop.f32.mrf.mxu3 }
 0x121   : > { %v7023_v43 = vadd.f32 %v914_v7, %v774_v37 }
 0x123   : > { %9748 = vst [vmem:[#allocation8_spill] sm:$0xff] %v7023_v43  ;;  %v736_v22 = vpop.f32.mrf.mxu0 }
 0x124   : > { %v876_v56 = vpop.f32.mrf.mxu1 }
 0x125   : > { %v7025_v63 = vadd.f32 %v876_v56, %v736_v22 }
 0x127   : > { %v776_v11 = vpop.f32.mrf.mxu2 }
 0x128   : > { %v916_v19 = vpop.f32.mrf.mxu3 }
 0x129   : > { %v7027_v6 = vadd.f32 %v916_v19, %v776_v11 }
 0x12b   : > { %9749 = vst [vmem:[#allocation9_spill] sm:$0xff] %v7027_v6  ;;  %v739_v60 = vpop.f32.mrf.mxu0 }
 0x12c   : > { %v879_v38 = vpop.f32.mrf.mxu1  ;;  %5832 = vmatmul.msk.bf16.gmra.mxu2 %vm387_vm1, %v7029_v15 }
 0x12d   : > { %5849 = vmatmul.msk.bf16.gmra.mxu3 %vm387_vm1, %v6912_v48  ;;  %v7035_v61 = vadd.f32 %v879_v38, %v739_v60  ;;  %v7047_v60 = vpack.c.bf16 %v941_v9, %v940_v0 }
 0x12e   : > { %5865 = vmatmul.msk.bf16.gmra.mxu0 %vm387_vm1, %v6882_v18 }
 0x12f   : > { %5882 = vmatmul.msk.bf16.gmra.mxu1 %vm387_vm1, %v7029_v15  ;;  %v779_v42 = vpop.f32.mrf.mxu2  ;;  %9752 = vst [vmem:[#allocation12_spill] sm:$0xff] %v7047_v60 }
 0x130   : > { %v919_v33 = vpop.f32.mrf.mxu3 }
 0x131   : > { %v7041_v37 = vadd.f32 %v919_v33, %v779_v42  ;;  %v6235_v33 = vld [vmem:[%s9681_s3 + $0x18] sm:$0xff] }
 0x132   : > { %2751 = vmatpush.bf16.msra.mxu1 %v6235_v33 }
 0x133   : > { %9750 = vst [vmem:[#allocation10_spill] sm:$0xff] %v7041_v37  ;;  %v741_v7 = vpop.f32.mrf.mxu0 }
 0x134   : > { %v881_v22 = vpop.f32.mrf.mxu1 }
 0x135   : > { %v7043_v56 = vadd.f32 %v881_v22, %v741_v7 }
 0x137   : > { %v781_v11 = vpop.f32.mrf.mxu2 }
 0x138   : > { %v921_v48 = vpop.f32.mrf.mxu3 }
 0x139   : > { %v7045_v19 = vadd.f32 %v921_v48, %v781_v11 }
 0x13b   : > { %9751 = vst [vmem:[#allocation11_spill] sm:$0xff] %v7045_v19  ;;  %v744_v18 = vpop.f32.mrf.mxu0 }
 0x13c   : > { %v884_v38 = vpop.f32.mrf.mxu1  ;;  %5833 = vmatmul.msk.bf16.gmra.mxu2 %vm387_vm1, %v7047_v60 }
 0x13d   : > { %5850 = vmatmul.msk.bf16.gmra.mxu3 %vm387_vm1, %v6741_v32  ;;  %v7053_v42 = vadd.f32 %v884_v38, %v744_v18  ;;  %v942_v18 = vld [vmem:[#allocation2 + $0xda] sm:$0xff]  ;;  %v943_v38 = vld [vmem:[#allocation2 + $0xe2] sm:$0xff] }
 0x13e   : > { %5866 = vmatmul.msk.bf16.gmra.mxu0 %vm387_vm1, %v6910_v47  ;;  %v7067_v6 = vpack.c.bf16 %v943_v38, %v942_v18 }
 0x13f   : > { %5883 = vmatmul.msk.bf16.gmra.mxu1 %vm387_vm1, %v7047_v60  ;;  %v1034_v7 = vpop.f32.mrf.mxu2 }
 0x140   : > { %v1256_v22 = vpop.f32.mrf.mxu3  ;;  %v1114_v0 = vadd.f32 %v1034_v7, %v6876_v12 }
 0x142   : > { %v1336_v9 = vadd.f32 %v1256_v22, %v1114_v0 }
 0x143   : > { %v746_v11 = vpop.f32.mrf.mxu0 }
 0x144   : > { %v886_v32 = vpop.f32.mrf.mxu1 }
 0x145   : > { %v7063_v48 = vadd.f32 %v886_v32, %v746_v11  ;;  %v944_v11 = vld [vmem:[#allocation2 + $0xf2] sm:$0xff]  ;;  %v945_v32 = vld [vmem:[#allocation2 + $0xfa] sm:$0xff] }
 0x147   : > { %v1036_v19 = vpop.f32.mrf.mxu2 }
 0x148   : > { %v1258_v47 = vpop.f32.mrf.mxu3  ;;  %v1115_v37 = vadd.f32 %v1036_v19, %v847_v4 }
 0x14a   : > { %v1337_v60 = vadd.f32 %v1258_v47, %v1115_v37 }
 0x14b   : > { %v1478_v43 = vpop.f32.mrf.mxu0 }
 0x14c   : > { %v1700_v33 = vpop.f32.mrf.mxu1  ;;  %5834 = vmatmul.msk.bf16.gmra.mxu2 %vm387_vm1, %v7067_v6  ;;  %v1558_v12 = vadd.f32 %v1478_v43, %v1336_v9 }
 0x14d   : > { %5851 = vmatmul.msk.bf16.gmra.mxu3 %vm387_vm1, %v6766_v52 }
 0x14e   : > { %v7073_v7 = vadd.f32 %v1700_v33, %v1558_v12  ;;  %5867 = vmatmul.msk.bf16.gmra.mxu0 %vm387_vm1, %v6739_v31  ;;  %v7083_v31 = vpack.c.bf16 %v945_v32, %v944_v11  ;;  %v947_v11 = vld [vmem:[#allocation2 + $0x112] sm:$0xff] }
 0x14f   : > { %5884 = vmatmul.msk.bf16.gmra.mxu1 %vm387_vm1, %v7067_v6  ;;  %v1039_v4 = vpop.f32.mrf.mxu2 }
 0x150   : > { %v1261_v49 = vpop.f32.mrf.mxu3  ;;  %v1116_v50 = vadd.f32 %v1039_v4, %v6928_v39 }
 0x152   : > { %v1338_v37 = vadd.f32 %v1261_v49, %v1116_v50 }
 0x153   : > { %v1480_v19 = vpop.f32.mrf.mxu0 }
 0x154   : > { %v1702_v22 = vpop.f32.mrf.mxu1  ;;  %v1559_v0 = vadd.f32 %v1480_v19, %v1337_v60 }
 0x156   : > { %v7080_v52 = vadd.f32 %v1702_v22, %v1559_v0  ;;  %v946_v0 = vld [vmem:[#allocation2 + $0x10a] sm:$0xff] }
 0x157   : > { %v1041_v43 = vpop.f32.mrf.mxu2 }
 0x158   : > { %v1263_v9 = vpop.f32.mrf.mxu3  ;;  %v1117_v18 = vadd.f32 %v1041_v43, %v6935_v10 }
 0x15a   : > { %v1339_v38 = vadd.f32 %v1263_v9, %v1117_v18 }
 0x15b   : > { %v1483_v47 = vpop.f32.mrf.mxu0 }
 0x15c   : > { %v1705_v33 = vpop.f32.mrf.mxu1  ;;  %5835 = vmatmul.msk.bf16.gmra.mxu2 %vm387_vm1, %v7083_v31  ;;  %v1560_v39 = vadd.f32 %v1483_v47, %v1338_v37 }
 0x15d   : > { %5852 = vmatmul.msk.bf16.gmra.mxu3 %vm387_vm1, %v6790_v5 }
 0x15e   : > { %v7089_v60 = vadd.f32 %v1705_v33, %v1560_v39  ;;  %5868 = vmatmul.msk.bf16.gmra.mxu0 %vm387_vm1, %v6764_v51  ;;  %v7099_v51 = vpack.c.bf16 %v947_v11, %v946_v0 }
 0x15f   : > { %5885 = vmatmul.msk.bf16.gmra.mxu1 %vm387_vm1, %v7083_v31  ;;  %v1044_v10 = vpop.f32.mrf.mxu2 }
 0x160   : > { %v1266_v12 = vpop.f32.mrf.mxu3  ;;  %v1118_v4 = vadd.f32 %v1044_v10, %v6945_v26 }
 0x162   : > { %v1340_v49 = vadd.f32 %v1266_v12, %v1118_v4 }
 0x163   : > { %v1485_v50 = vpop.f32.mrf.mxu0 }
 0x164   : > { %v1707_v19 = vpop.f32.mrf.mxu1  ;;  %v1561_v22 = vadd.f32 %v1485_v50, %v1339_v38 }
 0x166   : > { %v7096_v5 = vadd.f32 %v1707_v19, %v1561_v22  ;;  %v948_v19 = vld [vmem:[#allocation2 + $0x122] sm:$0xff]  ;;  %v949_v22 = vld [vmem:[#allocation2 + $0x12a] sm:$0xff] }
 0x167   : > { %v1046_v37 = vpop.f32.mrf.mxu2  ;;  %v7115_v11 = vpack.c.bf16 %v949_v22, %v948_v19 }
 0x168   : > { %v1268_v32 = vpop.f32.mrf.mxu3  ;;  %v1119_v43 = vadd.f32 %v1046_v37, %v6953_v34 }
 0x16a   : > { %v1341_v9 = vadd.f32 %v1268_v32, %v1119_v43 }
 0x16b   : > { %v1488_v18 = vpop.f32.mrf.mxu0 }
 0x16c   : > { %v1710_v47 = vpop.f32.mrf.mxu1  ;;  %5836 = vmatmul.msk.bf16.gmra.mxu2 %vm387_vm1, %v7099_v51  ;;  %v1562_v26 = vadd.f32 %v1488_v18, %v1340_v49 }
 0x16d   : > { %5853 = vmatmul.msk.bf16.gmra.mxu3 %vm387_vm1, %v6814_v21 }
 0x16e   : > { %v7105_v38 = vadd.f32 %v1710_v47, %v1562_v26  ;;  %5869 = vmatmul.msk.bf16.gmra.mxu0 %vm387_vm1, %v6788_v3  ;;  %v463_v26 = vld [vmem:[%s6700_s26 + $0xf0] sm:$0xff] }
 0x16f   : > { %5886 = vmatmul.msk.bf16.gmra.mxu1 %vm387_vm1, %v7099_v51  ;;  %v1049_v34 = vpop.f32.mrf.mxu2  ;;  %496 = vst.msk [vmem:[#allocation2 + $0x181] sm:$0xff] %vm387_vm1, %v463_v26 }
 0x170   : > { %v1271_v33 = vpop.f32.mrf.mxu3  ;;  %v1120_v39 = vadd.f32 %v1049_v34, %v6963_v55  ;;  %v464_v34 = vld [vmem:[%s6700_s26 + $0xf8] sm:$0xff]  ;;  %s4822_s26 = sld [smem:[#allocation4]] }
 0x171   : > { %497 = vst.msk [vmem:[#allocation2 + $0x189] sm:$0xff] %vm387_vm1, %v464_v34  ;;  %v953_v34 = vld [vmem:[#allocation2 + $0x15a] sm:$0xff] }
 0x172   : > { %v1342_v10 = vadd.f32 %v1271_v33, %v1120_v39 }
 0x173   : > { %v1490_v12 = vpop.f32.mrf.mxu0 }
 0x174   : > { %v1712_v4 = vpop.f32.mrf.mxu1  ;;  %v1563_v50 = vadd.f32 %v1490_v12, %v1341_v9  ;;  %v950_v12 = vld [vmem:[#allocation2 + $0x13a] sm:$0xff] }
 0x176   : > { %v7112_v21 = vadd.f32 %v1712_v4, %v1563_v50  ;;  %v951_v4 = vld [vmem:[#allocation2 + $0x142] sm:$0xff] }
 0x177   : > { %v1051_v49 = vpop.f32.mrf.mxu2 }
 0x178   : > { %v1273_v0 = vpop.f32.mrf.mxu3  ;;  %v1121_v3 = vadd.f32 %v1051_v49, %v6971_v1  ;;  %v7135_v49 = vpack.c.bf16 %v951_v4, %v950_v12 }
 0x17a   : > { %v1343_v37 = vadd.f32 %v1273_v0, %v1121_v3 }
 0x17b   : > { %v1493_v32 = vpop.f32.mrf.mxu0 }
 0x17c   : > { %v1715_v43 = vpop.f32.mrf.mxu1  ;;  %5837 = vmatmul.msk.bf16.gmra.mxu2 %vm387_vm1, %v7115_v11  ;;  %v1564_v55 = vadd.f32 %v1493_v32, %v1342_v10 }
 0x17d   : > { %5854 = vmatmul.msk.bf16.gmra.mxu3 %vm387_vm1, %v6838_v41 }
 0x17e   : > { %v7121_v9 = vadd.f32 %v1715_v43, %v1564_v55  ;;  %5870 = vmatmul.msk.bf16.gmra.mxu0 %vm387_vm1, %v6812_v20 }
 0x17f   : > { %5887 = vmatmul.msk.bf16.gmra.mxu1 %vm387_vm1, %v7115_v11  ;;  %v1054_v1 = vpop.f32.mrf.mxu2 }
 0x180   : > { %v1276_v18 = vpop.f32.mrf.mxu3  ;;  %v1122_v47 = vadd.f32 %v1054_v1, %v6981_v25 }
 0x182   : > { %v1344_v33 = vadd.f32 %v1276_v18, %v1122_v47 }
 0x183   : > { %v1495_v39 = vpop.f32.mrf.mxu0 }
 0x184   : > { %v1717_v41 = vpop.f32.mrf.mxu1  ;;  %v1565_v10 = vadd.f32 %v1495_v39, %v1343_v37 }
 0x186   : > { %v7132_v20 = vadd.f32 %v1717_v41, %v1565_v10 }
 0x187   : > { %v1056_v50 = vpop.f32.mrf.mxu2 }
 0x188   : > { %v1278_v19 = vpop.f32.mrf.mxu3  ;;  %v1123_v22 = vadd.f32 %v1056_v50, %v6989_v35 }
 0x18a   : > { %v1345_v25 = vadd.f32 %v1278_v19, %v1123_v22 }
 0x18b   : > { %v1498_v0 = vpop.f32.mrf.mxu0 }
 0x18c   : > { %v1720_v3 = vpop.f32.mrf.mxu1  ;;  %5838 = vmatmul.msk.bf16.gmra.mxu2 %vm387_vm1, %v7135_v49  ;;  %v1566_v37 = vadd.f32 %v1498_v0, %v1344_v33 }
 0x18d   : > { %5855 = vmatmul.msk.bf16.gmra.mxu3 %vm387_vm1, %v6858_v59  ;;  %v952_v59 = vld [vmem:[#allocation2 + $0x152] sm:$0xff] }
 0x18e   : > { %v7141_v32 = vadd.f32 %v1720_v3, %v1566_v37  ;;  %5871 = vmatmul.msk.bf16.gmra.mxu0 %vm387_vm1, %v6836_v40  ;;  %v7153_v40 = vpack.c.bf16 %v953_v34, %v952_v59 }
 0x18f   : > { %5888 = vmatmul.msk.bf16.gmra.mxu1 %vm387_vm1, %v7135_v49  ;;  %v1059_v35 = vpop.f32.mrf.mxu2 }
 0x190   : > { %v1281_v43 = vpop.f32.mrf.mxu3  ;;  %v1124_v55 = vadd.f32 %v1059_v35, %v6999_v57  ;;  %v955_v35 = vld [vmem:[#allocation2 + $0x172] sm:$0xff] }
 0x192   : > { %v1346_v1 = vadd.f32 %v1281_v43, %v1124_v55  ;;  %v1176_v43 = vld [vmem:[#allocation2 + $0x180] sm:$0xff]  ;;  %v1177_v55 = vld [vmem:[#allocation2 + $0x188] sm:$0xff] }
 0x193   : > { %v1500_v18 = vpop.f32.mrf.mxu0  ;;  %v7173_v34 = vpack.c.bf16 %v1177_v55, %v1176_v43  ;;  %v1398_v43 = vld [vmem:[#allocation2 + $0x181] sm:$0xff] }
 0x194   : > { %v7148_v47 = vpop.f32.mrf.mxu1  ;;  %v7150_v26 = vadd.f32 %v1500_v18, %v1345_v25 }
 0x197   : > { %v1061_v33 = vpop.f32.mrf.mxu2 }
 0x198   : > { %v1283_v39 = vpop.f32.mrf.mxu3  ;;  %v1125_v41 = vadd.f32 %v1061_v33, %v7007_v23 }
 0x19a   : > { %v1347_v10 = vadd.f32 %v1283_v39, %v1125_v41 }
 0x19b   : > { %v1503_v12 = vpop.f32.mrf.mxu0 }
 0x19c   : > { %v1725_v4 = vpop.f32.mrf.mxu1  ;;  %5839 = vmatmul.msk.bf16.gmra.mxu2 %vm387_vm1, %v7153_v40  ;;  %v1568_v57 = vadd.f32 %v1503_v12, %v1346_v1 }
 0x19d   : > { %5856 = vmatmul.msk.bf16.gmra.mxu3 %vm387_vm1, %v6880_v17  ;;  %v954_v17 = vld [vmem:[#allocation2 + $0x16a] sm:$0xff] }
 0x19e   : > { %v7159_v50 = vadd.f32 %v1725_v4, %v1568_v57  ;;  %5872 = vmatmul.msk.bf16.gmra.mxu0 %vm387_vm1, %v6856_v58  ;;  %v7171_v59 = vpack.c.bf16 %v955_v35, %v954_v17  ;;  %v2035_v17 = vld [vmem:[#allocation2 + $0x31] sm:$0xff]  ;;  %v2036_v35 = vld [vmem:[#allocation2 + $0x39] sm:$0xff] }
 0x19f   : > { %5889 = vmatmul.msk.bf16.gmra.mxu1 %vm387_vm1, %v7153_v40  ;;  %v1064_v23 = vpop.f32.mrf.mxu2 }
 0x1a0   : > { %v1286_v19 = vpop.f32.mrf.mxu3  ;;  %v1126_v22 = vadd.f32 %v1064_v23, %v7017_v36 }
 0x1a2   : > { %v1348_v25 = vadd.f32 %v1286_v19, %v1126_v22 }
 0x1a3   : > { %v1505_v0 = vpop.f32.mrf.mxu0 }
 0x1a4   : > { %v7166_v3 = vpop.f32.mrf.mxu1  ;;  %v7168_v37 = vadd.f32 %v1505_v0, %v1347_v10  ;;  %v1813_v0 = vld [vmem:[#allocation2 + $0x30] sm:$0xff] }
 0x1a7   : > { %v1066_v1 = vpop.f32.mrf.mxu2 }
 0x1a8   : > { %v1288_v18 = vpop.f32.mrf.mxu3  ;;  %v1127_v58 = vadd.f32 %v1066_v1, %v7025_v63  ;;  %v1399_v1 = vld [vmem:[#allocation2 + $0x189] sm:$0xff] }
 0x1aa   : > { %v1349_v33 = vadd.f32 %v1288_v18, %v1127_v58  ;;  %v1620_v18 = vld [vmem:[#allocation2 + $0x182] sm:$0xff]  ;;  %v1621_v58 = vld [vmem:[#allocation2 + $0x18a] sm:$0xff] }
 0x1ab   : > { %v1508_v36 = vpop.f32.mrf.mxu0 }
 0x1ac   : > { %v1730_v39 = vpop.f32.mrf.mxu1  ;;  %5840 = vmatmul.msk.bf16.gmra.mxu2 %vm387_vm1, %v7171_v59  ;;  %v1570_v41 = vadd.f32 %v1508_v36, %v1348_v25  ;;  %v1814_v25 = vld [vmem:[#allocation2 + $0x38] sm:$0xff] }
 0x1ad   : > { %5857 = vmatmul.msk.bf16.gmra.mxu3 %vm387_vm1, %v7173_v34 }
 0x1ae   : > { %v7179_v10 = vadd.f32 %v1730_v39, %v1570_v41  ;;  %5873 = vmatmul.msk.bf16.gmra.mxu0 %vm387_vm1, %v6878_v16  ;;  %v1845_v39 = vpack.c.bf16 %v1814_v25, %v1813_v0 }
 0x1af   : > { %5890 = vmatmul.msk.bf16.gmra.mxu1 %vm387_vm1, %v7171_v59  ;;  %v1069_v63 = vpop.f32.mrf.mxu2 }
 0x1b0   : > { %v1291_v12 = vpop.f32.mrf.mxu3  ;;  %v1128_v4 = vadd.f32 %v1069_v63, %v7035_v61  ;;  %v2067_v61 = vpack.c.bf16 %v2036_v35, %v2035_v17  ;;  %v7191_v63 = vpack.c.bf16 %v1399_v1, %v1398_v43  ;;  %v2037_v1 = vld [vmem:[#allocation2 + $0x49] sm:$0xff] }
 0x1b2   : > { %v1350_v57 = vadd.f32 %v1291_v12, %v1128_v4  ;;  %v7193_v12 = vpack.c.bf16 %v1621_v58, %v1620_v18  ;;  %v2038_v18 = vld [vmem:[#allocation2 + $0x51] sm:$0xff] }
 0x1b3   : > { %v1510_v23 = vpop.f32.mrf.mxu0 }
 0x1b4   : > { %v7186_v19 = vpop.f32.mrf.mxu1  ;;  %v7188_v22 = vadd.f32 %v1510_v23, %v1349_v33 }
 0x1b5   : > { %9753 = vst [vmem:[#allocation13_spill] sm:$0xff] %v7186_v19  ;;  %v6234_v19 = vld [vmem:[%s9681_s3 + $0x10] sm:$0xff] }
 0x1b6   : > { %9754 = vst [vmem:[#allocation14_spill] sm:$0xff] %v7188_v22  ;;  %2752 = vmatpush.bf16.msra.mxu1 %v6234_v19 }
 0x1b7   : > { %v1071_v55 = vpop.f32.mrf.mxu2 }
 0x1b8   : > { %v1293_v16 = vpop.f32.mrf.mxu3  ;;  %v1129_v36 = vadd.f32 %v1071_v55, %v7043_v56  ;;  %v1815_v55 = vld [vmem:[#allocation2 + $0x48] sm:$0xff] }
 0x1ba   : > { %v1351_v41 = vadd.f32 %v1293_v16, %v1129_v36  ;;  %v1816_v16 = vld [vmem:[#allocation2 + $0x50] sm:$0xff] }
 0x1bb   : > { %v1513_v33 = vpop.f32.mrf.mxu0 }
 0x1bc   : > { %v1735_v4 = vpop.f32.mrf.mxu1  ;;  %5893 = vmatmul.msk.bf16.vlgmr.msra.gmra.mxu2 %vm387_vm1, %v1845_v39  ;;  %v1572_v23 = vadd.f32 %v1513_v33, %v1350_v57  ;;  %v2068_v33 = vpack.c.bf16 %v2038_v18, %v2037_v1  ;;  %v1817_v1 = vld [vmem:[#allocation2 + $0x60] sm:$0xff]  ;;  %v1818_v18 = vld [vmem:[#allocation2 + $0x68] sm:$0xff] }
 0x1bd   : > { %5910 = vmatmul.msk.bf16.vlgmr.msra.gmra.mxu3 %vm387_vm1, %v2067_v61  ;;  %v1846_v61 = vpack.c.bf16 %v1816_v16, %v1815_v55 }
 0x1be   : > { %v7200_v22 = vadd.f32 %v1735_v4, %v1572_v23  ;;  %5874 = vmatmul.msk.bf16.gmra.mxu0 %vm387_vm1, %v7191_v63 }
 0x1bf   : > { %5891 = vmatmul.msk.bf16.gmra.mxu1 %vm387_vm1, %v7193_v12  ;;  %v1074_v56 = vpop.f32.mrf.mxu2 }
 0x1c0   : > { %v1296_v0 = vpop.f32.mrf.mxu3  ;;  %v1130_v25 = vadd.f32 %v1074_v56, %v7053_v42 }
 0x1c2   : > { %v1352_v17 = vadd.f32 %v1296_v0, %v1130_v25 }
 0x1c3   : > { %v1515_v35 = vpop.f32.mrf.mxu0 }
 0x1c4   : > { %v7207_v57 = vpop.f32.mrf.mxu1  ;;  %v7209_v43 = vadd.f32 %v1515_v35, %v1351_v41 }
 0x1c7   : > { %v1076_v58 = vpop.f32.mrf.mxu2 }
 0x1c8   : > { %v1298_v36 = vpop.f32.mrf.mxu3  ;;  %v1131_v39 = vadd.f32 %v1076_v58, %v7063_v48  ;;  %v2039_v58 = vld [vmem:[#allocation2 + $0x61] sm:$0xff] }
 0x1ca   : > { %v1353_v4 = vadd.f32 %v1298_v36, %v1131_v39  ;;  %v2040_v36 = vld [vmem:[#allocation2 + $0x69] sm:$0xff] }
 0x1cb   : > { %v1518_v19 = vpop.f32.mrf.mxu0 }
 0x1cc   : > { %v1740_v23 = vpop.f32.mrf.mxu1  ;;  %5894 = vmatmul.msk.bf16.gmra.mxu2 %vm387_vm1, %v1846_v61  ;;  %v1574_v42 = vadd.f32 %v1518_v19, %v1352_v17 }
 0x1cd   : > { %5911 = vmatmul.msk.bf16.gmra.mxu3 %vm387_vm1, %v2068_v33  ;;  %v1847_v33 = vpack.c.bf16 %v1818_v18, %v1817_v1 }
 0x1ce   : > { %v7214_v41 = vadd.f32 %v1740_v23, %v1574_v42  ;;  %5927 = vmatmul.msk.bf16.vlgmr.msra.gmra.mxu0 %vm387_vm1, %v6939_v24  ;;  %v2069_v24 = vpack.c.bf16 %v2040_v36, %v2039_v58  ;;  %v1819_v58 = vld [vmem:[#allocation2 + $0x78] sm:$0xff]  ;;  %v1820_v36 = vld [vmem:[#allocation2 + $0x80] sm:$0xff] }
 0x1cf   : > { %v1079_v56 = vpop.f32.mrf.mxu2 }
 0x1d0   : > { %v1301_v0 = vpop.f32.mrf.mxu3  ;;  %v1132_v25 = vadd.f32 %v1079_v56, %v6933_v2 }
 0x1d2   : > { %v1354_v48 = vadd.f32 %v1301_v0, %v1132_v25 }
 0x1d3   : > { %v1520_v35 = vpop.f32.mrf.mxu0 }
 0x1d4   : > { %v7219_v55 = vpop.f32.mrf.mxu1  ;;  %v7221_v16 = vadd.f32 %v1520_v35, %v1353_v4 }
 0x1d7   : > { %v1081_v17 = vpop.f32.mrf.mxu2 }
 0x1d8   : > { %v1303_v39 = vpop.f32.mrf.mxu3  ;;  %v1133_v61 = vadd.f32 %v1081_v17, %v6937_v54  ;;  %v2041_v17 = vld [vmem:[#allocation2 + $0x79] sm:$0xff] }
 0x1da   : > { %v1355_v19 = vadd.f32 %v1303_v39, %v1133_v61  ;;  %v2042_v39 = vld [vmem:[#allocation2 + $0x81] sm:$0xff] }
 0x1db   : > { %v1523_v23 = vpop.f32.mrf.mxu0 }
 0x1dc   : > { %v1745_v42 = vpop.f32.mrf.mxu1  ;;  %5895 = vmatmul.msk.bf16.gmra.mxu2 %vm387_vm1, %v1847_v33  ;;  %v1576_v2 = vadd.f32 %v1523_v23, %v1354_v48 }
 0x1dd   : > { %5912 = vmatmul.msk.bf16.gmra.mxu3 %vm387_vm1, %v2069_v24  ;;  %v1848_v24 = vpack.c.bf16 %v1820_v36, %v1819_v58 }
 0x1de   : > { %v7226_v4 = vadd.f32 %v1745_v42, %v1576_v2  ;;  %5928 = vmatmul.msk.bf16.gmra.mxu0 %vm387_vm1, %v6957_v45  ;;  %v2070_v45 = vpack.c.bf16 %v2042_v39, %v2041_v17  ;;  %v1821_v17 = vld [vmem:[#allocation2 + $0x90] sm:$0xff]  ;;  %v1822_v39 = vld [vmem:[#allocation2 + $0x98] sm:$0xff] }
 0x1df   : > { %v1084_v56 = vpop.f32.mrf.mxu2 }
 0x1e0   : > { %v1306_v0 = vpop.f32.mrf.mxu3  ;;  %v1134_v25 = vadd.f32 %v1084_v56, %v6951_v29 }
 0x1e2   : > { %v1356_v54 = vadd.f32 %v1306_v0, %v1134_v25 }
 0x1e3   : > { %v1525_v35 = vpop.f32.mrf.mxu0 }
 0x1e4   : > { %v7231_v1 = vpop.f32.mrf.mxu1  ;;  %v7233_v18 = vadd.f32 %v1525_v35, %v1355_v19 }
 0x1e7   : > { %v1086_v48 = vpop.f32.mrf.mxu2 }
 0x1e8   : > { %v1308_v61 = vpop.f32.mrf.mxu3  ;;  %v1135_v33 = vadd.f32 %v1086_v48, %v6955_v44  ;;  %v2043_v48 = vld [vmem:[#allocation2 + $0x91] sm:$0xff] }
 0x1ea   : > { %v1357_v23 = vadd.f32 %v1308_v61, %v1135_v33  ;;  %v2044_v61 = vld [vmem:[#allocation2 + $0x99] sm:$0xff] }
 0x1eb   : > { %v1528_v42 = vpop.f32.mrf.mxu0 }
 0x1ec   : > { %v1750_v2 = vpop.f32.mrf.mxu1  ;;  %5896 = vmatmul.msk.bf16.gmra.mxu2 %vm387_vm1, %v1848_v24  ;;  %v1578_v29 = vadd.f32 %v1528_v42, %v1356_v54 }
 0x1ed   : > { %5913 = vmatmul.msk.bf16.gmra.mxu3 %vm387_vm1, %v2070_v45  ;;  %v1849_v45 = vpack.c.bf16 %v1822_v39, %v1821_v17 }
 0x1ee   : > { %v7238_v19 = vadd.f32 %v1750_v2, %v1578_v29  ;;  %5929 = vmatmul.msk.bf16.gmra.mxu0 %vm387_vm1, %v6975_v14  ;;  %v2071_v14 = vpack.c.bf16 %v2044_v61, %v2043_v48  ;;  %v1823_v48 = vld [vmem:[#allocation2 + $0xa8] sm:$0xff]  ;;  %v1824_v61 = vld [vmem:[#allocation2 + $0xb0] sm:$0xff] }
 0x1ef   : > { %v1089_v56 = vpop.f32.mrf.mxu2 }
 0x1f0   : > { %v1311_v0 = vpop.f32.mrf.mxu3  ;;  %v1136_v25 = vadd.f32 %v1089_v56, %v6969_v62 }
 0x1f2   : > { %v1358_v44 = vadd.f32 %v1311_v0, %v1136_v25 }
 0x1f3   : > { %v1530_v35 = vpop.f32.mrf.mxu0 }
 0x1f4   : > { %v7243_v58 = vpop.f32.mrf.mxu1  ;;  %v7245_v36 = vadd.f32 %v1530_v35, %v1357_v23 }
 0x1f7   : > { %v1091_v54 = vpop.f32.mrf.mxu2 }
 0x1f8   : > { %v1313_v33 = vpop.f32.mrf.mxu3  ;;  %v1137_v24 = vadd.f32 %v1091_v54, %v6973_v13  ;;  %v2045_v54 = vld [vmem:[#allocation2 + $0xa9] sm:$0xff] }
 0x1fa   : > { %v1359_v42 = vadd.f32 %v1313_v33, %v1137_v24  ;;  %v2046_v33 = vld [vmem:[#allocation2 + $0xb1] sm:$0xff] }
 0x1fb   : > { %v1533_v2 = vpop.f32.mrf.mxu0 }
 0x1fc   : > { %v1755_v29 = vpop.f32.mrf.mxu1  ;;  %5897 = vmatmul.msk.bf16.gmra.mxu2 %vm387_vm1, %v1849_v45  ;;  %v1580_v62 = vadd.f32 %v1533_v2, %v1358_v44 }
 0x1fd   : > { %5914 = vmatmul.msk.bf16.gmra.mxu3 %vm387_vm1, %v2071_v14  ;;  %v1850_v14 = vpack.c.bf16 %v1824_v61, %v1823_v48 }
 0x1fe   : > { %v7250_v23 = vadd.f32 %v1755_v29, %v1580_v62  ;;  %5930 = vmatmul.msk.bf16.gmra.mxu0 %vm387_vm1, %v6993_v46  ;;  %v2072_v46 = vpack.c.bf16 %v2046_v33, %v2045_v54  ;;  %v1825_v54 = vld [vmem:[#allocation2 + $0xc0] sm:$0xff]  ;;  %v1826_v33 = vld [vmem:[#allocation2 + $0xc8] sm:$0xff] }
 0x1ff   : > { %v1094_v56 = vpop.f32.mrf.mxu2 }
 0x200   : > { %v1316_v0 = vpop.f32.mrf.mxu3  ;;  %v1138_v25 = vadd.f32 %v1094_v56, %v6987_v28 }
 0x202   : > { %v1360_v13 = vadd.f32 %v1316_v0, %v1138_v25 }
 0x203   : > { %v1535_v35 = vpop.f32.mrf.mxu0 }
 0x204   : > { %v7255_v17 = vpop.f32.mrf.mxu1  ;;  %v7257_v39 = vadd.f32 %v1535_v35, %v1359_v42 }
 0x207   : > { %v1096_v44 = vpop.f32.mrf.mxu2 }
 0x208   : > { %v1318_v24 = vpop.f32.mrf.mxu3  ;;  %v1139_v45 = vadd.f32 %v1096_v44, %v6991_v53  ;;  %v2047_v44 = vld [vmem:[#allocation2 + $0xc1] sm:$0xff] }
 0x20a   : > { %v1361_v2 = vadd.f32 %v1318_v24, %v1139_v45  ;;  %v2048_v24 = vld [vmem:[#allocation2 + $0xc9] sm:$0xff] }
 0x20b   : > { %v1538_v29 = vpop.f32.mrf.mxu0 }
 0x20c   : > { %v1760_v62 = vpop.f32.mrf.mxu1  ;;  %5898 = vmatmul.msk.bf16.gmra.mxu2 %vm387_vm1, %v1850_v14  ;;  %v1582_v28 = vadd.f32 %v1538_v29, %v1360_v13 }
 0x20d   : > { %5915 = vmatmul.msk.bf16.gmra.mxu3 %vm387_vm1, %v2072_v46  ;;  %v1851_v46 = vpack.c.bf16 %v1826_v33, %v1825_v54 }
 0x20e   : > { %v7262_v42 = vadd.f32 %v1760_v62, %v1582_v28  ;;  %5931 = vmatmul.msk.bf16.gmra.mxu0 %vm387_vm1, %v7011_v30  ;;  %v2073_v30 = vpack.c.bf16 %v2048_v24, %v2047_v44  ;;  %v1827_v24 = vld [vmem:[#allocation2 + $0xd8] sm:$0xff] }
 0x20f   : > { %v1099_v56 = vpop.f32.mrf.mxu2 }
 0x210   : > { %v1321_v0 = vpop.f32.mrf.mxu3  ;;  %v1140_v25 = vadd.f32 %v1099_v56, %v7005_v8 }
 0x212   : > { %v1362_v53 = vadd.f32 %v1321_v0, %v1140_v25  ;;  %v9756_v25 = vld [vmem:[#allocation8_spill] sm:$0xff] }
 0x213   : > { %v1540_v35 = vpop.f32.mrf.mxu0 }
 0x214   : > { %v7267_v48 = vpop.f32.mrf.mxu1  ;;  %v7269_v61 = vadd.f32 %v1540_v35, %v1361_v2 }
 0x217   : > { %v1101_v13 = vpop.f32.mrf.mxu2 }
 0x218   : > { %v1323_v45 = vpop.f32.mrf.mxu3  ;;  %v1141_v14 = vadd.f32 %v1101_v13, %v7009_v27  ;;  %v1828_v13 = vld [vmem:[#allocation2 + $0xe0] sm:$0xff] }
 0x21a   : > { %v1363_v29 = vadd.f32 %v1323_v45, %v1141_v14  ;;  %v2049_v45 = vld [vmem:[#allocation2 + $0xd9] sm:$0xff]  ;;  %v2050_v14 = vld [vmem:[#allocation2 + $0xe1] sm:$0xff] }
 0x21b   : > { %v1543_v62 = vpop.f32.mrf.mxu0 }
 0x21c   : > { %v1765_v28 = vpop.f32.mrf.mxu1  ;;  %5899 = vmatmul.msk.bf16.gmra.mxu2 %vm387_vm1, %v1851_v46  ;;  %v1584_v8 = vadd.f32 %v1543_v62, %v1362_v53 }
 0x21d   : > { %5916 = vmatmul.msk.bf16.gmra.mxu3 %vm387_vm1, %v2073_v30  ;;  %v9759_v30 = vld [vmem:[#allocation9_spill] sm:$0xff] }
 0x21e   : > { %v7274_v2 = vadd.f32 %v1765_v28, %v1584_v8  ;;  %5932 = vmatmul.msk.bf16.gmra.mxu0 %vm387_vm1, %v7029_v15  ;;  %v1852_v28 = vpack.c.bf16 %v1828_v13, %v1827_v24  ;;  %v2074_v15 = vpack.c.bf16 %v2050_v14, %v2049_v45  ;;  %v9763_v13 = vld [vmem:[#allocation10_spill] sm:$0xff]  ;;  %v6233_v14 = vld [vmem:[%s9681_s3 + $0x8] sm:$0xff] }
 0x21f   : > { %v1104_v56 = vpop.f32.mrf.mxu2  ;;  %2900 = vmatpush.bf16.msrb.mxu2 %v6233_v14 }
 0x220   : > { %9755 = vst [vmem:[#allocation15_spill] sm:$0xff] %v7274_v2  ;;  %v1326_v0 = vpop.f32.mrf.mxu3  ;;  %v1142_v35 = vadd.f32 %v1104_v56, %v9756_v25  ;;  %v9760_v2 = vmov 0.0  }
 0x221   : > { %499 = vst.msk [vmem:[#allocation3] sm:$0xff] %vm498_vm4, %v9760_v2 }
 0x222   : > { %v1364_v27 = vadd.f32 %v1326_v0, %v1142_v35  ;;  %500 = vst.msk [vmem:[#allocation3 + $0x8] sm:$0xff] %vm498_vm4, %v9760_v2  ;;  %v9762_v35 = vld [vmem:[#allocation12_spill] sm:$0xff] }
 0x223   : > { %v1545_v54 = vpop.f32.mrf.mxu0  ;;  %504 = vst.msk [vmem:[#allocation3 + $0x198] sm:$0xff] %vm498_vm4, %v9760_v2 }
 0x224   : > { %v7279_v33 = vpop.f32.mrf.mxu1  ;;  %v7281_v44 = vadd.f32 %v1545_v54, %v1363_v29  ;;  %505 = vst.msk [vmem:[#allocation3 + $0x1a0] sm:$0xff] %vm498_vm4, %v9760_v2 }
 0x225   : > { %9757 = vst [vmem:[#allocation8_spill] sm:$0xff] %v7279_v33 }
 0x226   : > { %9758 = vst [vmem:[#allocation16_spill] sm:$0xff] %v7281_v44 }
 0x227   : > { %v1106_v53 = vpop.f32.mrf.mxu2  ;;  %502 = vst.msk [vmem:[#allocation3 + $0x10] sm:$0x3] %vm501_vm5, %v9760_v2 }
 0x228   : > { %v1328_v46 = vpop.f32.mrf.mxu3  ;;  %v1143_v62 = vadd.f32 %v1106_v53, %v9759_v30  ;;  %506 = vst.msk [vmem:[#allocation3 + $0x1a8] sm:$0x3] %vm501_vm5, %v9760_v2  ;;  %v6237_v53 = vld [vmem:[%s9681_s3 + $0x28] sm:$0xff] }
 0x229   : > { %3102 = vmatpush.bf16.msrb.mxu3 %v6237_v53  ;;  %508 = vst.msk [vmem:[#allocation3] sm:$0x1] %vm507_vm6, %v9760_v2 }
 0x22a   : > { %v1365_v8 = vadd.f32 %v1328_v46, %v1143_v62  ;;  %v2632_v62 = vld [vmem:[#allocation3 + $0x1] sm:$0xff]  ;;  %509 = vst.msk [vmem:[#allocation3 + $0x18] sm:$0x1] %vm507_vm6, %v9760_v2 }
 0x22b   : > { %v1548_v56 = vpop.f32.mrf.mxu0  ;;  %510 = vst.msk [vmem:[#allocation3 + $0x30] sm:$0x1] %vm507_vm6, %v9760_v2 }
 0x22c   : > { %v1770_v0 = vpop.f32.mrf.mxu1  ;;  %5900 = vmatmul.msk.bf16.gmra.mxu2 %vm387_vm1, %v1852_v28  ;;  %v1586_v29 = vadd.f32 %v1548_v56, %v1364_v27  ;;  %v1830_v56 = vld [vmem:[#allocation2 + $0xf8] sm:$0xff]  ;;  %511 = vst.msk [vmem:[#allocation3 + $0x48] sm:$0x1] %vm507_vm6, %v9760_v2 }
 0x22d   : > { %5917 = vmatmul.msk.bf16.gmra.mxu3 %vm387_vm1, %v2074_v15  ;;  %v1829_v15 = vld [vmem:[#allocation2 + $0xf0] sm:$0xff]  ;;  %512 = vst.msk [vmem:[#allocation3 + $0x60] sm:$0x1] %vm507_vm6, %v9760_v2 }
 0x22e   : > { %v7294_v25 = vadd.f32 %v1770_v0, %v1586_v29  ;;  %5933 = vmatmul.msk.bf16.gmra.mxu0 %vm387_vm1, %v9762_v35  ;;  %v2051_v0 = vld [vmem:[#allocation2 + $0xf1] sm:$0xff]  ;;  %v2052_v29 = vld [vmem:[#allocation2 + $0xf9] sm:$0xff]  ;;  %v1853_v33 = vpack.c.bf16 %v1830_v56, %v1829_v15  ;;  %513 = vst.msk [vmem:[#allocation3 + $0x78] sm:$0x1] %vm507_vm6, %v9760_v2  ;;  %v1831_v15 = vld [vmem:[#allocation2 + $0x108] sm:$0xff] }
 0x22f   : > { %v1109_v54 = vpop.f32.mrf.mxu2  ;;  %v2633_v35 = vld [vmem:[#allocation3 + $0x9] sm:$0xff]  ;;  %v2075_v44 = vpack.c.bf16 %v2052_v29, %v2051_v0  ;;  %514 = vst.msk [vmem:[#allocation3 + $0x90] sm:$0x1] %vm507_vm6, %v9760_v2  ;;  %v1832_v56 = vld [vmem:[#allocation2 + $0x110] sm:$0xff] }
 0x230   : > { %9761 = vst [vmem:[#allocation9_spill] sm:$0xff] %v7294_v25  ;;  %v1331_v24 = vpop.f32.mrf.mxu3  ;;  %v1144_v45 = vadd.f32 %v1109_v54, %v9763_v13  ;;  %v2664_v54 = vpack.c.bf16 %v2633_v35, %v2632_v62  ;;  %v2053_v0 = vld [vmem:[#allocation2 + $0x109] sm:$0xff]  ;;  %v2054_v29 = vld [vmem:[#allocation2 + $0x111] sm:$0xff] }
 0x231   : > { %515 = vst.msk [vmem:[#allocation3 + $0xa8] sm:$0x1] %vm507_vm6, %v9760_v2 }
 0x232   : > { %v1366_v27 = vadd.f32 %v1331_v24, %v1144_v45  ;;  %v9765_v45 = vld [vmem:[#allocation11_spill] sm:$0xff]  ;;  %5955 = vmatmul.msk.bf16.vlgmr.msra.gmra.mxu1 %vm498_vm4, %v2664_v54  ;;  %516 = vst.msk [vmem:[#allocation3 + $0xc0] sm:$0x1] %vm507_vm6, %v9760_v2 }
 0x233   : > { %v1550_v46 = vpop.f32.mrf.mxu0  ;;  %517 = vst.msk [vmem:[#allocation3 + $0xd8] sm:$0x1] %vm507_vm6, %v9760_v2 }
 0x234   : > { %v7307_v30 = vpop.f32.mrf.mxu1  ;;  %v7309_v28 = vadd.f32 %v1550_v46, %v1365_v8  ;;  %v6239_v8 = vld [vmem:[%s9681_s3 + $0x38] sm:$0xff]  ;;  %518 = vst.msk [vmem:[#allocation3 + $0xf0] sm:$0x1] %vm507_vm6, %v9760_v2 }
 0x235   : > { %9764 = vst [vmem:[#allocation12_spill] sm:$0xff] %v7307_v30  ;;  %3336 = vmatpush.bf16.msrb.mxu0 %v6239_v8 }
 0x236   : > { %519 = vst.msk [vmem:[#allocation3 + $0x108] sm:$0x1] %vm507_vm6, %v9760_v2 }
 0x237   : > { %v1111_v24 = vpop.f32.mrf.mxu2  ;;  %520 = vst.msk [vmem:[#allocation3 + $0x120] sm:$0x1] %vm507_vm6, %v9760_v2 }
 0x238   : > { %v1333_v13 = vpop.f32.mrf.mxu3  ;;  %v1145_v25 = vadd.f32 %v1111_v24, %v9765_v45  ;;  %521 = vst.msk [vmem:[#allocation3 + $0x138] sm:$0x1] %vm507_vm6, %v9760_v2 }
 0x239   : > { %522 = vst.msk [vmem:[#allocation3 + $0x150] sm:$0x1] %vm507_vm6, %v9760_v2 }
 0x23a   : > { %v1367_v30 = vadd.f32 %v1333_v13, %v1145_v25  ;;  %v6241_v25 = vld [vmem:[%s9681_s3 + $0x48] sm:$0xff]  ;;  %v2076_v13 = vpack.c.bf16 %v2054_v29, %v2053_v0  ;;  %523 = vst.msk [vmem:[#allocation3 + $0x168] sm:$0x1] %vm507_vm6, %v9760_v2 }
 0x23b   : > { %v1553_v14 = vpop.f32.mrf.mxu0  ;;  %3570 = vmatpush.bf16.msrb.mxu1 %v6241_v25  ;;  %524 = vst.msk [vmem:[#allocation3 + $0x180] sm:$0x1] %vm507_vm6, %v9760_v2  ;;  %v2055_v0 = vld [vmem:[#allocation2 + $0x121] sm:$0xff]  ;;  %v2056_v29 = vld [vmem:[#allocation2 + $0x129] sm:$0xff] }
 0x23c   : > { %v1775_v53 = vpop.f32.mrf.mxu1  ;;  %5901 = vmatmul.msk.bf16.gmra.mxu2 %vm387_vm1, %v1853_v33  ;;  %v1588_v46 = vadd.f32 %v1553_v14, %v1366_v27  ;;  %525 = vst.msk [vmem:[#allocation3 + $0x198] sm:$0x1] %vm507_vm6, %v9760_v2 }
 0x23d   : > { %5918 = vmatmul.msk.bf16.gmra.mxu3 %vm387_vm1, %v2075_v44  ;;  %526 = vst.msk [vmem:[#allocation3 + $0x11] sm:$0x1] %vm507_vm6, %v9760_v2 }
 0x23e   : > { %v7329_v62 = vadd.f32 %v1775_v53, %v1588_v46  ;;  %5934 = vmatmul.msk.bf16.gmra.mxu0 %vm387_vm1, %v7067_v6  ;;  %527 = vst.msk [vmem:[#allocation3 + $0x29] sm:$0x1] %vm507_vm6, %v9760_v2 }
 0x23f   : > { %v1923_v33 = vpop.f32.mrf.mxu2  ;;  %528 = vst.msk [vmem:[#allocation3 + $0x41] sm:$0x1] %vm507_vm6, %v9760_v2 }
 0x240   : > { %v2145_v44 = vpop.f32.mrf.mxu3  ;;  %v2003_v35 = vadd.f32 %v1923_v33, %v7073_v7  ;;  %v7363_v7 = vld [vmem:[%s9680_s2] ss:$0 sm:$0xff]  ;;  %529 = vst.msk [vmem:[#allocation3 + $0x59] sm:$0x1] %vm507_vm6, %v9760_v2 }
 0x241   : > { %530 = vst.msk [vmem:[#allocation3 + $0x71] sm:$0x1] %vm507_vm6, %v9760_v2 }
 0x242   : > { %v2225_v45 = vadd.f32 %v2145_v44, %v2003_v35  ;;  %531 = vst.msk [vmem:[#allocation3 + $0x89] sm:$0x1] %vm507_vm6, %v9760_v2 }
 0x243   : > { %v1555_v27 = vpop.f32.mrf.mxu0  ;;  %532 = vst.msk [vmem:[#allocation3 + $0xa1] sm:$0x1] %vm507_vm6, %v9760_v2 }
 0x244   : > { %v7345_v6 = vadd.f32 %v1555_v27, %v1367_v30  ;;  %v1854_v30 = vpack.c.bf16 %v1832_v56, %v1831_v15  ;;  %v1833_v15 = vld [vmem:[#allocation2 + $0x120] sm:$0xff]  ;;  %533 = vst.msk [vmem:[#allocation3 + $0xb9] sm:$0x1] %vm507_vm6, %v9760_v2  ;;  %v1834_v56 = vld [vmem:[#allocation2 + $0x128] sm:$0xff] }
 0x245   : > { %534 = vst.msk [vmem:[#allocation3 + $0xd1] sm:$0x1] %vm507_vm6, %v9760_v2 }
 0x246   : > { %535 = vst.msk [vmem:[#allocation3 + $0xe9] sm:$0x1] %vm507_vm6, %v9760_v2 }
 0x247   : > { %v1925_v54 = vpop.f32.mrf.mxu2  ;;  %536 = vst.msk [vmem:[#allocation3 + $0x101] sm:$0x1] %vm507_vm6, %v9760_v2 }
 0x248   : > { %v2147_v24 = vpop.f32.mrf.mxu3  ;;  %v2004_v53 = vadd.f32 %v1925_v54, %v7080_v52  ;;  %537 = vst.msk [vmem:[#allocation3 + $0x119] sm:$0x1] %vm507_vm6, %v9760_v2 }
 0x249   : > { %538 = vst.msk [vmem:[#allocation3 + $0x131] sm:$0x1] %vm507_vm6, %v9760_v2 }
 0x24a   : > { %v2226_v52 = vadd.f32 %v2147_v24, %v2004_v53  ;;  %539 = vst.msk [vmem:[#allocation3 + $0x149] sm:$0x1] %vm507_vm6, %v9760_v2 }
 0x24b   : > { %v2367_v8 = vpop.f32.mrf.mxu0  ;;  %540 = vst.msk [vmem:[#allocation3 + $0x161] sm:$0x1] %vm507_vm6, %v9760_v2 }
 0x24c   : > { %5902 = vmatmul.msk.bf16.gmra.mxu2 %vm387_vm1, %v1854_v30  ;;  %v2447_v14 = vadd.f32 %v2367_v8, %v2225_v45  ;;  %v1855_v45 = vpack.c.bf16 %v1834_v56, %v1833_v15  ;;  %v2077_v8 = vpack.c.bf16 %v2056_v29, %v2055_v0  ;;  %541 = vst.msk [vmem:[#allocation3 + $0x179] sm:$0x1] %vm507_vm6, %v9760_v2  ;;  %v1835_v29 = vld [vmem:[#allocation2 + $0x138] sm:$0xff] }
 0x24d   : > { %5919 = vmatmul.msk.bf16.gmra.mxu3 %vm387_vm1, %v2076_v13  ;;  %542 = vst.msk [vmem:[#allocation3 + $0x191] sm:$0x1] %vm507_vm6, %v9760_v2 }
 0x24e   : > { %v2483_v46 = vadd.f32 %v7363_v7, %v2447_v14  ;;  %5935 = vmatmul.msk.bf16.gmra.mxu0 %vm387_vm1, %v7083_v31  ;;  %543 = vst.msk [vmem:[#allocation3 + $0x1a9] sm:$0x1] %vm507_vm6, %v9760_v2 }
 0x24f   : > { %v1928_v25 = vpop.f32.mrf.mxu2 }
 0x250   : > { %v2150_v33 = vpop.f32.mrf.mxu3  ;;  %v2515_v44 = vmax.f32 %v2483_v46, 0.0  ;;  %v2005_v35 = vadd.f32 %v1928_v25, %v7089_v60 }
 0x252   : > { %2548 = vst.msk [vmem:[#allocation3 + $0x19] sm:$0xff] %vm498_vm4, %v2515_v44  ;;  %v2227_v60 = vadd.f32 %v2150_v33, %v2005_v35  ;;  %v2057_v35 = vld [vmem:[#allocation2 + $0x139] sm:$0xff] }
 0x253   : > { %v2369_v27 = vpop.f32.mrf.mxu0 }
 0x254   : > { %v2448_v31 = vadd.f32 %v2369_v27, %v2226_v52 }
 0x256   : > { %v2484_v54 = vadd.f32 %v7363_v7, %v2448_v31 }
 0x257   : > { %v1930_v24 = vpop.f32.mrf.mxu2 }
 0x258   : > { %v2152_v30 = vpop.f32.mrf.mxu3  ;;  %v2516_v13 = vmax.f32 %v2484_v54, 0.0  ;;  %v2006_v46 = vadd.f32 %v1930_v24, %v7096_v5  ;;  %v2058_v54 = vld [vmem:[#allocation2 + $0x141] sm:$0xff] }
 0x259   : > { %v2634_v27 = vld [vmem:[#allocation3 + $0x19] sm:$0xff] }
 0x25a   : > { %2549 = vst.msk [vmem:[#allocation3 + $0x21] sm:$0xff] %vm498_vm4, %v2516_v13  ;;  %v2228_v15 = vadd.f32 %v2152_v30, %v2006_v46  ;;  %v2078_v30 = vpack.c.bf16 %v2058_v54, %v2057_v35  ;;  %v2060_v35 = vld [vmem:[#allocation2 + $0x159] sm:$0xff] }
 0x25b   : > { %v2372_v14 = vpop.f32.mrf.mxu0 }
 0x25c   : > { %5903 = vmatmul.msk.bf16.gmra.mxu2 %vm387_vm1, %v1855_v45  ;;  %v2449_v53 = vadd.f32 %v2372_v14, %v2227_v60 }
 0x25d   : > { %5920 = vmatmul.msk.bf16.gmra.mxu3 %vm387_vm1, %v2077_v8 }
 0x25e   : > { %v2485_v25 = vadd.f32 %v7363_v7, %v2449_v53  ;;  %5936 = vmatmul.msk.bf16.gmra.mxu0 %vm387_vm1, %v7099_v51  ;;  %v1836_v51 = vld [vmem:[#allocation2 + $0x140] sm:$0xff] }
 0x25f   : > { %v1933_v33 = vpop.f32.mrf.mxu2  ;;  %v1856_v60 = vpack.c.bf16 %v1836_v51, %v1835_v29  ;;  %v1837_v29 = vld [vmem:[#allocation2 + $0x150] sm:$0xff] }
 0x260   : > { %v2155_v44 = vpop.f32.mrf.mxu3  ;;  %v2517_v52 = vmax.f32 %v2485_v25, 0.0  ;;  %v2007_v24 = vadd.f32 %v1933_v33, %v7105_v38  ;;  %v2059_v51 = vld [vmem:[#allocation2 + $0x151] sm:$0xff] }
 0x261   : > { %v2635_v31 = vld [vmem:[#allocation3 + $0x21] sm:$0xff] }
 0x262   : > { %2550 = vst.msk [vmem:[#allocation3 + $0x31] sm:$0xff] %vm498_vm4, %v2517_v52  ;;  %v2665_v5 = vpack.c.bf16 %v2635_v31, %v2634_v27  ;;  %v2229_v14 = vadd.f32 %v2155_v44, %v2007_v24 }
 0x263   : > { %v2374_v56 = vpop.f32.mrf.mxu0 }
 0x264   : > { %v2450_v0 = vadd.f32 %v2374_v56, %v2228_v15  ;;  %5956 = vmatmul.msk.bf16.gmra.mxu1 %vm498_vm4, %v2665_v5 }
 0x266   : > { %v2486_v13 = vadd.f32 %v7363_v7, %v2450_v0 }
 0x267   : > { %v1935_v2 = vpop.f32.mrf.mxu2 }
 0x268   : > { %v2157_v45 = vpop.f32.mrf.mxu3  ;;  %v2518_v8 = vmax.f32 %v2486_v13, 0.0  ;;  %v2008_v25 = vadd.f32 %v1935_v2, %v7112_v21  ;;  %v1838_v21 = vld [vmem:[#allocation2 + $0x158] sm:$0xff] }
 0x269   : > { %v2636_v31 = vld [vmem:[#allocation3 + $0x31] sm:$0xff] }
 0x26a   : > { %2551 = vst.msk [vmem:[#allocation3 + $0x39] sm:$0xff] %vm498_vm4, %v2518_v8  ;;  %v2230_v15 = vadd.f32 %v2157_v45, %v2008_v25  ;;  %v1857_v8 = vpack.c.bf16 %v1838_v21, %v1837_v29  ;;  %v2079_v45 = vpack.c.bf16 %v2060_v35, %v2059_v51 }
 0x26b   : > { %v2377_v53 = vpop.f32.mrf.mxu0 }
 0x26c   : > { %5904 = vmatmul.msk.bf16.gmra.mxu2 %vm387_vm1, %v1856_v60  ;;  %v2451_v46 = vadd.f32 %v2377_v53, %v2229_v14 }
 0x26d   : > { %5921 = vmatmul.msk.bf16.gmra.mxu3 %vm387_vm1, %v2078_v30 }
 0x26e   : > { %v2487_v38 = vadd.f32 %v7363_v7, %v2451_v46  ;;  %5937 = vmatmul.msk.bf16.gmra.mxu0 %vm387_vm1, %v7115_v11 }
 0x26f   : > { %v1938_v33 = vpop.f32.mrf.mxu2 }
 0x270   : > { %v2160_v52 = vpop.f32.mrf.mxu3  ;;  %v2519_v27 = vmax.f32 %v2487_v38, 0.0  ;;  %v2009_v54 = vadd.f32 %v1938_v33, %v7121_v9 }
 0x271   : > { %v2637_v44 = vld [vmem:[#allocation3 + $0x39] sm:$0xff] }
 0x272   : > { %2552 = vst.msk [vmem:[#allocation3 + $0x49] sm:$0xff] %vm498_vm4, %v2519_v27  ;;  %v2666_v5 = vpack.c.bf16 %v2637_v44, %v2636_v31  ;;  %v2231_v60 = vadd.f32 %v2160_v52, %v2009_v54 }
 0x273   : > { %v2379_v56 = vpop.f32.mrf.mxu0 }
 0x274   : > { %v2452_v0 = vadd.f32 %v2379_v56, %v2230_v15  ;;  %5957 = vmatmul.msk.bf16.gmra.mxu1 %vm498_vm4, %v2666_v5  ;;  %v1839_v5 = vld [vmem:[#allocation2 + $0x168] sm:$0xff] }
 0x275   : > { %v2061_v56 = vld [vmem:[#allocation2 + $0x169] sm:$0xff] }
 0x276   : > { %v2488_v11 = vadd.f32 %v7363_v7, %v2452_v0  ;;  %v2062_v0 = vld [vmem:[#allocation2 + $0x171] sm:$0xff] }
 0x277   : > { %v1940_v24 = vpop.f32.mrf.mxu2 }
 0x278   : > { %v2162_v13 = vpop.f32.mrf.mxu3  ;;  %v2520_v2 = vmax.f32 %v2488_v11, 0.0  ;;  %v2010_v53 = vadd.f32 %v1940_v24, %v7132_v20  ;;  %v1840_v20 = vld [vmem:[#allocation2 + $0x170] sm:$0xff]  ;;  %v2080_v11 = vpack.c.bf16 %v2062_v0, %v2061_v56 }
 0x279   : > { %v2638_v33 = vld [vmem:[#allocation3 + $0x49] sm:$0xff]  ;;  %v1858_v54 = vpack.c.bf16 %v1840_v20, %v1839_v5 }
 0x27a   : > { %2553 = vst.msk [vmem:[#allocation3 + $0x51] sm:$0xff] %vm498_vm4, %v2520_v2  ;;  %v2232_v27 = vadd.f32 %v2162_v13, %v2010_v53  ;;  %v1789_v2 = vadd.f32 %v7148_v47, %v7150_v26 }
 0x27b   : > { %v2382_v30 = vpop.f32.mrf.mxu0 }
 0x27c   : > { %5905 = vmatmul.msk.bf16.gmra.mxu2 %vm387_vm1, %v1857_v8  ;;  %v2453_v14 = vadd.f32 %v2382_v30, %v2231_v60 }
 0x27d   : > { %5922 = vmatmul.msk.bf16.gmra.mxu3 %vm387_vm1, %v2079_v45 }
 0x27e   : > { %v2489_v9 = vadd.f32 %v7363_v7, %v2453_v14  ;;  %5938 = vmatmul.msk.bf16.gmra.mxu0 %vm387_vm1, %v7135_v49 }
 0x27f   : > { %v1943_v46 = vpop.f32.mrf.mxu2 }
 0x280   : > { %v2165_v25 = vpop.f32.mrf.mxu3  ;;  %v2521_v38 = vmax.f32 %v2489_v9, 0.0  ;;  %v2011_v29 = vadd.f32 %v1943_v46, %v7141_v32 }
 0x281   : > { %v2639_v52 = vld [vmem:[#allocation3 + $0x51] sm:$0xff] }
 0x282   : > { %2554 = vst.msk [vmem:[#allocation3 + $0x61] sm:$0xff] %vm498_vm4, %v2521_v38  ;;  %v2667_v31 = vpack.c.bf16 %v2639_v52, %v2638_v33  ;;  %v2233_v24 = vadd.f32 %v2165_v25, %v2011_v29 }
 0x283   : > { %v2384_v44 = vpop.f32.mrf.mxu0 }
 0x284   : > { %v2454_v15 = vadd.f32 %v2384_v44, %v2232_v27  ;;  %5958 = vmatmul.msk.bf16.gmra.mxu1 %vm498_vm4, %v2667_v31  ;;  %v6236_v31 = vld [vmem:[%s9681_s3 + $0x20] sm:$0xff] }
 0x285   : > { %3103 = vmatpush.bf16.msrb.mxu3 %v6236_v31  ;;  %v6238_v31 = vld [vmem:[%s9681_s3 + $0x30] sm:$0xff] }
 0x286   : > { %v2490_v49 = vadd.f32 %v7363_v7, %v2454_v15  ;;  %3337 = vmatpush.bf16.msrb.mxu0 %v6238_v31 }
 0x287   : > { %v1945_v21 = vpop.f32.mrf.mxu2 }
 0x288   : > { %v2167_v51 = vpop.f32.mrf.mxu3  ;;  %v2522_v35 = vmax.f32 %v2490_v49, 0.0  ;;  %v2012_v32 = vadd.f32 %v1945_v21, %v1789_v2 }
 0x289   : > { %v2640_v53 = vld [vmem:[#allocation3 + $0x61] sm:$0xff] }
 0x28a   : > { %2555 = vst.msk [vmem:[#allocation3 + $0x69] sm:$0xff] %vm498_vm4, %v2522_v35  ;;  %v2234_v46 = vadd.f32 %v2167_v51, %v2012_v32 }
 0x28b   : > { %v2387_v13 = vpop.f32.mrf.mxu0 }
 0x28c   : > { %5906 = vmatmul.msk.bf16.gmra.mxu2 %vm387_vm1, %v1858_v54  ;;  %v2455_v8 = vadd.f32 %v2387_v13, %v2233_v24  ;;  %v2065_v24 = vld [vmem:[#allocation2 + $0x199] sm:$0xff]  ;;  %v2066_v13 = vld [vmem:[#allocation2 + $0x1a1] sm:$0xff] }
 0x28d   : > { %5923 = vmatmul.msk.bf16.gmra.mxu3 %vm387_vm1, %v2080_v11  ;;  %v1843_v11 = vld [vmem:[#allocation2 + $0x198] sm:$0xff] }
 0x28e   : > { %v2491_v45 = vadd.f32 %v7363_v7, %v2455_v8  ;;  %5939 = vmatmul.msk.bf16.gmra.mxu0 %vm387_vm1, %v7153_v40  ;;  %v6232_v40 = vld [vmem:[%s9681_s3] sm:$0xff] }
 0x28f   : > { %v1948_v60 = vpop.f32.mrf.mxu2  ;;  %2901 = vmatpush.bf16.msrb.mxu2 %v6232_v40 }
 0x290   : > { %v2170_v30 = vpop.f32.mrf.mxu3  ;;  %v2523_v14 = vmax.f32 %v2491_v45, 0.0  ;;  %v2013_v38 = vadd.f32 %v1948_v60, %v7159_v50  ;;  %v1791_v50 = vadd.f32 %v7166_v3, %v7168_v37 }
 0x291   : > { %v2641_v9 = vld [vmem:[#allocation3 + $0x69] sm:$0xff] }
 0x292   : > { %2556 = vst.msk [vmem:[#allocation3 + $0x79] sm:$0xff] %vm498_vm4, %v2523_v14  ;;  %v2668_v47 = vpack.c.bf16 %v2641_v9, %v2640_v53  ;;  %v2235_v15 = vadd.f32 %v2170_v30, %v2013_v38  ;;  %v2082_v30 = vpack.c.bf16 %v2066_v13, %v2065_v24  ;;  %v9766_v9 = vld [vmem:[#allocation14_spill] sm:$0xff]  ;;  %v1795_v13 = vadd.f32 %v7207_v57, %v7209_v43 }
 0x293   : > { %v2389_v26 = vpop.f32.mrf.mxu0 }
 0x294   : > { %v2456_v25 = vadd.f32 %v2389_v26, %v2234_v46  ;;  %5959 = vmatmul.msk.bf16.gmra.mxu1 %vm498_vm4, %v2668_v47  ;;  %v9767_v46 = vld [vmem:[#allocation13_spill] sm:$0xff] }
 0x295   : > { %v1793_v47 = vadd.f32 %v9767_v46, %v9766_v9  ;;  %v7506_v46 = vpop.f32.mrf.mxu1 }
 0x296   : > { %v2492_v33 = vadd.f32 %v7363_v7, %v2456_v25 }
 0x297   : > { %v1950_v52 = vpop.f32.mrf.mxu2 }
 0x298   : > { %v2172_v27 = vpop.f32.mrf.mxu3  ;;  %v2524_v44 = vmax.f32 %v2492_v33, 0.0  ;;  %v2014_v56 = vadd.f32 %v1950_v52, %v1791_v50 }
 0x299   : > { %v2642_v51 = vld [vmem:[#allocation3 + $0x79] sm:$0xff] }
 0x29a   : > { %2557 = vst.msk [vmem:[#allocation3 + $0x81] sm:$0xff] %vm498_vm4, %v2524_v44  ;;  %v2236_v54 = vadd.f32 %v2172_v27, %v2014_v56  ;;  %v2983_v56 = vld [vmem:[#allocation3 + $0x2] sm:$0xff] }
 0x29b   : > { %v2392_v5 = vpop.f32.mrf.mxu0 }
 0x29c   : > { %5907 = vmatmul.msk.bf16.gmra.mxu2 %vm387_vm1, %v7173_v34  ;;  %v2457_v20 = vadd.f32 %v2392_v5, %v2235_v15 }
 0x29d   : > { %5924 = vmatmul.msk.bf16.gmra.mxu3 %vm387_vm1, %v7191_v63  ;;  %v1844_v63 = vld [vmem:[#allocation2 + $0x1a0] sm:$0xff] }
 0x29e   : > { %v2493_v0 = vadd.f32 %v7363_v7, %v2457_v20  ;;  %5940 = vmatmul.msk.bf16.gmra.mxu0 %vm387_vm1, %v7171_v59  ;;  %v1860_v60 = vpack.c.bf16 %v1844_v63, %v1843_v11  ;;  %v2580_v20 = vld [vmem:[#allocation3] sm:$0xff] }
 0x29f   : > { %v1953_v29 = vpop.f32.mrf.mxu2 }
 0x2a0   : > { %v2175_v49 = vpop.f32.mrf.mxu3  ;;  %v2525_v21 = vmax.f32 %v2493_v0, 0.0  ;;  %v2015_v2 = vadd.f32 %v1953_v29, %v7179_v10  ;;  %v2984_v0 = vld [vmem:[#allocation3 + $0xa] sm:$0xff] }
 0x2a1   : > { %v2643_v35 = vld [vmem:[#allocation3 + $0x81] sm:$0xff] }
 0x2a2   : > { %2558 = vst.msk [vmem:[#allocation3 + $0x91] sm:$0xff] %vm498_vm4, %v2525_v21  ;;  %v2669_v3 = vpack.c.bf16 %v2643_v35, %v2642_v51  ;;  %v2237_v14 = vadd.f32 %v2175_v49, %v2015_v2  ;;  %v2287_v35 = vld [vmem:[#allocation2 + $0x19a] sm:$0xff] }
 0x2a3   : > { %v2394_v37 = vpop.f32.mrf.mxu0  ;;  %v6240_v2 = vld [vmem:[%s9681_s3 + $0x40] sm:$0xff] }
 0x2a4   : > { %v2458_v34 = vadd.f32 %v2394_v37, %v2236_v54  ;;  %5960 = vmatmul.msk.bf16.gmra.mxu1 %vm498_vm4, %v2669_v3  ;;  %v2288_v54 = vld [vmem:[#allocation2 + $0x1a2] sm:$0xff] }
 0x2a5   : > { %v2304_v63 = vpack.c.bf16 %v2288_v54, %v2287_v35  ;;  %3571 = vmatpush.bf16.msrb.mxu1 %v6240_v2 }
 0x2a6   : > { %v2494_v59 = vadd.f32 %v7363_v7, %v2458_v34  ;;  %v3015_v34 = vpack.c.bf16 %v2984_v0, %v2983_v56 }
 0x2a7   : > { %v1955_v8 = vpop.f32.mrf.mxu2 }
 0x2a8   : > { %v2177_v32 = vpop.f32.mrf.mxu3  ;;  %v2526_v45 = vmax.f32 %v2494_v59, 0.0  ;;  %v2016_v10 = vadd.f32 %v1955_v8, %v1793_v47 }
 0x2a9   : > { %v2644_v27 = vld [vmem:[#allocation3 + $0x91] sm:$0xff] }
 0x2aa   : > { %2559 = vst.msk [vmem:[#allocation3 + $0x99] sm:$0xff] %vm498_vm4, %v2526_v45  ;;  %v2238_v44 = vadd.f32 %v2177_v32, %v2016_v10 }
 0x2ab   : > { %v2397_v53 = vpop.f32.mrf.mxu0 }
 0x2ac   : > { %5908 = vmatmul.msk.bf16.gmra.mxu2 %vm387_vm1, %v1860_v60  ;;  %v2459_v26 = vadd.f32 %v2397_v53, %v2237_v14 }
 0x2ad   : > { %5925 = vmatmul.msk.bf16.gmra.mxu3 %vm387_vm1, %v2082_v30 }
 0x2ae   : > { %v2495_v25 = vadd.f32 %v7363_v7, %v2459_v26  ;;  %5941 = vmatmul.msk.bf16.gmra.mxu0 %vm387_vm1, %v7193_v12  ;;  %v2581_v12 = vld [vmem:[#allocation3 + $0x8] sm:$0xff] }
 0x2af   : > { %v1958_v38 = vpop.f32.mrf.mxu2  ;;  %v2612_v37 = vpack.c.bf16 %v2581_v12, %v2580_v20  ;;  %v7515_v12 = vpop.f32.mrf.mxu1 }
 0x2b0   : > { %v2180_v33 = vpop.f32.mrf.mxu3  ;;  %v2527_v52 = vmax.f32 %v2495_v25, 0.0  ;;  %v2017_v29 = vadd.f32 %v1958_v38, %v7200_v22  ;;  %v2583_v38 = vld [vmem:[#allocation3 + $0x20] sm:$0xff] }
 0x2b1   : > { %v2645_v40 = vld [vmem:[#allocation3 + $0x99] sm:$0xff] }
 0x2b2   : > { %2560 = vst.msk [vmem:[#allocation3 + $0xa9] sm:$0xff] %vm498_vm4, %v2527_v52  ;;  %v2670_v15 = vpack.c.bf16 %v2645_v40, %v2644_v27  ;;  %v2239_v11 = vadd.f32 %v2180_v33, %v2017_v29  ;;  %v2985_v33 = vld [vmem:[#allocation3 + $0x1a] sm:$0xff]  ;;  %v2986_v52 = vld [vmem:[#allocation3 + $0x22] sm:$0xff] }
 0x2b3   : > { %v2399_v5 = vpop.f32.mrf.mxu0  ;;  %v2582_v40 = vld [vmem:[#allocation3 + $0x18] sm:$0xff] }
 0x2b4   : > { %v2460_v50 = vadd.f32 %v2399_v5, %v2238_v44  ;;  %5961 = vmatmul.msk.bf16.gmra.mxu1 %vm498_vm4, %v2670_v15  ;;  %v2613_v44 = vpack.c.bf16 %v2583_v38, %v2582_v40  ;;  %v3016_v15 = vpack.c.bf16 %v2986_v52, %v2985_v33 }
 0x2b6   : > { %v2496_v49 = vadd.f32 %v7363_v7, %v2460_v50  ;;  %v1797_v50 = vadd.f32 %v7219_v55, %v7221_v16 }
 0x2b7   : > { %v1960_v21 = vpop.f32.mrf.mxu2  ;;  %v7523_v2 = vpop.f32.mrf.mxu1 }
 0x2b8   : > { %v2182_v51 = vpop.f32.mrf.mxu3  ;;  %v2528_v3 = vmax.f32 %v2496_v49, 0.0  ;;  %v2018_v59 = vadd.f32 %v1960_v21, %v1795_v13  ;;  %v2988_v13 = vld [vmem:[#allocation3 + $0x3a] sm:$0xff] }
 0x2b9   : > { %v2646_v30 = vld [vmem:[#allocation3 + $0xa9] sm:$0xff] }
 0x2ba   : > { %2561 = vst.msk [vmem:[#allocation3 + $0xb1] sm:$0xff] %vm498_vm4, %v2528_v3  ;;  %v2240_v43 = vadd.f32 %v2182_v51, %v2018_v59  ;;  %v2584_v59 = vld [vmem:[#allocation3 + $0x30] sm:$0xff] }
 0x2bb   : > { %v2402_v24 = vpop.f32.mrf.mxu0 }
 0x2bc   : > { %5979 = vmatmul.msk.bf16.vlgmr.msrb.gmra.mxu2 %vm498_vm4, %v2612_v37  ;;  %v2461_v22 = vadd.f32 %v2402_v24, %v2239_v11  ;;  %v2987_v24 = vld [vmem:[#allocation3 + $0x32] sm:$0xff] }
 0x2bd   : > { %6007 = vmatmul.msk.bf16.vlgmr.msrb.gmra.mxu3 %vm498_vm4, %v3015_v34 }
 0x2be   : > { %v2497_v8 = vadd.f32 %v7363_v7, %v2461_v22  ;;  %5942 = vmatmul.msk.bf16.gmra.mxu0 %vm387_vm1, %v2304_v63  ;;  %v2585_v63 = vld [vmem:[#allocation3 + $0x38] sm:$0xff] }
 0x2bf   : > { %v1963_v32 = vpop.f32.mrf.mxu2 }
 0x2c0   : > { %v2185_v45 = vpop.f32.mrf.mxu3  ;;  %v2529_v60 = vmax.f32 %v2497_v8, 0.0  ;;  %v2019_v47 = vadd.f32 %v1963_v32, %v7214_v41  ;;  %v7526_v32 = vpack.c.bf16 %v2585_v63, %v2584_v59  ;;  %v2589_v59 = vld [vmem:[#allocation3 + $0x68] sm:$0xff] }
 0x2c1   : > { %v2647_v57 = vld [vmem:[#allocation3 + $0xb1] sm:$0xff] }
 0x2c2   : > { %2562 = vst.msk [vmem:[#allocation3 + $0xc1] sm:$0xff] %vm498_vm4, %v2529_v60  ;;  %v2671_v14 = vpack.c.bf16 %v2647_v57, %v2646_v30  ;;  %v2241_v31 = vadd.f32 %v2185_v45, %v2019_v47  ;;  %v3017_v45 = vpack.c.bf16 %v2988_v13, %v2987_v24 }
 0x2c3   : > { %v2404_v53 = vpop.f32.mrf.mxu0 }
 0x2c4   : > { %v2462_v9 = vadd.f32 %v2404_v53, %v2240_v43  ;;  %5962 = vmatmul.msk.bf16.gmra.mxu1 %vm498_vm4, %v2671_v14 }
 0x2c6   : > { %v2498_v26 = vadd.f32 %v7363_v7, %v2462_v9 }
 0x2c7   : > { %v1965_v10 = vpop.f32.mrf.mxu2 }
 0x2c8   : > { %v2187_v25 = vpop.f32.mrf.mxu3  ;;  %v2530_v27 = vmax.f32 %v2498_v26, 0.0  ;;  %v2020_v20 = vadd.f32 %v1965_v10, %v1797_v50  ;;  %v2586_v50 = vld [vmem:[#allocation3 + $0x48] sm:$0xff] }
 0x2c9   : > { %v2648_v21 = vld [vmem:[#allocation3 + $0xc1] sm:$0xff] }
 0x2ca   : > { %2563 = vst.msk [vmem:[#allocation3 + $0xc9] sm:$0xff] %vm498_vm4, %v2530_v27  ;;  %v2242_v35 = vadd.f32 %v2187_v25, %v2020_v20 }
 0x2cb   : > { %v2407_v5 = vpop.f32.mrf.mxu0 }
 0x2cc   : > { %5980 = vmatmul.msk.bf16.gmra.mxu2 %vm498_vm4, %v2613_v44  ;;  %v2463_v41 = vadd.f32 %v2407_v5, %v2241_v31  ;;  %v2587_v31 = vld [vmem:[#allocation3 + $0x50] sm:$0xff] }
 0x2cd   : > { %6008 = vmatmul.msk.bf16.gmra.mxu3 %vm498_vm4, %v3016_v15  ;;  %v2990_v15 = vld [vmem:[#allocation3 + $0x52] sm:$0xff] }
 0x2ce   : > { %v2499_v56 = vadd.f32 %v7363_v7, %v2463_v41  ;;  %6035 = vmatmul.msk.bf16.vlgmr.msrb.gmra.mxu0 %vm498_vm4, %v2613_v44  ;;  %v2989_v44 = vld [vmem:[#allocation3 + $0x4a] sm:$0xff] }
 0x2cf   : > { %v1968_v0 = vpop.f32.mrf.mxu2 }
 0x2d0   : > { %v2190_v29 = vpop.f32.mrf.mxu3  ;;  %v2531_v49 = vmax.f32 %v2499_v56, 0.0  ;;  %v2021_v3 = vadd.f32 %v1968_v0, %v7226_v4  ;;  %v1799_v4 = vadd.f32 %v7231_v1, %v7233_v18  ;;  %v7545_v56 = vpack.c.bf16 %v2587_v31, %v2586_v50  ;;  %v2591_v50 = vld [vmem:[#allocation3 + $0x80] sm:$0xff] }
 0x2d1   : > { %v2649_v51 = vld [vmem:[#allocation3 + $0xc9] sm:$0xff]  ;;  %v7547_v0 = vpack.c.bf16 %v2990_v15, %v2989_v44 }
 0x2d2   : > { %2564 = vst.msk [vmem:[#allocation3 + $0xd9] sm:$0xff] %vm498_vm4, %v2531_v49  ;;  %v2672_v55 = vpack.c.bf16 %v2649_v51, %v2648_v21  ;;  %v2243_v8 = vadd.f32 %v2190_v29, %v2021_v3 }
 0x2d3   : > { %v2409_v16 = vpop.f32.mrf.mxu0 }
 0x2d4   : > { %v2464_v54 = vadd.f32 %v2409_v16, %v2242_v35  ;;  %5963 = vmatmul.msk.bf16.gmra.mxu1 %vm498_vm4, %v2672_v55 }
 0x2d6   : > { %v2500_v37 = vadd.f32 %v7363_v7, %v2464_v54 }
 0x2d7   : > { %v1970_v34 = vpop.f32.mrf.mxu2 }
 0x2d8   : > { %v2192_v11 = vpop.f32.mrf.mxu3  ;;  %v2532_v22 = vmax.f32 %v2500_v37, 0.0  ;;  %v2022_v57 = vadd.f32 %v1970_v34, %v1799_v4  ;;  %v2588_v4 = vld [vmem:[#allocation3 + $0x60] sm:$0xff] }
 0x2d9   : > { %v2650_v26 = vld [vmem:[#allocation3 + $0xd9] sm:$0xff] }
 0x2da   : > { %2565 = vst.msk [vmem:[#allocation3 + $0xe1] sm:$0xff] %vm498_vm4, %v2532_v22  ;;  %v2244_v1 = vadd.f32 %v2192_v11, %v2022_v57 }
 0x2db   : > { %v2412_v60 = vpop.f32.mrf.mxu0 }
 0x2dc   : > { %5981 = vmatmul.msk.bf16.gmra.mxu2 %vm498_vm4, %v7526_v32  ;;  %v2465_v30 = vadd.f32 %v2412_v60, %v2243_v8  ;;  %v2991_v8 = vld [vmem:[#allocation3 + $0x62] sm:$0xff] }
 0x2dd   : > { %6009 = vmatmul.msk.bf16.gmra.mxu3 %vm498_vm4, %v3017_v45  ;;  %v2992_v45 = vld [vmem:[#allocation3 + $0x6a] sm:$0xff] }
 0x2de   : > { %v2501_v43 = vadd.f32 %v7363_v7, %v2465_v30  ;;  %6036 = vmatmul.msk.bf16.gmra.mxu0 %vm498_vm4, %v7526_v32 }
 0x2df   : > { %v1973_v14 = vpop.f32.mrf.mxu2 }
 0x2e0   : > { %v2195_v53 = vpop.f32.mrf.mxu3  ;;  %v2533_v9 = vmax.f32 %v2501_v43, 0.0  ;;  %v2023_v33 = vadd.f32 %v1973_v14, %v7238_v19  ;;  %v1801_v19 = vadd.f32 %v7243_v58, %v7245_v36  ;;  %v7567_v43 = vpack.c.bf16 %v2589_v59, %v2588_v4 }
 0x2e1   : > { %v7536_v47 = vpop.f32.mrf.mxu1  ;;  %v2651_v10 = vld [vmem:[#allocation3 + $0xe1] sm:$0xff]  ;;  %v7569_v14 = vpack.c.bf16 %v2992_v45, %v2991_v8 }
 0x2e2   : > { %2566 = vst.msk [vmem:[#allocation3 + $0xf1] sm:$0xff] %vm498_vm4, %v2533_v9  ;;  %v2673_v18 = vpack.c.bf16 %v2651_v10, %v2650_v26  ;;  %v2245_v20 = vadd.f32 %v2195_v53, %v2023_v33  ;;  %v9768_v8 = vld [vmem:[#allocation15_spill] sm:$0xff] }
 0x2e3   : > { %v2414_v25 = vpop.f32.mrf.mxu0 }
 0x2e4   : > { %v2466_v38 = vadd.f32 %v2414_v25, %v2244_v1  ;;  %5964 = vmatmul.msk.bf16.gmra.mxu1 %vm498_vm4, %v2673_v18 }
 0x2e6   : > { %v2502_v52 = vadd.f32 %v7363_v7, %v2466_v38 }
 0x2e7   : > { %v1975_v27 = vpop.f32.mrf.mxu2 }
 0x2e8   : > { %v2197_v40 = vpop.f32.mrf.mxu3  ;;  %v2534_v5 = vmax.f32 %v2502_v52, 0.0  ;;  %v2024_v21 = vadd.f32 %v1975_v27, %v1801_v19 }
 0x2e9   : > { %v7542_v41 = vpop.f32.mrf.mxu1  ;;  %v2652_v3 = vld [vmem:[#allocation3 + $0xf1] sm:$0xff] }
 0x2ea   : > { %2567 = vst.msk [vmem:[#allocation3 + $0xf9] sm:$0xff] %vm498_vm4, %v2534_v5  ;;  %v2246_v36 = vadd.f32 %v2197_v40, %v2024_v21 }
 0x2eb   : > { %v2417_v29 = vpop.f32.mrf.mxu0 }
 0x2ec   : > { %5982 = vmatmul.msk.bf16.gmra.mxu2 %vm498_vm4, %v7545_v56  ;;  %v2467_v49 = vadd.f32 %v2417_v29, %v2245_v20  ;;  %v2993_v20 = vld [vmem:[#allocation3 + $0x7a] sm:$0xff]  ;;  %v2994_v29 = vld [vmem:[#allocation3 + $0x82] sm:$0xff] }
 0x2ed   : > { %6010 = vmatmul.msk.bf16.gmra.mxu3 %vm498_vm4, %v7547_v0 }
 0x2ee   : > { %v2503_v51 = vadd.f32 %v7363_v7, %v2467_v49  ;;  %6037 = vmatmul.msk.bf16.gmra.mxu0 %vm498_vm4, %v7545_v56  ;;  %v2590_v49 = vld [vmem:[#allocation3 + $0x78] sm:$0xff] }
 0x2ef   : > { %v1978_v35 = vpop.f32.mrf.mxu2 }
 0x2f0   : > { %v2200_v55 = vpop.f32.mrf.mxu3  ;;  %v2535_v16 = vmax.f32 %v2503_v51, 0.0  ;;  %v2025_v63 = vadd.f32 %v1978_v35, %v7250_v23  ;;  %v1803_v23 = vadd.f32 %v7255_v17, %v7257_v39  ;;  %v7592_v35 = vpack.c.bf16 %v2591_v50, %v2590_v49 }
 0x2f1   : > { %v7558_v54 = vpop.f32.mrf.mxu1  ;;  %v2653_v58 = vld [vmem:[#allocation3 + $0xf9] sm:$0xff] }
 0x2f2   : > { %2568 = vst.msk [vmem:[#allocation3 + $0x109] sm:$0xff] %vm498_vm4, %v2535_v16  ;;  %v2674_v37 = vpack.c.bf16 %v2653_v58, %v2652_v3  ;;  %v2247_v57 = vadd.f32 %v2200_v55, %v2025_v63  ;;  %v7594_v55 = vpack.c.bf16 %v2994_v29, %v2993_v20 }
 0x2f3   : > { %v2419_v34 = vpop.f32.mrf.mxu0 }
 0x2f4   : > { %v2468_v11 = vadd.f32 %v2419_v34, %v2246_v36  ;;  %5965 = vmatmul.msk.bf16.gmra.mxu1 %vm498_vm4, %v2674_v37 }
 0x2f6   : > { %v2504_v24 = vadd.f32 %v7363_v7, %v2468_v11 }
 0x2f7   : > { %v1980_v13 = vpop.f32.mrf.mxu2 }
 0x2f8   : > { %v2202_v22 = vpop.f32.mrf.mxu3  ;;  %v2536_v60 = vmax.f32 %v2504_v24, 0.0  ;;  %v2026_v26 = vadd.f32 %v1980_v13, %v1803_v23  ;;  %v2995_v23 = vld [vmem:[#allocation3 + $0x92] sm:$0xff] }
 0x2f9   : > { %v7564_v30 = vpop.f32.mrf.mxu1  ;;  %v2654_v33 = vld [vmem:[#allocation3 + $0x109] sm:$0xff] }
 0x2fa   : > { %2569 = vst.msk [vmem:[#allocation3 + $0x111] sm:$0xff] %vm498_vm4, %v2536_v60  ;;  %v2248_v39 = vadd.f32 %v2202_v22, %v2026_v26 }
 0x2fb   : > { %v2422_v53 = vpop.f32.mrf.mxu0 }
 0x2fc   : > { %5983 = vmatmul.msk.bf16.gmra.mxu2 %vm498_vm4, %v7567_v43  ;;  %v2469_v9 = vadd.f32 %v2422_v53, %v2247_v57  ;;  %v2593_v53 = vld [vmem:[#allocation3 + $0x98] sm:$0xff] }
 0x2fd   : > { %6011 = vmatmul.msk.bf16.gmra.mxu3 %vm498_vm4, %v7569_v14 }
 0x2fe   : > { %v2505_v10 = vadd.f32 %v7363_v7, %v2469_v9  ;;  %6038 = vmatmul.msk.bf16.gmra.mxu0 %vm498_vm4, %v7567_v43  ;;  %v2996_v9 = vld [vmem:[#allocation3 + $0x9a] sm:$0xff] }
 0x2ff   : > { %v1983_v1 = vpop.f32.mrf.mxu2 }
 0x300   : > { %v2205_v18 = vpop.f32.mrf.mxu3  ;;  %v2537_v25 = vmax.f32 %v2505_v10, 0.0  ;;  %v2027_v31 = vadd.f32 %v1983_v1, %v7262_v42  ;;  %v1805_v42 = vadd.f32 %v7267_v48, %v7269_v61  ;;  %v2592_v10 = vld [vmem:[#allocation3 + $0x90] sm:$0xff] }
 0x301   : > { %v7580_v38 = vpop.f32.mrf.mxu1  ;;  %v2655_v17 = vld [vmem:[#allocation3 + $0x111] sm:$0xff] }
 0x302   : > { %2570 = vst.msk [vmem:[#allocation3 + $0x121] sm:$0xff] %vm498_vm4, %v2537_v25  ;;  %v7583_v52 = vpack.c.bf16 %v2655_v17, %v2654_v33  ;;  %v2249_v51 = vadd.f32 %v2205_v18, %v2027_v31  ;;  %v7617_v25 = vpack.c.bf16 %v2593_v53, %v2592_v10  ;;  %v7619_v33 = vpack.c.bf16 %v2996_v9, %v2995_v23  ;;  %v9772_v53 = vld [vmem:[#allocation12_spill] sm:$0xff] }
 0x303   : > { %v2424_v27 = vpop.f32.mrf.mxu0  ;;  %v1809_v23 = vadd.f32 %v9772_v53, %v7309_v28  ;;  %v6430_v53 = vld [vmem:[%s9680_s2] ss:$0 sm:$0xff] }
 0x304   : > { %v2470_v40 = vadd.f32 %v2424_v27, %v2248_v39  ;;  %5966 = vmatmul.msk.bf16.gmra.mxu1 %vm498_vm4, %v7583_v52  ;;  %v9769_v39 = vld [vmem:[#allocation16_spill] sm:$0xff] }
 0x305   : > { %v9770_v27 = vld [vmem:[#allocation8_spill] sm:$0xff] }
 0x306   : > { %v2506_v44 = vadd.f32 %v7363_v7, %v2470_v40  ;;  %v1807_v40 = vadd.f32 %v9770_v27, %v9769_v39 }
 0x307   : > { %v1985_v15 = vpop.f32.mrf.mxu2 }
 0x308   : > { %v2207_v5 = vpop.f32.mrf.mxu3  ;;  %v2538_v19 = vmax.f32 %v2506_v44, 0.0  ;;  %v2028_v58 = vadd.f32 %v1985_v15, %v1805_v42 }
 0x309   : > { %v7589_v21 = vpop.f32.mrf.mxu1  ;;  %v2656_v24 = vld [vmem:[#allocation3 + $0x121] sm:$0xff] }
 0x30a   : > { %2571 = vst.msk [vmem:[#allocation3 + $0x129] sm:$0xff] %vm498_vm4, %v2538_v19  ;;  %v2250_v61 = vadd.f32 %v2207_v5, %v2028_v58  ;;  %v9771_v58 = vld [vmem:[#allocation9_spill] sm:$0xff] }
 0x30b   : > { %v2427_v16 = vpop.f32.mrf.mxu0 }
 0x30c   : > { %5984 = vmatmul.msk.bf16.gmra.mxu2 %vm498_vm4, %v7592_v35  ;;  %v2471_v3 = vadd.f32 %v2427_v16, %v2249_v51 }
 0x30d   : > { %6012 = vmatmul.msk.bf16.gmra.mxu3 %vm498_vm4, %v7594_v55 }
 0x30e   : > { %v2507_v36 = vadd.f32 %v7363_v7, %v2471_v3  ;;  %6039 = vmatmul.msk.bf16.gmra.mxu0 %vm498_vm4, %v7592_v35 }
 0x30f   : > { %v1988_v37 = vpop.f32.mrf.mxu2 }
 0x310   : > { %v2210_v34 = vpop.f32.mrf.mxu3  ;;  %v2539_v11 = vmax.f32 %v2507_v36, 0.0  ;;  %v2029_v45 = vadd.f32 %v1988_v37, %v9768_v8 }
 0x311   : > { %v7605_v63 = vpop.f32.mrf.mxu1  ;;  %v2657_v48 = vld [vmem:[#allocation3 + $0x129] sm:$0xff] }
 0x312   : > { %2572 = vst.msk [vmem:[#allocation3 + $0x139] sm:$0xff] %vm498_vm4, %v2539_v11  ;;  %v7608_v13 = vpack.c.bf16 %v2657_v48, %v2656_v24  ;;  %v2251_v18 = vadd.f32 %v2210_v34, %v2029_v45  ;;  %v2595_v24 = vld [vmem:[#allocation3 + $0xb0] sm:$0xff] }
 0x313   : > { %v2429_v22 = vpop.f32.mrf.mxu0  ;;  %v2997_v48 = vld [vmem:[#allocation3 + $0xaa] sm:$0xff] }
 0x314   : > { %v2472_v59 = vadd.f32 %v2429_v22, %v2250_v61  ;;  %5967 = vmatmul.msk.bf16.gmra.mxu1 %vm498_vm4, %v7608_v13  ;;  %v2998_v61 = vld [vmem:[#allocation3 + $0xb2] sm:$0xff] }
 0x316   : > { %v2508_v60 = vadd.f32 %v7363_v7, %v2472_v59  ;;  %v2594_v59 = vld [vmem:[#allocation3 + $0xa8] sm:$0xff] }
 0x317   : > { %v1990_v4 = vpop.f32.mrf.mxu2 }
 0x318   : > { %v2212_v57 = vpop.f32.mrf.mxu3  ;;  %v2540_v26 = vmax.f32 %v2508_v60, 0.0  ;;  %v2030_v44 = vadd.f32 %v1990_v4, %v1807_v40  ;;  %v7642_v60 = vpack.c.bf16 %v2595_v24, %v2594_v59  ;;  %v7644_v4 = vpack.c.bf16 %v2998_v61, %v2997_v48 }
 0x319   : > { %v7614_v1 = vpop.f32.mrf.mxu1  ;;  %v2658_v19 = vld [vmem:[#allocation3 + $0x139] sm:$0xff] }
 0x31a   : > { %2573 = vst.msk [vmem:[#allocation3 + $0x141] sm:$0xff] %vm498_vm4, %v2540_v26  ;;  %v2252_v51 = vadd.f32 %v2212_v57, %v2030_v44 }
 0x31b   : > { %v2432_v17 = vpop.f32.mrf.mxu0 }
 0x31c   : > { %5985 = vmatmul.msk.bf16.gmra.mxu2 %vm498_vm4, %v7617_v25  ;;  %v2473_v31 = vadd.f32 %v2432_v17, %v2251_v18 }
 0x31d   : > { %6013 = vmatmul.msk.bf16.gmra.mxu3 %vm498_vm4, %v7619_v33 }
 0x31e   : > { %v2509_v15 = vadd.f32 %v7363_v7, %v2473_v31  ;;  %6040 = vmatmul.msk.bf16.gmra.mxu0 %vm498_vm4, %v7617_v25 }
 0x31f   : > { %v1993_v5 = vpop.f32.mrf.mxu2 }
 0x320   : > { %v2215_v50 = vpop.f32.mrf.mxu3  ;;  %v2541_v20 = vmax.f32 %v2509_v15, 0.0  ;;  %v2031_v36 = vadd.f32 %v1993_v5, %v9771_v58  ;;  %v6243_v15 = vld [vmem:[%s9681_s3 + $0x58] sm:$0xff]  ;;  %v6245_v5 = vld [vmem:[%s9681_s3 + $0x68] sm:$0xff] }
 0x321   : > { %v7630_v29 = vpop.f32.mrf.mxu1  ;;  %v2659_v49 = vld [vmem:[#allocation3 + $0x141] sm:$0xff]  ;;  %3804 = vmatpush.bf16.msra.mxu2 %v6243_v15  ;;  %4039 = vmatpush.bf16.msra.mxu3 %v6245_v5 }
 0x322   : > { %2574 = vst.msk [vmem:[#allocation3 + $0x151] sm:$0xff] %vm498_vm4, %v2541_v20  ;;  %v7633_v16 = vpack.c.bf16 %v2659_v49, %v2658_v19  ;;  %v2253_v45 = vadd.f32 %v2215_v50, %v2031_v36  ;;  %v2999_v58 = vld [vmem:[#allocation3 + $0xc2] sm:$0xff]  ;;  %v3000_v36 = vld [vmem:[#allocation3 + $0xca] sm:$0xff] }
 0x323   : > { %v2434_v42 = vpop.f32.mrf.mxu0  ;;  %v7675_v61 = vpack.c.bf16 %v3000_v36, %v2999_v58 }
 0x324   : > { %v2474_v3 = vadd.f32 %v2434_v42, %v2252_v51  ;;  %5968 = vmatmul.msk.bf16.gmra.mxu1 %vm498_vm4, %v7633_v16 }
 0x325   : > { %9773 = vst [vmem:[#allocation10_spill] sm:$0xff] %v7675_v61 }
 0x326   : > { %v2510_v37 = vadd.f32 %v7363_v7, %v2474_v3  ;;  %v2597_v3 = vld [vmem:[#allocation3 + $0xc8] sm:$0xff] }
 0x327   : > { %v1995_v34 = vpop.f32.mrf.mxu2 }
 0x328   : > { %v2217_v11 = vpop.f32.mrf.mxu3  ;;  %v2542_v22 = vmax.f32 %v2510_v37, 0.0  ;;  %v2032_v26 = vadd.f32 %v1995_v34, %v1809_v23  ;;  %v2596_v34 = vld [vmem:[#allocation3 + $0xc0] sm:$0xff] }
 0x329   : > { %v7639_v8 = vpop.f32.mrf.mxu1  ;;  %v2660_v40 = vld [vmem:[#allocation3 + $0x151] sm:$0xff]  ;;  %v7673_v48 = vpack.c.bf16 %v2597_v3, %v2596_v34 }
 0x32a   : > { %2575 = vst.msk [vmem:[#allocation3 + $0x159] sm:$0xff] %vm498_vm4, %v2542_v22  ;;  %v2254_v31 = vadd.f32 %v2217_v11, %v2032_v26  ;;  %v1811_v22 = vadd.f32 %v7506_v46, %v7345_v6 }
 0x32b   : > { %v2437_v57 = vpop.f32.mrf.mxu0 }
 0x32c   : > { %5986 = vmatmul.msk.bf16.gmra.mxu2 %vm498_vm4, %v7642_v60  ;;  %v2475_v9 = vadd.f32 %v2437_v57, %v2253_v45  ;;  %v6249_v45 = vld [vmem:[%s9681_s3 + $0x88] sm:$0xff] }
 0x32d   : > { %6014 = vmatmul.msk.bf16.gmra.mxu3 %vm498_vm4, %v7644_v4  ;;  %4507 = vmatpush.bf16.msra.mxu1 %v6249_v45 }
 0x32e   : > { %v2511_v10 = vadd.f32 %v7363_v7, %v2475_v9  ;;  %6041 = vmatmul.msk.bf16.gmra.mxu0 %vm498_vm4, %v7642_v60 }
 0x32f   : > { %v1998_v18 = vpop.f32.mrf.mxu2 }
 0x330   : > { %v2220_v17 = vpop.f32.mrf.mxu3  ;;  %v2543_v39 = vmax.f32 %v2511_v10, 0.0  ;;  %v2033_v19 = vadd.f32 %v1998_v18, %v7329_v62  ;;  %v6247_v62 = vld [vmem:[%s9681_s3 + $0x78] sm:$0xff] }
 0x331   : > { %v7655_v27 = vpop.f32.mrf.mxu1  ;;  %v2661_v28 = vld [vmem:[#allocation3 + $0x159] sm:$0xff]  ;;  %4273 = vmatpush.bf16.msra.mxu0 %v6247_v62 }
 0x332   : > { %2576 = vst.msk [vmem:[#allocation3 + $0x169] sm:$0xff] %vm498_vm4, %v2543_v39  ;;  %v7658_v44 = vpack.c.bf16 %v2661_v28, %v2660_v40  ;;  %v2255_v24 = vadd.f32 %v2220_v17, %v2033_v19  ;;  %v3001_v19 = vld [vmem:[#allocation3 + $0xda] sm:$0xff] }
 0x333   : > { %v2439_v50 = vpop.f32.mrf.mxu0 }
 0x334   : > { %v2476_v20 = vadd.f32 %v2439_v50, %v2254_v31  ;;  %5969 = vmatmul.msk.bf16.gmra.mxu1 %vm498_vm4, %v7658_v44 }
 0x336   : > { %v2512_v49 = vadd.f32 %v7363_v7, %v2476_v20 }
 0x337   : > { %v2000_v51 = vpop.f32.mrf.mxu2 }
 0x338   : > { %v2222_v42 = vpop.f32.mrf.mxu3  ;;  %v2544_v37 = vmax.f32 %v2512_v49, 0.0  ;;  %v2034_v57 = vadd.f32 %v2000_v51, %v1811_v22  ;;  %v3002_v49 = vld [vmem:[#allocation3 + $0xe2] sm:$0xff] }
 0x339   : > { %v7670_v11 = vpop.f32.mrf.mxu1  ;;  %v2662_v18 = vld [vmem:[#allocation3 + $0x169] sm:$0xff]  ;;  %v7708_v34 = vpack.c.bf16 %v3002_v49, %v3001_v19  ;;  %v3452_v22 = vld [vmem:[#allocation3 + $0x21] sm:$0xff]  ;;  %v3454_v49 = vld [vmem:[#allocation3 + $0x39] sm:$0xff] }
 0x33a   : > { %2577 = vst.msk [vmem:[#allocation3 + $0x171] sm:$0xff] %vm498_vm4, %v2544_v37  ;;  %v2256_v39 = vadd.f32 %v2222_v42, %v2034_v57  ;;  %v2598_v42 = vld [vmem:[#allocation3 + $0xd8] sm:$0xff] }
 0x33b   : > { %v2442_v7 = vpop.f32.mrf.mxu0  ;;  %9776 = vst [vmem:[#allocation13_spill] sm:$0xff] %v7708_v34  ;;  %v3451_v57 = vld [vmem:[#allocation3 + $0x19] sm:$0xff] }
 0x33c   : > { %5987 = vmatmul.msk.bf16.gmra.mxu2 %vm498_vm4, %v7673_v48  ;;  %v2477_v59 = vadd.f32 %v2442_v7, %v2255_v24 }
 0x33d   : > { %6015 = vmatmul.msk.bf16.gmra.mxu3 %vm498_vm4, %v7675_v61 }
 0x33e   : > { %v2513_v23 = vadd.f32 %v6430_v53, %v2477_v59  ;;  %6042 = vmatmul.msk.bf16.gmra.mxu0 %vm498_vm4, %v7673_v48 }
 0x33f   : > { %v2903_v6 = vpop.f32.mrf.mxu2 }
 0x340   : > { %v3105_v46 = vpop.f32.mrf.mxu3  ;;  %v2904_v9 = vadd.f32 %v2903_v6, %v7515_v12  ;;  %v2545_v26 = vmax.f32 %v2513_v23, 0.0  ;;  %v2599_v12 = vld [vmem:[#allocation3 + $0xe0] sm:$0xff]  ;;  %v3483_v23 = vpack.c.bf16 %v3452_v22, %v3451_v57  ;;  %v2603_v57 = vld [vmem:[#allocation3 + $0x110] sm:$0xff] }
 0x341   : > { %v7695_v10 = vpop.f32.mrf.mxu1  ;;  %v2663_v17 = vld [vmem:[#allocation3 + $0x171] sm:$0xff]  ;;  %v7706_v37 = vpack.c.bf16 %v2599_v12, %v2598_v42 }
 0x342   : > { %v3185_v40 = vadd.f32 %v3105_v46, %v2904_v9  ;;  %2578 = vst.msk [vmem:[#allocation3 + $0x181] sm:$0xff] %vm498_vm4, %v2545_v26  ;;  %v7698_v28 = vpack.c.bf16 %v2663_v17, %v2662_v18  ;;  %v2601_v18 = vld [vmem:[#allocation3 + $0xf8] sm:$0xff] }
 0x343   : > { %v2444_v31 = vpop.f32.mrf.mxu0  ;;  %9775 = vst [vmem:[#allocation14_spill] sm:$0xff] %v7706_v37  ;;  %v3003_v17 = vld [vmem:[#allocation3 + $0xf2] sm:$0xff] }
 0x344   : > { %9774 = vst [vmem:[#allocation11_spill] sm:$0xff] %v7698_v28  ;;  %v2478_v15 = vadd.f32 %v2444_v31, %v2256_v39  ;;  %5970 = vmatmul.msk.bf16.gmra.mxu1 %vm498_vm4, %v7698_v28  ;;  %v3004_v39 = vld [vmem:[#allocation3 + $0xfa] sm:$0xff]  ;;  %v2600_v31 = vld [vmem:[#allocation3 + $0xf0] sm:$0xff] }
 0x345   : > { %v3453_v42 = vld [vmem:[#allocation3 + $0x31] sm:$0xff] }
 0x346   : > { %v2514_v5 = vadd.f32 %v6430_v53, %v2478_v15 }
 0x347   : > { %v2905_v50 = vpop.f32.mrf.mxu2 }
 0x348   : > { %v3107_v20 = vpop.f32.mrf.mxu3  ;;  %v2906_v51 = vadd.f32 %v2905_v50, %v7523_v2  ;;  %v2546_v3 = vmax.f32 %v2514_v5, 0.0  ;;  %v7727_v5 = vpack.c.bf16 %v2601_v18, %v2600_v31  ;;  %v7729_v50 = vpack.c.bf16 %v3004_v39, %v3003_v17 }
 0x349   : > { %v7703_v58 = vpop.f32.mrf.mxu1 }
 0x34a   : > { %v3186_v36 = vadd.f32 %v3107_v20, %v2906_v51  ;;  %2579 = vst.msk [vmem:[#allocation3 + $0x189] sm:$0xff] %vm498_vm4, %v2546_v3 }
 0x34b   : > { %v3339_v24 = vpop.f32.mrf.mxu0  ;;  %9777 = vst [vmem:[#allocation15_spill] sm:$0xff] %v7727_v5 }
 0x34c   : > { %5988 = vmatmul.msk.bf16.gmra.mxu2 %vm498_vm4, %v7706_v37  ;;  %v7714_v62 = vadd.f32 %v3339_v24, %v3185_v40  ;;  %9778 = vst [vmem:[#allocation16_spill] sm:$0xff] %v7729_v50  ;;  %v7742_v24 = vpack.c.bf16 %v3454_v49, %v3453_v42 }
 0x34d   : > { %6016 = vmatmul.msk.bf16.gmra.mxu3 %vm498_vm4, %v7708_v34  ;;  %v3014_v34 = vld [vmem:[#allocation3 + $0x172] sm:$0xff] }
 0x34e   : > { %6043 = vmatmul.msk.bf16.gmra.mxu0 %vm498_vm4, %v7706_v37 }
 0x34f   : > { %v2908_v2 = vpop.f32.mrf.mxu2 }
 0x350   : > { %v3110_v7 = vpop.f32.mrf.mxu3  ;;  %v2909_v59 = vadd.f32 %v2908_v2, %v7536_v47 }
 0x351   : > { %v7719_v45 = vpop.f32.mrf.mxu1  ;;  %v3248_v61 = vld [vmem:[#allocation3 + $0x188] sm:$0xff] }
 0x352   : > { %v3187_v53 = vadd.f32 %v3110_v7, %v2909_v59 }
 0x353   : > { %v3341_v6 = vpop.f32.mrf.mxu0 }
 0x354   : > { %v7721_v46 = vadd.f32 %v3341_v6, %v3186_v36  ;;  %6063 = vmatmul.msk.bf16.vlgmr.msrb.gmra.mxu1 %vm498_vm4, %v3483_v23  ;;  %v3006_v23 = vld [vmem:[#allocation3 + $0x112] sm:$0xff] }
 0x357   : > { %v2910_v9 = vpop.f32.mrf.mxu2 }
 0x358   : > { %v3112_v26 = vpop.f32.mrf.mxu3  ;;  %v2911_v40 = vadd.f32 %v2910_v9, %v7542_v41 }
 0x359   : > { %v7725_v15 = vpop.f32.mrf.mxu1 }
 0x35a   : > { %v3188_v47 = vadd.f32 %v3112_v26, %v2911_v40 }
 0x35b   : > { %v3344_v20 = vpop.f32.mrf.mxu0 }
 0x35c   : > { %5989 = vmatmul.msk.bf16.gmra.mxu2 %vm498_vm4, %v7727_v5  ;;  %v7735_v12 = vadd.f32 %v3344_v20, %v3187_v53  ;;  %v3005_v53 = vld [vmem:[#allocation3 + $0x10a] sm:$0xff] }
 0x35d   : > { %6017 = vmatmul.msk.bf16.gmra.mxu3 %vm498_vm4, %v7729_v50  ;;  %v7753_v17 = vpack.c.bf16 %v3006_v23, %v3005_v53  ;;  %v3008_v53 = vld [vmem:[#allocation3 + $0x12a] sm:$0xff] }
 0x35e   : > { %6044 = vmatmul.msk.bf16.gmra.mxu0 %vm498_vm4, %v7727_v5 }
 0x35f   : > { %v2913_v41 = vpop.f32.mrf.mxu2  ;;  %9780 = vst [vmem:[#allocation9_spill] sm:$0xff] %v7753_v17 }
 0x360   : > { %v3115_v19 = vpop.f32.mrf.mxu3  ;;  %v2914_v51 = vadd.f32 %v2913_v41, %v7558_v54  ;;  %v2602_v54 = vld [vmem:[#allocation3 + $0x108] sm:$0xff] }
 0x361   : > { %v7740_v3 = vpop.f32.mrf.mxu1  ;;  %v7751_v18 = vpack.c.bf16 %v2603_v57, %v2602_v54  ;;  %v3007_v57 = vld [vmem:[#allocation3 + $0x122] sm:$0xff] }
 0x362   : > { %v3189_v36 = vadd.f32 %v3115_v19, %v2914_v51  ;;  %v3455_v19 = vld [vmem:[#allocation3 + $0x49] sm:$0xff] }
 0x363   : > { %v3346_v2 = vpop.f32.mrf.mxu0  ;;  %9779 = vst [vmem:[#allocation8_spill] sm:$0xff] %v7751_v18 }
 0x364   : > { %v7744_v7 = vadd.f32 %v3346_v2, %v3188_v47  ;;  %6064 = vmatmul.msk.bf16.gmra.mxu1 %vm498_vm4, %v7742_v24  ;;  %v3456_v47 = vld [vmem:[#allocation3 + $0x51] sm:$0xff] }
 0x365   : > { %v7766_v51 = vpack.c.bf16 %v3456_v47, %v3455_v19 }
 0x367   : > { %v2915_v22 = vpop.f32.mrf.mxu2 }
 0x368   : > { %v3117_v59 = vpop.f32.mrf.mxu3  ;;  %v2916_v6 = vadd.f32 %v2915_v22, %v7564_v30 }
 0x369   : > { %v7749_v9 = vpop.f32.mrf.mxu1 }
 0x36a   : > { %v3190_v26 = vadd.f32 %v3117_v59, %v2916_v6  ;;  %v2605_v59 = vld [vmem:[#allocation3 + $0x128] sm:$0xff] }
 0x36b   : > { %v3349_v39 = vpop.f32.mrf.mxu0 }
 0x36c   : > { %5990 = vmatmul.msk.bf16.gmra.mxu2 %vm498_vm4, %v7751_v18  ;;  %v7759_v40 = vadd.f32 %v3349_v39, %v3189_v36 }
 0x36d   : > { %6018 = vmatmul.msk.bf16.gmra.mxu3 %vm498_vm4, %v7753_v17 }
 0x36e   : > { %6045 = vmatmul.msk.bf16.gmra.mxu0 %vm498_vm4, %v7751_v18  ;;  %v3012_v18 = vld [vmem:[#allocation3 + $0x15a] sm:$0xff] }
 0x36f   : > { %v2918_v30 = vpop.f32.mrf.mxu2 }
 0x370   : > { %v3120_v31 = vpop.f32.mrf.mxu3  ;;  %v2919_v20 = vadd.f32 %v2918_v30, %v7580_v38  ;;  %v2604_v38 = vld [vmem:[#allocation3 + $0x120] sm:$0xff]  ;;  %v7777_v30 = vpack.c.bf16 %v3008_v53, %v3007_v57 }
 0x371   : > { %v7764_v41 = vpop.f32.mrf.mxu1  ;;  %v7775_v39 = vpack.c.bf16 %v2605_v59, %v2604_v38  ;;  %v2607_v38 = vld [vmem:[#allocation3 + $0x140] sm:$0xff] }
 0x372   : > { %v3191_v49 = vadd.f32 %v3120_v31, %v2919_v20  ;;  %9782 = vst [vmem:[#allocation17_spill] sm:$0xff] %v7777_v30  ;;  %v3458_v20 = vld [vmem:[#allocation3 + $0x69] sm:$0xff] }
 0x373   : > { %v3351_v42 = vpop.f32.mrf.mxu0  ;;  %9781 = vst [vmem:[#allocation12_spill] sm:$0xff] %v7775_v39 }
 0x374   : > { %v7768_v2 = vadd.f32 %v3351_v42, %v3190_v26  ;;  %6065 = vmatmul.msk.bf16.gmra.mxu1 %vm498_vm4, %v7766_v51 }
 0x377   : > { %v2920_v36 = vpop.f32.mrf.mxu2 }
 0x378   : > { %v3122_v22 = vpop.f32.mrf.mxu3  ;;  %v2921_v23 = vadd.f32 %v2920_v36, %v7589_v21  ;;  %v3457_v36 = vld [vmem:[#allocation3 + $0x61] sm:$0xff] }
 0x379   : > { %v7773_v6 = vpop.f32.mrf.mxu1  ;;  %v7790_v59 = vpack.c.bf16 %v3458_v20, %v3457_v36 }
 0x37a   : > { %v3192_v54 = vadd.f32 %v3122_v22, %v2921_v23 }
 0x37b   : > { %v3354_v26 = vpop.f32.mrf.mxu0 }
 0x37c   : > { %5991 = vmatmul.msk.bf16.gmra.mxu2 %vm498_vm4, %v7775_v39  ;;  %v7783_v31 = vadd.f32 %v3354_v26, %v3191_v49  ;;  %v3009_v26 = vld [vmem:[#allocation3 + $0x13a] sm:$0xff] }
 0x37d   : > { %6019 = vmatmul.msk.bf16.gmra.mxu3 %vm498_vm4, %v7777_v30  ;;  %v3010_v30 = vld [vmem:[#allocation3 + $0x142] sm:$0xff] }
 0x37e   : > { %6046 = vmatmul.msk.bf16.gmra.mxu0 %vm498_vm4, %v7775_v39  ;;  %v7801_v20 = vpack.c.bf16 %v3010_v30, %v3009_v26  ;;  %v3459_v30 = vld [vmem:[#allocation3 + $0x79] sm:$0xff] }
 0x37f   : > { %v2923_v21 = vpop.f32.mrf.mxu2 }
 0x380   : > { %v3125_v47 = vpop.f32.mrf.mxu3  ;;  %v2924_v19 = vadd.f32 %v2923_v21, %v7605_v63  ;;  %v2606_v63 = vld [vmem:[#allocation3 + $0x138] sm:$0xff]  ;;  %9784 = vst [vmem:[#allocation19_spill] sm:$0xff] %v7801_v20 }
 0x381   : > { %v7788_v42 = vpop.f32.mrf.mxu1 }
 0x382   : > { %v3193_v22 = vadd.f32 %v3125_v47, %v2924_v19  ;;  %v7799_v47 = vpack.c.bf16 %v2607_v38, %v2606_v63 }
 0x383   : > { %v3356_v57 = vpop.f32.mrf.mxu0 }
 0x384   : > { %v7792_v53 = vadd.f32 %v3356_v57, %v3192_v54  ;;  %6066 = vmatmul.msk.bf16.gmra.mxu1 %vm498_vm4, %v7790_v59  ;;  %9783 = vst [vmem:[#allocation18_spill] sm:$0xff] %v7799_v47  ;;  %v3460_v57 = vld [vmem:[#allocation3 + $0x81] sm:$0xff] }
 0x385   : > { %v7814_v38 = vpack.c.bf16 %v3460_v57, %v3459_v30 }
 0x387   : > { %v2925_v49 = vpop.f32.mrf.mxu2 }
 0x388   : > { %v3127_v23 = vpop.f32.mrf.mxu3  ;;  %v2926_v39 = vadd.f32 %v2925_v49, %v7614_v1 }
 0x389   : > { %v7797_v21 = vpop.f32.mrf.mxu1 }
 0x38a   : > { %v3194_v17 = vadd.f32 %v3127_v23, %v2926_v39 }
 0x38b   : > { %v3359_v54 = vpop.f32.mrf.mxu0 }
 0x38c   : > { %5992 = vmatmul.msk.bf16.gmra.mxu2 %vm498_vm4, %v7799_v47  ;;  %v7807_v19 = vadd.f32 %v3359_v54, %v3193_v22  ;;  %v2609_v22 = vld [vmem:[#allocation3 + $0x158] sm:$0xff] }
 0x38d   : > { %6020 = vmatmul.msk.bf16.gmra.mxu3 %vm498_vm4, %v7801_v20  ;;  %v3011_v54 = vld [vmem:[#allocation3 + $0x152] sm:$0xff] }
 0x38e   : > { %6047 = vmatmul.msk.bf16.gmra.mxu0 %vm498_vm4, %v7799_v47 }
 0x38f   : > { %v2928_v1 = vpop.f32.mrf.mxu2 }
 0x390   : > { %v3130_v36 = vpop.f32.mrf.mxu3  ;;  %v2929_v39 = vadd.f32 %v2928_v1, %v7630_v29  ;;  %v6242_v29 = vld [vmem:[%s9681_s3 + $0x50] sm:$0xff]  ;;  %v6244_v1 = vld [vmem:[%s9681_s3 + $0x60] sm:$0xff] }
 0x391   : > { %v7812_v49 = vpop.f32.mrf.mxu1  ;;  %3805 = vmatpush.bf16.msra.mxu2 %v6242_v29  ;;  %4040 = vmatpush.bf16.msra.mxu3 %v6244_v1  ;;  %v3462_v29 = vld [vmem:[#allocation3 + $0x99] sm:$0xff] }
 0x392   : > { %v3195_v23 = vadd.f32 %v3130_v36, %v2929_v39 }
 0x393   : > { %v3361_v26 = vpop.f32.mrf.mxu0 }
 0x394   : > { %v7816_v63 = vadd.f32 %v3361_v26, %v3194_v17  ;;  %6067 = vmatmul.msk.bf16.gmra.mxu1 %vm498_vm4, %v7814_v38  ;;  %v2608_v17 = vld [vmem:[#allocation3 + $0x150] sm:$0xff]  ;;  %v7831_v26 = vpack.c.bf16 %v3012_v18, %v3011_v54 }
 0x395   : > { %v7829_v30 = vpack.c.bf16 %v2609_v22, %v2608_v17  ;;  %v3461_v18 = vld [vmem:[#allocation3 + $0x91] sm:$0xff] }
 0x396   : > { %9786 = vst [vmem:[#allocation21_spill] sm:$0xff] %v7831_v26  ;;  %v7844_v1 = vpack.c.bf16 %v3462_v29, %v3461_v18 }
 0x397   : > { %v2930_v20 = vpop.f32.mrf.mxu2  ;;  %9785 = vst [vmem:[#allocation20_spill] sm:$0xff] %v7829_v30 }
 0x398   : > { %v3132_v47 = vpop.f32.mrf.mxu3  ;;  %v2931_v36 = vadd.f32 %v2930_v20, %v7639_v8 }
 0x399   : > { %v7827_v57 = vpop.f32.mrf.mxu1 }
 0x39a   : > { %v3196_v39 = vadd.f32 %v3132_v47, %v2931_v36 }
 0x39b   : > { %v3364_v50 = vpop.f32.mrf.mxu0 }
 0x39c   : > { %5993 = vmatmul.msk.bf16.gmra.mxu2 %vm498_vm4, %v7829_v30  ;;  %v7837_v5 = vadd.f32 %v3364_v50, %v3195_v23 }
 0x39d   : > { %6021 = vmatmul.msk.bf16.gmra.mxu3 %vm498_vm4, %v7831_v26  ;;  %v2611_v26 = vld [vmem:[#allocation3 + $0x170] sm:$0xff] }
 0x39e   : > { %6048 = vmatmul.msk.bf16.gmra.mxu0 %vm498_vm4, %v7829_v30  ;;  %v3013_v30 = vld [vmem:[#allocation3 + $0x16a] sm:$0xff] }
 0x39f   : > { %v2933_v8 = vpop.f32.mrf.mxu2  ;;  %v7855_v29 = vpack.c.bf16 %v3014_v34, %v3013_v30  ;;  %v3463_v34 = vld [vmem:[#allocation3 + $0xa9] sm:$0xff]  ;;  %v6246_v30 = vld [vmem:[%s9681_s3 + $0x70] sm:$0xff] }
 0x3a0   : > { %v3135_v20 = vpop.f32.mrf.mxu3  ;;  %v2934_v47 = vadd.f32 %v2933_v8, %v7655_v27  ;;  %v2610_v27 = vld [vmem:[#allocation3 + $0x168] sm:$0xff]  ;;  %4274 = vmatpush.bf16.msra.mxu0 %v6246_v30 }
 0x3a1   : > { %v7842_v22 = vpop.f32.mrf.mxu1  ;;  %9789 = vst [vmem:[#allocation24_spill] sm:$0xff] %v7855_v29  ;;  %v3466_v30 = vld [vmem:[#allocation3 + $0xc9] sm:$0xff] }
 0x3a2   : > { %v3197_v54 = vadd.f32 %v3135_v20, %v2934_v47  ;;  %v7853_v20 = vpack.c.bf16 %v2611_v26, %v2610_v27 }
 0x3a3   : > { %v3366_v36 = vpop.f32.mrf.mxu0 }
 0x3a4   : > { %v7846_v17 = vadd.f32 %v3366_v36, %v3196_v39  ;;  %6068 = vmatmul.msk.bf16.gmra.mxu1 %vm498_vm4, %v7844_v1  ;;  %9788 = vst [vmem:[#allocation23_spill] sm:$0xff] %v7853_v20  ;;  %v3464_v36 = vld [vmem:[#allocation3 + $0xb1] sm:$0xff] }
 0x3a6   : > { %9787 = vst [vmem:[#allocation22_spill] sm:$0xff] %v7846_v17 }
 0x3a7   : > { %v2935_v50 = vpop.f32.mrf.mxu2 }
 0x3a8   : > { %v3137_v23 = vpop.f32.mrf.mxu3  ;;  %v2936_v28 = vadd.f32 %v2935_v50, %v7670_v11 }
 0x3a9   : > { %v7851_v8 = vpop.f32.mrf.mxu1 }
 0x3aa   : > { %v3198_v37 = vadd.f32 %v3137_v23, %v2936_v28  ;;  %v7871_v23 = vpack.c.bf16 %v3464_v36, %v3463_v34 }
 0x3ab   : > { %v3369_v39 = vpop.f32.mrf.mxu0 }
 0x3ac   : > { %5994 = vmatmul.msk.bf16.gmra.mxu2 %vm498_vm4, %v7853_v20  ;;  %v7861_v47 = vadd.f32 %v3369_v39, %v3197_v54 }
 0x3ad   : > { %6022 = vmatmul.msk.bf16.gmra.mxu3 %vm498_vm4, %v7855_v29 }
 0x3ae   : > { %9790 = vst [vmem:[#allocation25_spill] sm:$0xff] %v7861_v47  ;;  %6049 = vmatmul.msk.bf16.gmra.mxu0 %vm498_vm4, %v7853_v20 }
 0x3af   : > { %v2938_v11 = vpop.f32.mrf.mxu2 }
 0x3b0   : > { %v3140_v18 = vpop.f32.mrf.mxu3  ;;  %v2939_v28 = vadd.f32 %v2938_v11, %v7695_v10  ;;  %v3685_v10 = vld [vmem:[#allocation3 + $0x1a] sm:$0xff]  ;;  %v3686_v11 = vld [vmem:[#allocation3 + $0x22] sm:$0xff] }
 0x3b1   : > { %v7866_v26 = vpop.f32.mrf.mxu1 }
 0x3b2   : > { %v3199_v50 = vadd.f32 %v3140_v18, %v2939_v28  ;;  %v3717_v18 = vpack.c.bf16 %v3686_v11, %v3685_v10  ;;  %v3247_v28 = vld [vmem:[#allocation3 + $0x180] sm:$0xff] }
 0x3b3   : > { %v3371_v54 = vpop.f32.mrf.mxu0  ;;  %v7885_v34 = vpack.c.bf16 %v3248_v61, %v3247_v28  ;;  %v3687_v28 = vld [vmem:[#allocation3 + $0x32] sm:$0xff] }
 0x3b4   : > { %v7873_v27 = vadd.f32 %v3371_v54, %v3198_v37  ;;  %6069 = vmatmul.msk.bf16.gmra.mxu1 %vm498_vm4, %v7871_v23 }
 0x3b5   : > { %9792 = vst [vmem:[#allocation27_spill] sm:$0xff] %v7885_v34 }
 0x3b7   : > { %v2940_v39 = vpop.f32.mrf.mxu2 }
 0x3b8   : > { %v3142_v29 = vpop.f32.mrf.mxu3  ;;  %v2941_v20 = vadd.f32 %v2940_v39, %v7703_v58  ;;  %v6248_v58 = vld [vmem:[%s9681_s3 + $0x80] sm:$0xff] }
 0x3b9   : > { %v7878_v47 = vpop.f32.mrf.mxu1  ;;  %4508 = vmatpush.bf16.msra.mxu1 %v6248_v58  ;;  %v3688_v58 = vld [vmem:[#allocation3 + $0x3a] sm:$0xff] }
 0x3ba   : > { %v3200_v17 = vadd.f32 %v3142_v29, %v2941_v20 }
 0x3bb   : > { %v3374_v36 = vpop.f32.mrf.mxu0 }
 0x3bc   : > { %6091 = vmatmul.msk.bf16.vlgmr.msra.gmra.mxu2 %vm498_vm4, %v3717_v18  ;;  %v7883_v37 = vadd.f32 %v3374_v36, %v3199_v50 }
 0x3bd   : > { %6119 = vmatmul.msk.bf16.vlgmr.msra.gmra.mxu3 %vm498_vm4, %v7526_v32  ;;  %v3465_v32 = vld [vmem:[#allocation3 + $0xc1] sm:$0xff] }
 0x3be   : > { %9791 = vst [vmem:[#allocation26_spill] sm:$0xff] %v7883_v37  ;;  %6050 = vmatmul.msk.bf16.gmra.mxu0 %vm498_vm4, %v7885_v34  ;;  %v7895_v10 = vpack.c.bf16 %v3466_v30, %v3465_v32 }
 0x3bf   : > { %v2943_v20 = vpop.f32.mrf.mxu2 }
 0x3c0   : > { %v3145_v29 = vpop.f32.mrf.mxu3  ;;  %v2944_v54 = vadd.f32 %v2943_v20, %v7719_v45  ;;  %v7904_v20 = vpack.c.bf16 %v3688_v58, %v3687_v28 }
 0x3c1   : > { %v7893_v39 = vpop.f32.mrf.mxu1 }
 0x3c2   : > { %v3201_v50 = vadd.f32 %v3145_v29, %v2944_v54  ;;  %9793 = vst [vmem:[#allocation28_spill] sm:$0xff] %v7904_v20 }
 0x3c3   : > { %v3376_v61 = vpop.f32.mrf.mxu0 }
 0x3c4   : > { %v7897_v11 = vadd.f32 %v3376_v61, %v3200_v17  ;;  %6070 = vmatmul.msk.bf16.gmra.mxu1 %vm498_vm4, %v7895_v10  ;;  %v3467_v61 = vld [vmem:[#allocation3 + $0xd9] sm:$0xff] }
 0x3c7   : > { %v2945_v18 = vpop.f32.mrf.mxu2 }
 0x3c8   : > { %v3147_v36 = vpop.f32.mrf.mxu3  ;;  %v2946_v34 = vadd.f32 %v2945_v18, %v7725_v15  ;;  %v3468_v15 = vld [vmem:[#allocation3 + $0xe1] sm:$0xff] }
 0x3c9   : > { %v7902_v37 = vpop.f32.mrf.mxu1  ;;  %v7918_v28 = vpack.c.bf16 %v3468_v15, %v3467_v61 }
 0x3ca   : > { %v3202_v45 = vadd.f32 %v3147_v36, %v2946_v34 }
 0x3cb   : > { %v3379_v29 = vpop.f32.mrf.mxu0 }
 0x3cc   : > { %6092 = vmatmul.msk.bf16.gmra.mxu2 %vm498_vm4, %v7904_v20  ;;  %v7910_v17 = vadd.f32 %v3379_v29, %v3201_v50 }
 0x3cd   : > { %6120 = vmatmul.msk.bf16.gmra.mxu3 %vm498_vm4, %v7545_v56 }
 0x3ce   : > { %6147 = vmatmul.msk.bf16.vlgmr.msra.gmra.mxu0 %vm498_vm4, %v7742_v24 }
 0x3cf   : > { %v2948_v30 = vpop.f32.mrf.mxu2 }
 0x3d0   : > { %v3150_v54 = vpop.f32.mrf.mxu3  ;;  %v2949_v32 = vadd.f32 %v2948_v30, %v7740_v3 }
 0x3d1   : > { %v3573_v34 = vpop.f32.mrf.mxu1 }
 0x3d2   : > { %v3203_v18 = vadd.f32 %v3150_v54, %v2949_v32  ;;  %v7916_v36 = vadd.f32 %v3573_v34, %v7714_v62 }
 0x3d3   : > { %v3381_v58 = vpop.f32.mrf.mxu0 }
 0x3d4   : > { %v7920_v56 = vadd.f32 %v3381_v58, %v3202_v45  ;;  %6071 = vmatmul.msk.bf16.gmra.mxu1 %vm498_vm4, %v7918_v28 }
 0x3d7   : > { %v2950_v24 = vpop.f32.mrf.mxu2 }
 0x3d8   : > { %v3152_v50 = vpop.f32.mrf.mxu3  ;;  %v2951_v29 = vadd.f32 %v2950_v24, %v7749_v9  ;;  %v3470_v9 = vld [vmem:[#allocation3 + $0xf9] sm:$0xff] }
 0x3d9   : > { %v3575_v20 = vpop.f32.mrf.mxu1 }
 0x3da   : > { %v3204_v3 = vadd.f32 %v3152_v50, %v2951_v29  ;;  %v7926_v30 = vadd.f32 %v3575_v20, %v7721_v46  ;;  %v3469_v46 = vld [vmem:[#allocation3 + $0xf1] sm:$0xff] }
 0x3db   : > { %v3384_v54 = vpop.f32.mrf.mxu0 }
 0x3dc   : > { %6093 = vmatmul.msk.bf16.gmra.mxu2 %vm498_vm4, %v7547_v0  ;;  %v7932_v62 = vadd.f32 %v3384_v54, %v3203_v18  ;;  %v7940_v0 = vpack.c.bf16 %v3470_v9, %v3469_v46 }
 0x3dd   : > { %6121 = vmatmul.msk.bf16.gmra.mxu3 %vm498_vm4, %v7567_v43 }
 0x3de   : > { %6148 = vmatmul.msk.bf16.gmra.mxu0 %vm498_vm4, %v7766_v51 }
 0x3df   : > { %v2953_v45 = vpop.f32.mrf.mxu2 }
 0x3e0   : > { %v3155_v15 = vpop.f32.mrf.mxu3  ;;  %v2954_v32 = vadd.f32 %v2953_v45, %v7764_v41 }
 0x3e1   : > { %v3578_v34 = vpop.f32.mrf.mxu1 }
 0x3e2   : > { %v3205_v20 = vadd.f32 %v3155_v15, %v2954_v32  ;;  %v7938_v61 = vadd.f32 %v3578_v34, %v7735_v12 }
 0x3e3   : > { %v3386_v58 = vpop.f32.mrf.mxu0 }
 0x3e4   : > { %v7942_v43 = vadd.f32 %v3386_v58, %v3204_v3  ;;  %6072 = vmatmul.msk.bf16.gmra.mxu1 %vm498_vm4, %v7940_v0 }
 0x3e7   : > { %v2955_v51 = vpop.f32.mrf.mxu2 }
 0x3e8   : > { %v3157_v18 = vpop.f32.mrf.mxu3  ;;  %v2956_v24 = vadd.f32 %v2955_v51, %v7773_v6 }
 0x3e9   : > { %v3580_v50 = vpop.f32.mrf.mxu1 }
 0x3ea   : > { %v3206_v41 = vadd.f32 %v3157_v18, %v2956_v24  ;;  %v7948_v29 = vadd.f32 %v3580_v50, %v7744_v7 }
 0x3eb   : > { %v3389_v54 = vpop.f32.mrf.mxu0 }
 0x3ec   : > { %6094 = vmatmul.msk.bf16.gmra.mxu2 %vm498_vm4, %v7569_v14  ;;  %v7954_v12 = vadd.f32 %v3389_v54, %v3205_v20 }
 0x3ed   : > { %6122 = vmatmul.msk.bf16.gmra.mxu3 %vm498_vm4, %v7592_v35 }
 0x3ee   : > { %6149 = vmatmul.msk.bf16.gmra.mxu0 %vm498_vm4, %v7790_v59 }
 0x3ef   : > { %v2958_v3 = vpop.f32.mrf.mxu2 }
 0x3f0   : > { %v3160_v45 = vpop.f32.mrf.mxu3  ;;  %v2959_v6 = vadd.f32 %v2958_v3, %v7788_v42 }
 0x3f1   : > { %v3583_v15 = vpop.f32.mrf.mxu1 }
 0x3f2   : > { %v3207_v9 = vadd.f32 %v3160_v45, %v2959_v6  ;;  %v7960_v7 = vadd.f32 %v3583_v15, %v7759_v40 }
 0x3f3   : > { %v3391_v32 = vpop.f32.mrf.mxu0 }
 0x3f4   : > { %v7962_v34 = vadd.f32 %v3391_v32, %v3206_v41  ;;  %6073 = vmatmul.msk.bf16.gmra.mxu1 %vm498_vm4, %v7583_v52 }
 0x3f7   : > { %v2960_v14 = vpop.f32.mrf.mxu2 }
 0x3f8   : > { %v3162_v35 = vpop.f32.mrf.mxu3  ;;  %v2961_v46 = vadd.f32 %v2960_v14, %v7797_v21 }
 0x3f9   : > { %v3585_v59 = vpop.f32.mrf.mxu1 }
 0x3fa   : > { %v3208_v20 = vadd.f32 %v3162_v35, %v2961_v46  ;;  %v7968_v58 = vadd.f32 %v3585_v59, %v7768_v2 }
 0x3fb   : > { %v3394_v42 = vpop.f32.mrf.mxu0 }
 0x3fc   : > { %6095 = vmatmul.msk.bf16.gmra.mxu2 %vm498_vm4, %v7594_v55  ;;  %v7974_v40 = vadd.f32 %v3394_v42, %v3207_v9 }
 0x3fd   : > { %6123 = vmatmul.msk.bf16.gmra.mxu3 %vm498_vm4, %v7617_v25 }
 0x3fe   : > { %6150 = vmatmul.msk.bf16.gmra.mxu0 %vm498_vm4, %v7814_v38 }
 0x3ff   : > { %v2963_v52 = vpop.f32.mrf.mxu2 }
 0x400   : > { %v3165_v51 = vpop.f32.mrf.mxu3  ;;  %v2964_v21 = vadd.f32 %v2963_v52, %v7812_v49 }
 0x401   : > { %v3588_v18 = vpop.f32.mrf.mxu1 }
 0x402   : > { %v3209_v24 = vadd.f32 %v3165_v51, %v2964_v21  ;;  %v7980_v2 = vadd.f32 %v3588_v18, %v7783_v31 }
 0x403   : > { %v3396_v50 = vpop.f32.mrf.mxu0 }
 0x404   : > { %v7982_v41 = vadd.f32 %v3396_v50, %v3208_v20  ;;  %6074 = vmatmul.msk.bf16.gmra.mxu1 %vm498_vm4, %v7608_v13  ;;  %v9794_v50 = vld [vmem:[#allocation22_spill] sm:$0xff] }
 0x407   : > { %v2965_v55 = vpop.f32.mrf.mxu2 }
 0x408   : > { %v3167_v25 = vpop.f32.mrf.mxu3  ;;  %v2966_v54 = vadd.f32 %v2965_v55, %v7827_v57 }
 0x409   : > { %v3590_v38 = vpop.f32.mrf.mxu1 }
 0x40a   : > { %v3210_v3 = vadd.f32 %v3167_v25, %v2966_v54  ;;  %v7988_v45 = vadd.f32 %v3590_v38, %v7792_v53  ;;  %v9795_v25 = vld [vmem:[#allocation10_spill] sm:$0xff] }
 0x40b   : > { %v3399_v49 = vpop.f32.mrf.mxu0 }
 0x40c   : > { %6096 = vmatmul.msk.bf16.gmra.mxu2 %vm498_vm4, %v7619_v33  ;;  %v7994_v31 = vadd.f32 %v3399_v49, %v3209_v24 }
 0x40d   : > { %6124 = vmatmul.msk.bf16.gmra.mxu3 %vm498_vm4, %v7642_v60 }
 0x40e   : > { %6151 = vmatmul.msk.bf16.gmra.mxu0 %vm498_vm4, %v7844_v1 }
 0x40f   : > { %v2968_v13 = vpop.f32.mrf.mxu2 }
 0x410   : > { %v3170_v6 = vpop.f32.mrf.mxu3  ;;  %v2969_v57 = vadd.f32 %v2968_v13, %v7842_v22  ;;  %v9797_v13 = vld [vmem:[#allocation25_spill] sm:$0xff] }
 0x411   : > { %v3593_v15 = vpop.f32.mrf.mxu1 }
 0x412   : > { %v3211_v9 = vadd.f32 %v3170_v6, %v2969_v57  ;;  %v8000_v53 = vadd.f32 %v3593_v15, %v7807_v19 }
 0x413   : > { %v3401_v32 = vpop.f32.mrf.mxu0 }
 0x414   : > { %v8002_v14 = vadd.f32 %v3401_v32, %v3210_v3  ;;  %6075 = vmatmul.msk.bf16.gmra.mxu1 %vm498_vm4, %v7633_v16 }
 0x417   : > { %v2970_v33 = vpop.f32.mrf.mxu2 }
 0x418   : > { %v3172_v60 = vpop.f32.mrf.mxu3  ;;  %v2971_v35 = vadd.f32 %v2970_v33, %v7851_v8 }
 0x419   : > { %v3595_v1 = vpop.f32.mrf.mxu1 }
 0x41a   : > { %v3212_v46 = vadd.f32 %v3172_v60, %v2971_v35  ;;  %v8008_v59 = vadd.f32 %v3595_v1, %v7816_v63 }
 0x41b   : > { %v3404_v22 = vpop.f32.mrf.mxu0 }
 0x41c   : > { %6097 = vmatmul.msk.bf16.gmra.mxu2 %vm498_vm4, %v7644_v4  ;;  %v8014_v19 = vadd.f32 %v3404_v22, %v3211_v9  ;;  %v9798_v9 = vld [vmem:[#allocation11_spill] sm:$0xff] }
 0x41d   : > { %6125 = vmatmul.msk.bf16.gmra.mxu3 %vm498_vm4, %v7673_v48  ;;  %v9800_v22 = vld [vmem:[#allocation15_spill] sm:$0xff] }
 0x41e   : > { %6152 = vmatmul.msk.bf16.gmra.mxu0 %vm498_vm4, %v7871_v23 }
 0x41f   : > { %v2973_v16 = vpop.f32.mrf.mxu2 }
 0x420   : > { %v3175_v20 = vpop.f32.mrf.mxu3  ;;  %v2974_v8 = vadd.f32 %v2973_v16, %v7866_v26 }
 0x421   : > { %v3598_v42 = vpop.f32.mrf.mxu1 }
 0x422   : > { %v3213_v52 = vadd.f32 %v3175_v20, %v2974_v8  ;;  %v8020_v63 = vadd.f32 %v3598_v42, %v7837_v5  ;;  %v9796_v5 = vld [vmem:[#allocation14_spill] sm:$0xff] }
 0x423   : > { %v3406_v51 = vpop.f32.mrf.mxu0 }
 0x424   : > { %v8022_v21 = vadd.f32 %v3406_v51, %v3212_v46  ;;  %6076 = vmatmul.msk.bf16.gmra.mxu1 %vm498_vm4, %v7658_v44  ;;  %v9799_v46 = vld [vmem:[#allocation13_spill] sm:$0xff] }
 0x427   : > { %v2975_v4 = vpop.f32.mrf.mxu2 }
 0x428   : > { %v3177_v48 = vpop.f32.mrf.mxu3  ;;  %v2976_v18 = vadd.f32 %v2975_v4, %v7878_v47  ;;  %v9801_v4 = vld [vmem:[#allocation26_spill] sm:$0xff] }
 0x429   : > { %v3600_v23 = vpop.f32.mrf.mxu1 }
 0x42a   : > { %v3214_v24 = vadd.f32 %v3177_v48, %v2976_v18  ;;  %v8028_v55 = vadd.f32 %v3600_v23, %v9794_v50 }
 0x42b   : > { %v3409_v26 = vpop.f32.mrf.mxu0 }
 0x42c   : > { %6098 = vmatmul.msk.bf16.gmra.mxu2 %vm498_vm4, %v9795_v25  ;;  %v8034_v54 = vadd.f32 %v3409_v26, %v3213_v52 }
 0x42d   : > { %6126 = vmatmul.msk.bf16.gmra.mxu3 %vm498_vm4, %v9796_v5 }
 0x42e   : > { %6153 = vmatmul.msk.bf16.gmra.mxu0 %vm498_vm4, %v7895_v10 }
 0x42f   : > { %v2978_v44 = vpop.f32.mrf.mxu2 }
 0x430   : > { %v3180_v38 = vpop.f32.mrf.mxu3  ;;  %v2979_v47 = vadd.f32 %v2978_v44, %v7893_v39 }
 0x431   : > { %v3603_v3 = vpop.f32.mrf.mxu1 }
 0x432   : > { %v3215_v49 = vadd.f32 %v3180_v38, %v2979_v47  ;;  %v8040_v6 = vadd.f32 %v3603_v3, %v9797_v13  ;;  %v9802_v38 = vld [vmem:[#allocation16_spill] sm:$0xff] }
 0x433   : > { %v3411_v57 = vpop.f32.mrf.mxu0  ;;  %v9803_v47 = vld [vmem:[#allocation8_spill] sm:$0xff] }
 0x434   : > { %v8042_v15 = vadd.f32 %v3411_v57, %v3214_v24  ;;  %6077 = vmatmul.msk.bf16.gmra.mxu1 %vm498_vm4, %v9798_v9 }
 0x437   : > { %v2980_v32 = vpop.f32.mrf.mxu2 }
 0x438   : > { %v3182_v33 = vpop.f32.mrf.mxu3  ;;  %v2981_v60 = vadd.f32 %v2980_v32, %v7902_v37  ;;  %v3482_v37 = vld [vmem:[#allocation3 + $0x189] sm:$0xff] }
 0x439   : > { %v3605_v10 = vpop.f32.mrf.mxu1 }
 0x43a   : > { %v3216_v35 = vadd.f32 %v3182_v33, %v2981_v60  ;;  %v8048_v1 = vadd.f32 %v3605_v10, %v7873_v27  ;;  %v3481_v27 = vld [vmem:[#allocation3 + $0x181] sm:$0xff]  ;;  %v9804_v60 = vld [vmem:[#allocation28_spill] sm:$0xff] }
 0x43b   : > { %v3414_v39 = vpop.f32.mrf.mxu0  ;;  %v8062_v18 = vpack.c.bf16 %v3482_v37, %v3481_v27  ;;  %v9806_v37 = vld [vmem:[#allocation12_spill] sm:$0xff] }
 0x43c   : > { %6099 = vmatmul.msk.bf16.gmra.mxu2 %vm498_vm4, %v9799_v46  ;;  %v8054_v16 = vadd.f32 %v3414_v39, %v3215_v49  ;;  %v4173_v46 = vld [vmem:[#allocation3 + $0x111] sm:$0xff] }
 0x43d   : > { %6127 = vmatmul.msk.bf16.gmra.mxu3 %vm498_vm4, %v9800_v22 }
 0x43e   : > { %6154 = vmatmul.msk.bf16.gmra.mxu0 %vm498_vm4, %v7918_v28 }
 0x43f   : > { %v3807_v20 = vpop.f32.mrf.mxu2 }
 0x440   : > { %v4042_v8 = vpop.f32.mrf.mxu3  ;;  %v3887_v42 = vadd.f32 %v3807_v20, %v7916_v36 }
 0x441   : > { %v3608_v52 = vpop.f32.mrf.mxu1 }
 0x442   : > { %v4122_v51 = vadd.f32 %v4042_v8, %v3887_v42  ;;  %v8060_v48 = vadd.f32 %v3608_v52, %v9801_v4  ;;  %v4172_v8 = vld [vmem:[#allocation3 + $0x109] sm:$0xff]  ;;  %v4391_v4 = vld [vmem:[#allocation3 + $0x52] sm:$0xff] }
 0x443   : > { %v3416_v23 = vpop.f32.mrf.mxu0  ;;  %v4195_v52 = vpack.c.bf16 %v4173_v46, %v4172_v8 }
 0x444   : > { %v8064_v24 = vadd.f32 %v3416_v23, %v3216_v35  ;;  %6078 = vmatmul.msk.bf16.gmra.mxu1 %vm498_vm4, %v8062_v18 }
 0x447   : > { %v3809_v28 = vpop.f32.mrf.mxu2 }
 0x448   : > { %v4044_v50 = vpop.f32.mrf.mxu3  ;;  %v3888_v26 = vadd.f32 %v3809_v28, %v7926_v30 }
 0x449   : > { %v3610_v25 = vpop.f32.mrf.mxu1 }
 0x44a   : > { %v4123_v36 = vadd.f32 %v4044_v50, %v3888_v26  ;;  %v8070_v5 = vadd.f32 %v3610_v25, %v7897_v11 }
 0x44b   : > { %v4276_v44 = vpop.f32.mrf.mxu0 }
 0x44c   : > { %6100 = vmatmul.msk.bf16.gmra.mxu2 %vm498_vm4, %v9802_v38  ;;  %v8076_v3 = vadd.f32 %v4276_v44, %v4122_v51  ;;  %v4390_v51 = vld [vmem:[#allocation3 + $0x4a] sm:$0xff] }
 0x44d   : > { %6128 = vmatmul.msk.bf16.gmra.mxu3 %vm498_vm4, %v9803_v47  ;;  %v4421_v26 = vpack.c.bf16 %v4391_v4, %v4390_v51  ;;  %v4177_v4 = vld [vmem:[#allocation3 + $0x141] sm:$0xff] }
 0x44e   : > { %6155 = vmatmul.msk.bf16.gmra.mxu0 %vm498_vm4, %v7940_v0 }
 0x44f   : > { %v3812_v49 = vpop.f32.mrf.mxu2 }
 0x450   : > { %v4047_v13 = vpop.f32.mrf.mxu3  ;;  %v3889_v30 = vadd.f32 %v3812_v49, %v7938_v61 }
 0x451   : > { %v3613_v57 = vpop.f32.mrf.mxu1 }
 0x452   : > { %v4124_v9 = vadd.f32 %v4047_v13, %v3889_v30  ;;  %v8082_v11 = vadd.f32 %v3613_v57, %v7910_v17  ;;  %v9805_v17 = vld [vmem:[#allocation9_spill] sm:$0xff]  ;;  %v4175_v13 = vld [vmem:[#allocation3 + $0x129] sm:$0xff] }
 0x453   : > { %v4278_v32 = vpop.f32.mrf.mxu0 }
 0x454   : > { %v8084_v33 = vadd.f32 %v4278_v32, %v4123_v36  ;;  %6175 = vmatmul.msk.bf16.vlgmr.msra.gmra.mxu1 %vm498_vm4, %v9804_v60  ;;  %v9808_v32 = vld [vmem:[#allocation18_spill] sm:$0xff] }
 0x457   : > { %v3814_v10 = vpop.f32.mrf.mxu2 }
 0x458   : > { %v4049_v35 = vpop.f32.mrf.mxu3  ;;  %v3890_v39 = vadd.f32 %v3814_v10, %v7948_v29 }
 0x459   : > { %v3615_v0 = vpop.f32.mrf.mxu1 }
 0x45a   : > { %v4125_v22 = vadd.f32 %v4049_v35, %v3890_v39  ;;  %v8090_v61 = vadd.f32 %v3615_v0, %v7920_v56  ;;  %v4392_v39 = vld [vmem:[#allocation3 + $0x62] sm:$0xff]  ;;  %v4393_v0 = vld [vmem:[#allocation3 + $0x6a] sm:$0xff] }
 0x45b   : > { %v4281_v20 = vpop.f32.mrf.mxu0  ;;  %v4422_v8 = vpack.c.bf16 %v4393_v0, %v4392_v39  ;;  %v4397_v39 = vld [vmem:[#allocation3 + $0x9a] sm:$0xff] }
 0x45c   : > { %6101 = vmatmul.msk.bf16.gmra.mxu2 %vm498_vm4, %v9805_v17  ;;  %v8096_v42 = vadd.f32 %v4281_v20, %v4124_v9  ;;  %v4174_v9 = vld [vmem:[#allocation3 + $0x121] sm:$0xff] }
 0x45d   : > { %6129 = vmatmul.msk.bf16.gmra.mxu3 %vm498_vm4, %v9806_v37  ;;  %v4196_v10 = vpack.c.bf16 %v4175_v13, %v4174_v9  ;;  %v4179_v9 = vld [vmem:[#allocation3 + $0x159] sm:$0xff] }
 0x45e   : > { %6156 = vmatmul.msk.bf16.gmra.mxu0 %vm498_vm4, %v4195_v52 }
 0x45f   : > { %v3817_v29 = vpop.f32.mrf.mxu2 }
 0x460   : > { %v4052_v27 = vpop.f32.mrf.mxu3  ;;  %v3891_v56 = vadd.f32 %v3817_v29, %v7960_v7 }
 0x461   : > { %v3618_v23 = vpop.f32.mrf.mxu1 }
 0x462   : > { %v4126_v28 = vadd.f32 %v4052_v27, %v3891_v56  ;;  %v8101_v50 = vadd.f32 %v3618_v23, %v7932_v62  ;;  %v9807_v62 = vld [vmem:[#allocation17_spill] sm:$0xff] }
 0x463   : > { %v4283_v25 = vpop.f32.mrf.mxu0 }
 0x464   : > { %v8103_v36 = vadd.f32 %v4283_v25, %v4125_v22  ;;  %6176 = vmatmul.msk.bf16.gmra.mxu1 %vm498_vm4, %v4421_v26  ;;  %v9810_v26 = vld [vmem:[#allocation20_spill] sm:$0xff] }
 0x467   : > { %v3819_v44 = vpop.f32.mrf.mxu2 }
 0x468   : > { %v4054_v38 = vpop.f32.mrf.mxu3  ;;  %v3892_v47 = vadd.f32 %v3819_v44, %v7968_v58 }
 0x469   : > { %v3620_v49 = vpop.f32.mrf.mxu1 }
 0x46a   : > { %v4127_v30 = vadd.f32 %v4054_v38, %v3892_v47  ;;  %v8108_v7 = vadd.f32 %v3620_v49, %v7942_v43  ;;  %v4395_v38 = vld [vmem:[#allocation3 + $0x82] sm:$0xff] }
 0x46b   : > { %v4286_v57 = vpop.f32.mrf.mxu0 }
 0x46c   : > { %6102 = vmatmul.msk.bf16.gmra.mxu2 %vm498_vm4, %v9807_v62  ;;  %v8114_v60 = vadd.f32 %v4286_v57, %v4126_v28  ;;  %v4176_v28 = vld [vmem:[#allocation3 + $0x139] sm:$0xff] }
 0x46d   : > { %6130 = vmatmul.msk.bf16.gmra.mxu3 %vm498_vm4, %v9808_v32  ;;  %v4197_v44 = vpack.c.bf16 %v4177_v4, %v4176_v28  ;;  %v4178_v32 = vld [vmem:[#allocation3 + $0x151] sm:$0xff]  ;;  %v3951_v28 = vld [vmem:[#allocation3 + $0x1a0] sm:$0xff] }
 0x46e   : > { %6157 = vmatmul.msk.bf16.gmra.mxu0 %vm498_vm4, %v4196_v10  ;;  %v9811_v10 = vld [vmem:[#allocation21_spill] sm:$0xff] }
 0x46f   : > { %v3822_v58 = vpop.f32.mrf.mxu2 }
 0x470   : > { %v4057_v35 = vpop.f32.mrf.mxu3  ;;  %v3893_v43 = vadd.f32 %v3822_v58, %v7980_v2  ;;  %v9812_v58 = vld [vmem:[#allocation23_spill] sm:$0xff] }
 0x471   : > { %v3623_v46 = vpop.f32.mrf.mxu1 }
 0x472   : > { %v4128_v22 = vadd.f32 %v4057_v35, %v3893_v43  ;;  %v8119_v20 = vadd.f32 %v3623_v46, %v7954_v12  ;;  %v9809_v12 = vld [vmem:[#allocation19_spill] sm:$0xff]  ;;  %v4396_v35 = vld [vmem:[#allocation3 + $0x92] sm:$0xff] }
 0x473   : > { %v4288_v17 = vpop.f32.mrf.mxu0  ;;  %v4424_v46 = vpack.c.bf16 %v4397_v39, %v4396_v35  ;;  %v4402_v35 = vld [vmem:[#allocation3 + $0xda] sm:$0xff] }
 0x474   : > { %v8121_v37 = vadd.f32 %v4288_v17, %v4127_v30  ;;  %6177 = vmatmul.msk.bf16.gmra.mxu1 %vm498_vm4, %v4422_v8  ;;  %v4180_v17 = vld [vmem:[#allocation3 + $0x169] sm:$0xff] }
 0x477   : > { %v3824_v52 = vpop.f32.mrf.mxu2 }
 0x478   : > { %v3894_v29 = vadd.f32 %v3824_v52, %v7988_v45  ;;  %v4059_v27 = vpop.f32.mrf.mxu3  ;;  %v4394_v45 = vld [vmem:[#allocation3 + $0x7a] sm:$0xff]  ;;  %v9813_v52 = vld [vmem:[#allocation24_spill] sm:$0xff] }
 0x479   : > { %v3625_v51 = vpop.f32.mrf.mxu1 }
 0x47a   : > { %v4129_v56 = vadd.f32 %v4059_v27, %v3894_v29  ;;  %v8126_v2 = vadd.f32 %v3625_v51, %v7962_v34  ;;  %v4423_v34 = vpack.c.bf16 %v4395_v38, %v4394_v45  ;;  %v9814_v29 = vld [vmem:[#allocation27_spill] sm:$0xff]  ;;  %v4399_v51 = vld [vmem:[#allocation3 + $0xb2] sm:$0xff] }
 0x47b   : > { %v4291_v23 = vpop.f32.mrf.mxu0 }
 0x47c   : > { %6103 = vmatmul.msk.bf16.gmra.mxu2 %vm498_vm4, %v9809_v12  ;;  %v8132_v25 = vadd.f32 %v4291_v23, %v4128_v22  ;;  %v4181_v22 = vld [vmem:[#allocation3 + $0x171] sm:$0xff]  ;;  %v3715_v12 = vld [vmem:[#allocation3 + $0x182] sm:$0xff] }
 0x47d   : > { %6131 = vmatmul.msk.bf16.gmra.mxu3 %vm498_vm4, %v9810_v26  ;;  %v4199_v27 = vpack.c.bf16 %v4181_v22, %v4180_v17  ;;  %v3716_v26 = vld [vmem:[#allocation3 + $0x18a] sm:$0xff]  ;;  %v4404_v22 = vld [vmem:[#allocation3 + $0xf2] sm:$0xff]  ;;  %v4405_v17 = vld [vmem:[#allocation3 + $0xfa] sm:$0xff] }
 0x47e   : > { %6158 = vmatmul.msk.bf16.gmra.mxu0 %vm498_vm4, %v4197_v44  ;;  %v8165_v38 = vpack.c.bf16 %v3716_v26, %v3715_v12 }
 0x480   : > { %v8216_v12 = vpop.f32.mrf.mxu3 }
 0x481   : > { %v3628_v47 = vpop.f32.mrf.mxu1 }
 0x482   : > { %v8136_v49 = vadd.f32 %v3628_v47, %v7974_v40  ;;  %v4198_v40 = vpack.c.bf16 %v4179_v9, %v4178_v32  ;;  %v4184_v32 = vld [vmem:[#allocation3 + $0x199] sm:$0xff] }
 0x483   : > { %v4293_v13 = vpop.f32.mrf.mxu0 }
 0x484   : > { %v8138_v30 = vadd.f32 %v4293_v13, %v4129_v56  ;;  %6178 = vmatmul.msk.bf16.gmra.mxu1 %vm498_vm4, %v4423_v34  ;;  %v4401_v34 = vld [vmem:[#allocation3 + $0xca] sm:$0xff] }
 0x489   : > { %v3630_v57 = vpop.f32.mrf.mxu1 }
 0x48a   : > { %v8142_v62 = vadd.f32 %v3630_v57, %v7982_v41 }
 0x48c   : > { %6104 = vmatmul.msk.bf16.gmra.mxu2 %vm498_vm4, %v9811_v10 }
 0x48d   : > { %6132 = vmatmul.msk.bf16.gmra.mxu3 %vm498_vm4, %v9812_v58 }
 0x48e   : > { %6159 = vmatmul.msk.bf16.gmra.mxu0 %vm498_vm4, %v4198_v40 }
 0x491   : > { %v3633_v0 = vpop.f32.mrf.mxu1 }
 0x492   : > { %v8150_v43 = vadd.f32 %v3633_v0, %v7994_v31  ;;  %v4398_v31 = vld [vmem:[#allocation3 + $0xaa] sm:$0xff] }
 0x493   : > { %v4425_v23 = vpack.c.bf16 %v4399_v51, %v4398_v31 }
 0x494   : > { %6179 = vmatmul.msk.bf16.gmra.mxu1 %vm498_vm4, %v4424_v46 }
 0x499   : > { %v3635_v41 = vpop.f32.mrf.mxu1 }
 0x49a   : > { %v8154_v8 = vadd.f32 %v3635_v41, %v8002_v14  ;;  %v3950_v14 = vld [vmem:[#allocation3 + $0x198] sm:$0xff] }
 0x49b   : > { %v3967_v44 = vpack.c.bf16 %v3951_v28, %v3950_v14 }
 0x49c   : > { %6105 = vmatmul.msk.bf16.gmra.mxu2 %vm498_vm4, %v9813_v52 }
 0x49d   : > { %6133 = vmatmul.msk.bf16.gmra.mxu3 %vm498_vm4, %v9814_v29 }
 0x49e   : > { %6160 = vmatmul.msk.bf16.gmra.mxu0 %vm498_vm4, %v4199_v27  ;;  %v4428_v27 = vpack.c.bf16 %v4405_v17, %v4404_v22 }
 0x4a1   : > { %v3638_v4 = vpop.f32.mrf.mxu1 }
 0x4a2   : > { %v8162_v56 = vadd.f32 %v3638_v4, %v8014_v19  ;;  %v4400_v19 = vld [vmem:[#allocation3 + $0xc2] sm:$0xff]  ;;  %v8209_v4 = vpop.f32.mrf.mxu2 }
 0x4a3   : > { %v4426_v9 = vpack.c.bf16 %v4401_v34, %v4400_v19  ;;  %v4407_v19 = vld [vmem:[#allocation3 + $0x112] sm:$0xff] }
 0x4a4   : > { %6180 = vmatmul.msk.bf16.gmra.mxu1 %vm498_vm4, %v4425_v23 }
 0x4a9   : > { %v3640_v45 = vpop.f32.mrf.mxu1 }
 0x4aa   : > { %v8168_v47 = vadd.f32 %v3640_v45, %v8022_v21  ;;  %v4185_v21 = vld [vmem:[#allocation3 + $0x1a1] sm:$0xff]  ;;  %v4406_v45 = vld [vmem:[#allocation3 + $0x10a] sm:$0xff] }
 0x4ab   : > { %v4201_v40 = vpack.c.bf16 %v4185_v21, %v4184_v32  ;;  %v4429_v32 = vpack.c.bf16 %v4407_v19, %v4406_v45  ;;  %v8226_v21 = vpop.f32.mrf.mxu2 }
 0x4ac   : > { %6106 = vmatmul.msk.bf16.gmra.mxu2 %vm498_vm4, %v8165_v38 }
 0x4ad   : > { %6134 = vmatmul.msk.bf16.gmra.mxu3 %vm498_vm4, %v3967_v44  ;;  %v8219_v44 = vpop.f32.mrf.mxu0 }
 0x4ae   : > { %6161 = vmatmul.msk.bf16.gmra.mxu0 %vm498_vm4, %v8062_v18  ;;  %v4403_v18 = vld [vmem:[#allocation3 + $0xe2] sm:$0xff] }
 0x4b1   : > { %v3643_v13 = vpop.f32.mrf.mxu1 }
 0x4b2   : > { %v8176_v57 = vadd.f32 %v3643_v13, %v8034_v54  ;;  %v4427_v54 = vpack.c.bf16 %v4403_v18, %v4402_v35  ;;  %v8233_v35 = vpop.f32.mrf.mxu3 }
 0x4b3   : > { %v8245_v17 = vpop.f32.mrf.mxu2 }
 0x4b4   : > { %6181 = vmatmul.msk.bf16.gmra.mxu1 %vm498_vm4, %v4426_v9 }
 0x4b9   : > { %v3645_v10 = vpop.f32.mrf.mxu1 }
 0x4ba   : > { %v8180_v58 = vadd.f32 %v3645_v10, %v8042_v15  ;;  %v8193_v15 = vld [vmem:[%s9682_s4] ss:$0 sm:$0xff] }
 0x4be   : > { %6162 = vmatmul.msk.bf16.gmra.mxu0 %vm498_vm4, %v4201_v40 }
 0x4c1   : > { %v3648_v39 = vpop.f32.mrf.mxu1 }
 0x4c2   : > { %v8184_v0 = vadd.f32 %v3648_v39, %v8054_v16 }
 0x4c4   : > { %6182 = vmatmul.msk.bf16.gmra.mxu1 %vm498_vm4, %v4427_v54 }
 0x4c9   : > { %v3650_v46 = vpop.f32.mrf.mxu1 }
 0x4ca   : > { %v8188_v41 = vadd.f32 %v3650_v46, %v8064_v24  ;;  %v8203_v24 = vld [vmem:[%s9683_s5] ss:$0 sm:$0xff] }
 0x4d1   : > { %v4510_v52 = vpop.f32.mrf.mxu1 }
 0x4d2   : > { %v4590_v29 = vadd.f32 %v4510_v52, %v8076_v3 }
 0x4d4   : > { %v8197_v16 = vadd.f32 %v8193_v15, %v4590_v29  ;;  %6183 = vmatmul.msk.bf16.gmra.mxu1 %vm498_vm4, %v4428_v27  ;;  %v4408_v29 = vld [vmem:[#allocation3 + $0x122] sm:$0xff]  ;;  %v4409_v27 = vld [vmem:[#allocation3 + $0x12a] sm:$0xff] }
 0x4d5   : > { %v4430_v45 = vpack.c.bf16 %v4409_v27, %v4408_v29  ;;  %v4410_v27 = vld [vmem:[#allocation3 + $0x13a] sm:$0xff] }
 0x4d6   : > { %v9716_v31 = vmax.f32 %v8197_v16, 0.0 }
 0x4d8   : > { %v4694_v51 = vmul.f32 %v8203_v24, %v9716_v31 }
 0x4d9   : > { %v4512_v3 = vpop.f32.mrf.mxu1 }
 0x4da   : > { %v4591_v23 = vadd.f32 %v4512_v3, %v8084_v33  ;;  %v4726_v14 = vsel %vm498_vm4, %v4694_v51, 0.0 }
 0x4db   : > { %4727 = vadd.xlane.f32.xlu0 %v4726_v14 }
 0x4dc   : > { %v8214_v28 = vadd.f32 %v8193_v15, %v4591_v23  ;;  %v8251_v23 = vpop.f32.mrf.mxu3 }
 0x4de   : > { %v9741_v26 = vmax.f32 %v8214_v28, 0.0 }
 0x4e0   : > { %v4695_v34 = vmul.f32 %v8203_v24, %v9741_v26 }
 0x4e1   : > { %v4515_v13 = vpop.f32.mrf.mxu1 }
 0x4e2   : > { %v4592_v33 = vadd.f32 %v4515_v13, %v8096_v42  ;;  %v4729_v9 = vsel %vm498_vm4, %v4695_v34, 0.0  ;;  %v8238_v42 = vpop.f32.mrf.mxu0 }
 0x4e3   : > { %4730 = vadd.xlane.f32.xlu0 %v4729_v9 }
 0x4e4   : > { %v8229_v10 = vadd.f32 %v8193_v15, %v4592_v33  ;;  %6184 = vmatmul.msk.bf16.gmra.mxu1 %vm498_vm4, %v4429_v32  ;;  %v8262_v33 = vpop.f32.mrf.mxu2 }
 0x4e6   : > { %v9715_v40 = vmax.f32 %v8229_v10, 0.0 }
 0x4e8   : > { %v4696_v18 = vmul.f32 %v8203_v24, %v9715_v40 }
 0x4e9   : > { %v4517_v39 = vpop.f32.mrf.mxu1 }
 0x4ea   : > { %v4593_v54 = vadd.f32 %v4517_v39, %v8103_v36  ;;  %v4732_v46 = vsel %vm498_vm4, %v4696_v18, 0.0  ;;  %v8255_v19 = vpop.f32.mrf.mxu0  ;;  %v8269_v39 = vpop.f32.mrf.mxu3 }
 0x4eb   : > { %4733 = vadd.xlane.f32.xlu1 %v4732_v46 }
 0x4ec   : > { %v8243_v22 = vadd.f32 %v8193_v15, %v4593_v54 }
 0x4ee   : > { %v9713_v52 = vmax.f32 %v8243_v22, 0.0 }
 0x4f0   : > { %v4697_v51 = vmul.f32 %v8203_v24, %v9713_v52  ;;  %v4412_v52 = vld [vmem:[#allocation3 + $0x152] sm:$0xff] }
 0x4f1   : > { %v4520_v3 = vpop.f32.mrf.mxu1 }
 0x4f2   : > { %v4594_v36 = vadd.f32 %v4520_v3, %v8114_v60  ;;  %v4735_v14 = vsel %vm498_vm4, %v4697_v51, 0.0  ;;  %v8274_v46 = vpop.f32.mrf.mxu0  ;;  %v4411_v51 = vld [vmem:[#allocation3 + $0x142] sm:$0xff] }
 0x4f3   : > { %4736 = vadd.xlane.f32.xlu1 %v4735_v14 }
 0x4f4   : > { %v8258_v34 = vadd.f32 %v8193_v15, %v4594_v36  ;;  %6185 = vmatmul.msk.bf16.gmra.mxu1 %vm498_vm4, %v4430_v45  ;;  %v8280_v36 = vpop.f32.mrf.mxu2 }
 0x4f6   : > { %v9711_v13 = vmax.f32 %v8258_v34, 0.0 }
 0x4f8   : > { %v4698_v9 = vmul.f32 %v8203_v24, %v9711_v13 }
 0x4f9   : > { %v4522_v60 = vpop.f32.mrf.mxu1 }
 0x4fa   : > { %v4595_v32 = vadd.f32 %v4522_v60, %v8121_v37  ;;  %v4738_v18 = vsel %vm498_vm4, %v4698_v9, 0.0  ;;  %v4431_v9 = vpack.c.bf16 %v4411_v51, %v4410_v27  ;;  %v8291_v13 = vpop.f32.mrf.mxu0  ;;  %v3895_v27 = vadd.f32 %v8209_v4, %v8000_v53 }
 0x4fb   : > { %4739 = vadd.xlane.f32.xlu2 %v4738_v18 }
 0x4fc   : > { %v8272_v54 = vadd.f32 %v8193_v15, %v4595_v32  ;;  %v8288_v32 = vpop.f32.mrf.mxu3 }
 0x4fe   : > { %v9712_v29 = vmax.f32 %v8272_v54, 0.0 }
 0x500   : > { %v4699_v3 = vmul.f32 %v8203_v24, %v9712_v29 }
 0x501   : > { %v4525_v37 = vpop.f32.mrf.mxu1 }
 0x502   : > { %v4596_v14 = vadd.f32 %v4525_v37, %v8132_v25  ;;  %v4741_v45 = vsel %vm498_vm4, %v4699_v3, 0.0  ;;  %v8300_v37 = vpop.f32.mrf.mxu2 }
 0x503   : > { %4742 = vadd.xlane.f32.xlu2 %v4741_v45  ;;  %v4130_v45 = vadd.f32 %v8216_v12, %v3895_v27 }
 0x504   : > { %v8285_v60 = vadd.f32 %v8193_v15, %v4596_v14  ;;  %6186 = vmatmul.msk.bf16.gmra.mxu1 %vm498_vm4, %v4431_v9  ;;  %v8308_v31 = vpop.f32.mrf.mxu3 }
 0x505   : > { %v4364_v40 = vadd.f32 %v8219_v44, %v4130_v45 }
 0x506   : > { %v9714_v18 = vmax.f32 %v8285_v60, 0.0 }
 0x508   : > { %v4700_v29 = vmul.f32 %v8203_v24, %v9714_v18  ;;  %v4413_v18 = vld [vmem:[#allocation3 + $0x15a] sm:$0xff] }
 0x509   : > { %v4527_v25 = vpop.f32.mrf.mxu1  ;;  %v4432_v27 = vpack.c.bf16 %v4413_v18, %v4412_v52 }
 0x50a   : > { %v4597_v51 = vadd.f32 %v4527_v25, %v8138_v30  ;;  %v4744_v3 = vsel %vm498_vm4, %v4700_v29, 0.0  ;;  %v8313_v30 = vpop.f32.mrf.mxu0  ;;  %v3896_v29 = vadd.f32 %v8226_v21, %v8008_v59  ;;  %v3842_v44 = vpop.f32.mrf.mxu2 }
 0x50b   : > { %4745 = vadd.xlane.f32.xlu0 %v4744_v3 }
 0x50c   : > { %v8303_v14 = vadd.f32 %v8193_v15, %v4597_v51  ;;  %v4131_v3 = vadd.f32 %v8233_v35, %v3896_v29  ;;  %v8330_v52 = vpop.f32.mrf.mxu3 }
 0x50e   : > { %v9717_v9 = vmax.f32 %v8303_v14, 0.0 }
 0x510   : > { %v4701_v53 = vmul.f32 %v8203_v24, %v9717_v9  ;;  %v4365_v9 = vadd.f32 %v8238_v42, %v4131_v3 }
 0x511   : > { %v4530_v4 = vpop.f32.mrf.mxu1 }
 0x512   : > { %v4598_v25 = vadd.f32 %v4530_v4, %v4364_v40  ;;  %v4747_v12 = vsel %vm498_vm4, %v4701_v53, 0.0  ;;  %v3897_v40 = vadd.f32 %v8245_v17, %v8020_v63  ;;  %v4311_v4 = vpop.f32.mrf.mxu0 }
 0x513   : > { %4748 = vadd.xlane.f32.xlu1 %v4747_v12  ;;  %v4414_v12 = vld [vmem:[#allocation3 + $0x16a] sm:$0xff] }
 0x514   : > { %v8319_v51 = vadd.f32 %v8193_v15, %v4598_v25  ;;  %6187 = vmatmul.msk.bf16.gmra.mxu1 %vm498_vm4, %v4432_v27  ;;  %v4132_v42 = vadd.f32 %v8251_v23, %v3897_v40  ;;  %v3844_v25 = vpop.f32.mrf.mxu2  ;;  %v4415_v27 = vld [vmem:[#allocation3 + $0x172] sm:$0xff]  ;;  %v4079_v23 = vpop.f32.mrf.mxu3 }
 0x516   : > { %v9740_v45 = vmax.f32 %v8319_v51, 0.0  ;;  %v4366_v3 = vadd.f32 %v8255_v19, %v4132_v42 }
 0x518   : > { %v4702_v59 = vmul.f32 %v8203_v24, %v9740_v45 }
 0x519   : > { %v4532_v21 = vpop.f32.mrf.mxu1 }
 0x51a   : > { %v4599_v18 = vadd.f32 %v4532_v21, %v4365_v9  ;;  %v4750_v53 = vsel %vm498_vm4, %v4702_v59, 0.0  ;;  %v3898_v9 = vadd.f32 %v8262_v33, %v8028_v55  ;;  %v4313_v19 = vpop.f32.mrf.mxu0 }
 0x51b   : > { %4751 = vadd.xlane.f32.xlu2 %v4750_v53 }
 0x51c   : > { %v8334_v35 = vadd.f32 %v8193_v15, %v4599_v18  ;;  %v4433_v18 = vpack.c.bf16 %v4415_v27, %v4414_v12  ;;  %v4133_v53 = vadd.f32 %v8269_v39, %v3898_v9  ;;  %v3847_v33 = vpop.f32.mrf.mxu2  ;;  %v3899_v27 = vadd.f32 %v8280_v36, %v8040_v6  ;;  %v4082_v9 = vpop.f32.mrf.mxu3 }
 0x51d   : > { %v3900_v36 = vadd.f32 %v8300_v37, %v8048_v1 }
 0x51e   : > { %v9718_v29 = vmax.f32 %v8334_v35, 0.0  ;;  %v4134_v39 = vadd.f32 %v8288_v32, %v3899_v27 }
 0x520   : > { %v4703_v63 = vmul.f32 %v8203_v24, %v9718_v29  ;;  %v4367_v29 = vadd.f32 %v8274_v46, %v4133_v53 }
 0x521   : > { %v4535_v17 = vpop.f32.mrf.mxu1 }
 0x522   : > { %v4600_v59 = vadd.f32 %v4535_v17, %v4366_v3  ;;  %v4753_v21 = vsel %vm498_vm4, %v4703_v63, 0.0 }
 0x523   : > { %4754 = vadd.xlane.f32.xlu0 %v4753_v21  ;;  %v4368_v21 = vadd.f32 %v8291_v13, %v4134_v39  ;;  %v4135_v13 = vadd.f32 %v8308_v31, %v3900_v36  ;;  %v3901_v39 = vadd.f32 %v3842_v44, %v8060_v48  ;;  %v4419_v36 = vld [vmem:[#allocation3 + $0x1a2] sm:$0xff] }
 0x524   : > { %v8346_v40 = vadd.f32 %v8193_v15, %v4600_v59  ;;  %6188 = vmatmul.msk.bf16.gmra.mxu1 %vm498_vm4, %v4433_v18  ;;  %v4316_v59 = vpop.f32.mrf.mxu0 }
 0x525   : > { %v4369_v27 = vadd.f32 %v8313_v30, %v4135_v13  ;;  %v4136_v30 = vadd.f32 %v8330_v52, %v3901_v39 }
 0x526   : > { %v9737_v42 = vmax.f32 %v8346_v40, 0.0 }
 0x528   : > { %v4704_v55 = vmul.f32 %v8203_v24, %v9737_v42 }
 0x529   : > { %v4537_v12 = vpop.f32.mrf.mxu1 }
 0x52a   : > { %v4601_v3 = vadd.f32 %v4537_v12, %v4367_v29  ;;  %v4756_v63 = vsel %vm498_vm4, %v4704_v55, 0.0  ;;  %v3849_v55 = vpop.f32.mrf.mxu2 }
 0x52b   : > { %4757 = vadd.xlane.f32.xlu1 %v4756_v63 }
 0x52c   : > { %v8359_v17 = vadd.f32 %v8193_v15, %v4601_v3  ;;  %v4084_v3 = vpop.f32.mrf.mxu3  ;;  %v4318_v37 = vpop.f32.mrf.mxu0 }
 0x52e   : > { %v9736_v46 = vmax.f32 %v8359_v17, 0.0 }
 0x530   : > { %v4705_v18 = vmul.f32 %v8203_v24, %v9736_v46 }
 0x531   : > { %v4540_v6 = vpop.f32.mrf.mxu1 }
 0x532   : > { %v4602_v29 = vadd.f32 %v4540_v6, %v4368_v21  ;;  %v4759_v53 = vsel %vm498_vm4, %v4705_v18, 0.0  ;;  %v3852_v31 = vpop.f32.mrf.mxu2  ;;  %v4418_v6 = vld [vmem:[#allocation3 + $0x19a] sm:$0xff] }
 0x533   : > { %4760 = vadd.xlane.f32.xlu2 %v4759_v53  ;;  %v4370_v53 = vadd.f32 %v4311_v4, %v4136_v30  ;;  %v4435_v48 = vpack.c.bf16 %v4419_v36, %v4418_v6  ;;  %v3903_v6 = vadd.f32 %v3847_v33, %v8082_v11  ;;  %v3904_v11 = vadd.f32 %v3849_v55, %v8090_v61 }
 0x534   : > { %v8371_v32 = vadd.f32 %v8193_v15, %v4602_v29  ;;  %6189 = vmatmul.msk.bf16.gmra.mxu1 %vm498_vm4, %v8165_v38  ;;  %v3905_v61 = vadd.f32 %v3852_v31, %v8101_v50 }
 0x536   : > { %v9719_v12 = vmax.f32 %v8371_v32, 0.0 }
 0x538   : > { %v4706_v1 = vmul.f32 %v8203_v24, %v9719_v12 }
 0x539   : > { %v4542_v63 = vpop.f32.mrf.mxu1 }
 0x53a   : > { %v4603_v21 = vadd.f32 %v4542_v63, %v4369_v27  ;;  %v4762_v18 = vsel %vm498_vm4, %v4706_v1, 0.0  ;;  %v3902_v27 = vadd.f32 %v3844_v25, %v8070_v5  ;;  %v4087_v1 = vpop.f32.mrf.mxu3  ;;  %v3854_v39 = vpop.f32.mrf.mxu2 }
 0x53b   : > { %4763 = vadd.xlane.f32.xlu0 %v4762_v18  ;;  %v4321_v18 = vpop.f32.mrf.mxu0  ;;  %v3906_v50 = vadd.f32 %v3854_v39, %v8108_v7 }
 0x53c   : > { %v8384_v38 = vadd.f32 %v8193_v15, %v4603_v21  ;;  %v4137_v52 = vadd.f32 %v4079_v23, %v3902_v27 }
 0x53e   : > { %v9735_v29 = vmax.f32 %v8384_v38, 0.0  ;;  %v4371_v30 = vadd.f32 %v4313_v19, %v4137_v52 }
 0x540   : > { %v4707_v13 = vmul.f32 %v8203_v24, %v9735_v29 }
 0x541   : > { %v4545_v44 = vpop.f32.mrf.mxu1 }
 0x542   : > { %v4604_v63 = vadd.f32 %v4545_v44, %v4370_v53  ;;  %v4765_v21 = vsel %vm498_vm4, %v4707_v13, 0.0  ;;  %v4089_v13 = vpop.f32.mrf.mxu3 }
 0x543   : > { %4766 = vadd.xlane.f32.xlu1 %v4765_v21  ;;  %v4323_v23 = vpop.f32.mrf.mxu0  ;;  %v3857_v21 = vpop.f32.mrf.mxu2 }
 0x544   : > { %v8394_v12 = vadd.f32 %v8193_v15, %v4604_v63  ;;  %6190 = vmatmul.msk.bf16.gmra.mxu1 %vm498_vm4, %v4435_v48  ;;  %v4138_v48 = vadd.f32 %v4082_v9, %v3903_v6 }
 0x546   : > { %v9734_v4 = vmax.f32 %v8394_v12, 0.0  ;;  %v4372_v19 = vadd.f32 %v4316_v59, %v4138_v48 }
 0x548   : > { %v4708_v5 = vmul.f32 %v8203_v24, %v9734_v4 }
 0x549   : > { %v4547_v25 = vpop.f32.mrf.mxu1 }
 0x54a   : > { %v4605_v36 = vadd.f32 %v4547_v25, %v4371_v30  ;;  %v4768_v53 = vsel %vm498_vm4, %v4708_v5, 0.0  ;;  %v4139_v25 = vadd.f32 %v4084_v3, %v3904_v11  ;;  %v4092_v9 = vpop.f32.mrf.mxu3  ;;  %v4140_v3 = vadd.f32 %v4087_v1, %v3905_v61 }
 0x54b   : > { %4769 = vadd.xlane.f32.xlu2 %v4768_v53  ;;  %v4326_v59 = vpop.f32.mrf.mxu0  ;;  %v4141_v1 = vadd.f32 %v4089_v13, %v3906_v50 }
 0x54c   : > { %v8404_v44 = vadd.f32 %v8193_v15, %v4605_v36  ;;  %v4373_v36 = vadd.f32 %v4318_v37, %v4139_v25 }
 0x54d   : > { %v4375_v61 = vadd.f32 %v4323_v23, %v4141_v1 }
 0x54e   : > { %v9721_v27 = vmax.f32 %v8404_v44, 0.0 }
 0x550   : > { %v4709_v63 = vmul.f32 %v8203_v24, %v9721_v27 }
 0x551   : > { %v4550_v52 = vpop.f32.mrf.mxu1 }
 0x552   : > { %v4606_v33 = vadd.f32 %v4550_v52, %v4372_v19  ;;  %v4771_v30 = vsel %vm498_vm4, %v4709_v63, 0.0  ;;  %v3859_v63 = vpop.f32.mrf.mxu2  ;;  %v4094_v37 = vpop.f32.mrf.mxu3 }
 0x553   : > { %4772 = vadd.xlane.f32.xlu0 %v4771_v30  ;;  %v4328_v30 = vpop.f32.mrf.mxu0 }
 0x554   : > { %v8413_v5 = vadd.f32 %v8193_v15, %v4606_v33  ;;  %v4374_v33 = vadd.f32 %v4321_v18, %v4140_v3 }
 0x556   : > { %v9720_v6 = vmax.f32 %v8413_v5, 0.0 }
 0x558   : > { %v4710_v53 = vmul.f32 %v8203_v24, %v9720_v6 }
 0x559   : > { %v4552_v48 = vpop.f32.mrf.mxu1 }
 0x55a   : > { %v4607_v55 = vadd.f32 %v4552_v48, %v4373_v36  ;;  %v4774_v19 = vsel %vm498_vm4, %v4710_v53, 0.0  ;;  %v3862_v53 = vpop.f32.mrf.mxu2  ;;  %v4097_v3 = vpop.f32.mrf.mxu3 }
 0x55b   : > { %4775 = vadd.xlane.f32.xlu1 %v4774_v19  ;;  %v3907_v19 = vadd.f32 %v3857_v21, %v8119_v20  ;;  %v4331_v39 = vpop.f32.mrf.mxu0  ;;  %v3908_v21 = vadd.f32 %v3859_v63, %v8126_v2  ;;  %v3909_v63 = vadd.f32 %v3862_v53, %v8136_v49 }
 0x55c   : > { %v8422_v52 = vadd.f32 %v8193_v15, %v4607_v55 }
 0x55e   : > { %v9733_v11 = vmax.f32 %v8422_v52, 0.0 }
 0x560   : > { %v4711_v6 = vmul.f32 %v8203_v24, %v9733_v11 }
 0x561   : > { %v4555_v25 = vpop.f32.mrf.mxu1 }
 0x562   : > { %v4608_v31 = vadd.f32 %v4555_v25, %v4374_v33  ;;  %v4777_v36 = vsel %vm498_vm4, %v4711_v6, 0.0  ;;  %v4142_v33 = vadd.f32 %v4092_v9, %v3907_v19  ;;  %v3864_v13 = vpop.f32.mrf.mxu2 }
 0x563   : > { %4778 = vadd.xlane.f32.xlu2 %v4777_v36  ;;  %v4333_v9 = vpop.f32.mrf.mxu0  ;;  %v3910_v53 = vadd.f32 %v3864_v13, %v8142_v62 }
 0x564   : > { %v8431_v48 = vadd.f32 %v8193_v15, %v4608_v31  ;;  %v4376_v23 = vadd.f32 %v4326_v59, %v4142_v33 }
 0x566   : > { %v9732_v18 = vmax.f32 %v8431_v48, 0.0 }
 0x568   : > { %v4712_v7 = vmul.f32 %v8203_v24, %v9732_v18 }
 0x569   : > { %v4557_v55 = vpop.f32.mrf.mxu1 }
 0x56a   : > { %v4609_v27 = vadd.f32 %v4557_v55, %v4375_v61  ;;  %v4780_v25 = vsel %vm498_vm4, %v4712_v7, 0.0  ;;  %v4143_v61 = vadd.f32 %v4094_v37, %v3908_v21  ;;  %v5569_v7 = vld [vmem:[%s9685_s7 + $0x18] sm:$0xff]  ;;  %v3867_v33 = vpop.f32.mrf.mxu2 }
 0x56b   : > { %4781 = vadd.xlane.f32.xlu0 %v4780_v25  ;;  %5586 = vmatpush.msrb.mxu2 %v5569_v7  ;;  %v4336_v21 = vpop.f32.mrf.mxu0 }
 0x56c   : > { %v8439_v6 = vadd.f32 %v8193_v15, %v4609_v27  ;;  %v4099_v27 = vpop.f32.mrf.mxu3  ;;  %v4377_v19 = vadd.f32 %v4328_v30, %v4143_v61 }
 0x56e   : > { %v9731_v50 = vmax.f32 %v8439_v6, 0.0 }
 0x570   : > { %v4713_v20 = vmul.f32 %v8203_v24, %v9731_v50 }
 0x571   : > { %v4560_v31 = vpop.f32.mrf.mxu1 }
 0x572   : > { %v4610_v36 = vadd.f32 %v4560_v31, %v4376_v23  ;;  %v4783_v1 = vsel %vm498_vm4, %v4713_v20, 0.0  ;;  %v4144_v31 = vadd.f32 %v4097_v3, %v3909_v63  ;;  %v3869_v7 = vpop.f32.mrf.mxu2 }
 0x573   : > { %4784 = vadd.xlane.f32.xlu1 %v4783_v1 }
 0x574   : > { %v8449_v55 = vadd.f32 %v8193_v15, %v4610_v36  ;;  %v4102_v20 = vpop.f32.mrf.mxu3  ;;  %v4378_v1 = vadd.f32 %v4331_v39, %v4144_v31 }
 0x576   : > { %v9722_v59 = vmax.f32 %v8449_v55, 0.0 }
 0x578   : > { %v4714_v37 = vmul.f32 %v8203_v24, %v9722_v59  ;;  %v3911_v59 = vadd.f32 %v3867_v33, %v8150_v43 }
 0x579   : > { %v4562_v2 = vpop.f32.mrf.mxu1 }
 0x57a   : > { %v4611_v25 = vadd.f32 %v4562_v2, %v4377_v19  ;;  %v4786_v30 = vsel %vm498_vm4, %v4714_v37, 0.0  ;;  %v3872_v13 = vpop.f32.mrf.mxu2 }
 0x57b   : > { %4787 = vadd.xlane.f32.xlu2 %v4786_v30  ;;  %v4338_v30 = vpop.f32.mrf.mxu0 }
 0x57c   : > { %v8460_v23 = vadd.f32 %v8193_v15, %v4611_v25  ;;  %v4145_v25 = vadd.f32 %v4099_v27, %v3910_v53  ;;  %v4104_v63 = vpop.f32.mrf.mxu3 }
 0x57e   : > { %v9723_v36 = vmax.f32 %v8460_v23, 0.0  ;;  %v4379_v37 = vadd.f32 %v4333_v9, %v4145_v25 }
 0x580   : > { %v4715_v49 = vmul.f32 %v8203_v24, %v9723_v36 }
 0x581   : > { %v4565_v61 = vpop.f32.mrf.mxu1 }
 0x582   : > { %v4612_v19 = vadd.f32 %v4565_v61, %v4378_v1  ;;  %v4789_v2 = vsel %vm498_vm4, %v4715_v49, 0.0  ;;  %v4146_v61 = vadd.f32 %v4102_v20, %v3911_v59  ;;  %v3874_v20 = vpop.f32.mrf.mxu2 }
 0x583   : > { %4790 = vadd.xlane.f32.xlu0 %v4789_v2  ;;  %v4341_v25 = vpop.f32.mrf.mxu0 }
 0x584   : > { %v8470_v3 = vadd.f32 %v8193_v15, %v4612_v19  ;;  %v4380_v49 = vadd.f32 %v4336_v21, %v4146_v61  ;;  %v3912_v19 = vadd.f32 %v3869_v7, %v8154_v8  ;;  %v4107_v43 = vpop.f32.mrf.mxu3 }
 0x586   : > { %v9727_v39 = vmax.f32 %v8470_v3, 0.0 }
 0x588   : > { %v4716_v62 = vmul.f32 %v8203_v24, %v9727_v39 }
 0x589   : > { %v4567_v31 = vpop.f32.mrf.mxu1 }
 0x58a   : > { %v4613_v36 = vadd.f32 %v4567_v31, %v4379_v37  ;;  %v4792_v27 = vsel %vm498_vm4, %v4716_v62, 0.0  ;;  %v4728_v37 = vpop.xlane.xlu0 %4727  ;;  %v4147_v31 = vadd.f32 %v4104_v63, %v3912_v19 }
 0x58b   : > { %4793 = vadd.xlane.f32.xlu1 %v4792_v27  ;;  %v3913_v27 = vadd.f32 %v3872_v13, %v8162_v56  ;;  %v4343_v63 = vpop.f32.mrf.mxu0  ;;  %v3914_v13 = vadd.f32 %v3874_v20, %v8168_v47 }
 0x58c   : > { %v8478_v1 = vadd.f32 %v8193_v15, %v4613_v36  ;;  %v4381_v8 = vadd.f32 %v4338_v30, %v4147_v31 }
 0x58d   : > { %v4148_v19 = vadd.f32 %v4107_v43, %v3913_v27 }
 0x58e   : > { %v9724_v9 = vmax.f32 %v8478_v1, 0.0 }
 0x58f   : > { %v4382_v30 = vadd.f32 %v4341_v25, %v4148_v19 }
 0x590   : > { %v4717_v2 = vmul.f32 %v8203_v24, %v9724_v9  ;;  %v3877_v9 = vpop.f32.mrf.mxu2 }
 0x591   : > { %v4570_v53 = vpop.f32.mrf.mxu1 }
 0x592   : > { %v4614_v33 = vadd.f32 %v4570_v53, %v4380_v49  ;;  %v4795_v59 = vsel %vm498_vm4, %v4717_v2, 0.0  ;;  %v4109_v53 = vpop.f32.mrf.mxu3 }
 0x593   : > { %4796 = vadd.xlane.f32.xlu2 %v4795_v59  ;;  %v8499_v59 = vstv %s4822_s26  ;;  %v4346_v20 = vpop.f32.mrf.mxu0  ;;  %s5721_s26 = sshll.u32 %s5718_s13, 4  ;;  %s5722_s26 = int_to_ptr.hbm [resolvable:$true] %s5721_s26 }
 0x594   : > { %v8487_v36 = vadd.f32 %v8193_v15, %v4614_v33  ;;  %v4731_v33 = vpop.xlane.xlu0 %4730  ;;  %s6445_s16 = sshra.s32 %s5722_s26, 4  ;;  %s6446_s16 = int_to_ptr.hbm [resolvable:$true] %s6445_s16 }
 0x595   : > { %s6447_s17 = scalar_lea.hbm %s6446_s16, 256  ;;  %p6452_p0 = scmp.lt.s32.totalorder %s6446_s16, %s9689_s11 }
 0x596   : > { %v9725_v21 = vmax.f32 %v8487_v36, 0.0  ;;  %p6448_p11 = scmp.ne.s32.totalorder %s6446_s16, %s6447_s17  ;;  %p6453_p1 = scmp.lt.s32.totalorder %s6451_s12, %s6447_s17 }
 0x598   : > { %v4718_v62 = vmul.f32 %v8203_v24, %v9725_v21  ;;  %v4825_v21 = vadd.f32 %v8499_v59, %v4731_v33  ;;  %p6449_p12 = pnand %p6448_p11, %p6599_p5  ;;  %p6454_p2 = por %p6453_p1, %p6452_p0 }
 0x599   : > { %v4572_v7 = vpop.f32.mrf.mxu1 }
 0x59a   : > { %v4615_v61 = vadd.f32 %v4572_v7, %v4381_v8  ;;  %v4798_v49 = vsel %vm498_vm4, %v4718_v62, 0.0  ;;  %v4824_v8 = vadd.f32 %v8499_v59, %v4728_v37  ;;  %v4734_v62 = vpop.xlane.xlu1 %4733  ;;  %v4112_v19 = vpop.f32.mrf.mxu3  ;;  %p6450_p13 = pneg %p6449_p12 }
 0x59b   : > { %4799 = vadd.xlane.f32.xlu0 %v4798_v49  ;;  %v4149_v49 = vadd.f32 %v4109_v53, %v3914_v13  ;;  %v4826_v47 = vadd.f32 %v8499_v59, %v4734_v62  ;;  %v3879_v53 = vpop.f32.mrf.mxu2 }
 0x59c   : > { %v8497_v2 = vadd.f32 %v8193_v15, %v4615_v61  ;;  %v6192_v61 = vmul.f32 -1.442695, %v4825_v21  ;;  %v6191_v33 = vmul.f32 -1.442695, %v4824_v8  ;;  %v4740_v8 = vpop.xlane.xlu2 %4739  ;;  %p6455_p3 = pnand %p6454_p2, %p6450_p13 }
 0x59d   : > { %v6193_v21 = vmul.f32 -1.442695, %v4826_v47 }
 0x59e   : > { %v9726_v31 = vmax.f32 %v8497_v2, 0.0  ;;  %6298 = vpow2.f32 %v6192_v61 }
 0x59f   : > { %6300 = vpow2.f32 %v6191_v33  ;;  %v4348_v33 = vpop.f32.mrf.mxu0 }
 0x5a0   : > { %v4719_v43 = vmul.f32 %v8203_v24, %v9726_v31  ;;  %v3915_v31 = vadd.f32 %v3877_v9, %v8176_v57  ;;  %6302 = vpow2.f32 %v6193_v21 }
 0x5a1   : > { %v4575_v56 = vpop.f32.mrf.mxu1 }
 0x5a2   : > { %v4616_v7 = vadd.f32 %v4575_v56, %v4382_v30  ;;  %v4801_v25 = vsel %vm498_vm4, %v4719_v43, 0.0  ;;  %v4383_v30 = vadd.f32 %v4343_v63, %v4149_v49  ;;  %v4737_v62 = vpop.xlane.xlu1 %4736  ;;  %v4114_v39 = vpop.f32.mrf.mxu3 }
 0x5a3   : > { %4802 = vadd.xlane.f32.xlu1 %v4801_v25  ;;  %v4150_v25 = vadd.f32 %v4112_v19, %v3915_v31  ;;  %v4827_v57 = vadd.f32 %v8499_v59, %v4737_v62 }
 0x5a4   : > { %v8509_v27 = vadd.f32 %v8193_v15, %v4616_v7  ;;  %v6299_v61 = vpop.eup %6298 }
 0x5a5   : > { %v6301_v49 = vpop.eup %6300 }
 0x5a6   : > { %v9728_v37 = vmax.f32 %v8509_v27, 0.0  ;;  %v8530_v19 = vadd.f32 1.0, %v6301_v49  ;;  %v6303_v21 = vpop.eup %6302  ;;  %v4828_v49 = vadd.f32 %v8499_v59, %v4740_v8  ;;  %v4746_v8 = vpop.xlane.xlu0 %4745 }
 0x5a8   : > { %v4720_v7 = vmul.f32 %v8203_v24, %v9728_v37  ;;  %v4384_v37 = vadd.f32 %v4346_v20, %v4150_v25  ;;  %v3882_v20 = vpop.f32.mrf.mxu2  ;;  %vm4989_vm7 = vweird.f32 %v8530_v19 }
 0x5a9   : > { %v4577_v56 = vpop.f32.mrf.mxu1 }
 0x5aa   : > { %v4617_v43 = vadd.f32 %v4577_v56, %v4383_v30  ;;  %v4804_v13 = vsel %vm498_vm4, %v4720_v7, 0.0  ;;  %v3916_v30 = vadd.f32 %v3879_v53, %v8180_v58  ;;  %v8525_v56 = vadd.f32 1.0, %v6299_v61  ;;  %v4743_v58 = vpop.xlane.xlu2 %4742 }
 0x5ab   : > { %4805 = vadd.xlane.f32.xlu2 %v4804_v13 }
 0x5ac   : > { %v8520_v63 = vadd.f32 %v8193_v15, %v4617_v43  ;;  %v6194_v43 = vmul.f32 -1.442695, %v4827_v57  ;;  %v4151_v25 = vadd.f32 %v4114_v39, %v3916_v30  ;;  %6304 = vrcp.f32 %v8525_v56  ;;  %v5568_v57 = vld [vmem:[%s9685_s7 + $0x10] sm:$0xff] }
 0x5ad   : > { %6306 = vrcp.f32 %v8530_v19  ;;  %v4829_v39 = vadd.f32 %v8499_v59, %v4743_v58  ;;  %5587 = vmatpush.msrb.mxu2 %v5568_v57  ;;  %vm5004_vm10 = vweird.f32 %v8525_v56 }
 0x5ae   : > { %v9729_v9 = vmax.f32 %v8520_v63, 0.0  ;;  %v4385_v61 = vadd.f32 %v4348_v33, %v4151_v25  ;;  %6308 = vpow2.f32 %v6194_v43  ;;  %v4351_v33 = vpop.f32.mrf.mxu0  ;;  %v4749_v25 = vpop.xlane.xlu1 %4748 }
 0x5af   : > { %v6196_v58 = vmul.f32 -1.442695, %v4829_v39  ;;  %v4831_v18 = vadd.f32 %v8499_v59, %v4749_v25 }
 0x5b0   : > { %v4721_v31 = vmul.f32 %v8203_v24, %v9729_v9 }
 0x5b1   : > { %v4580_v47 = vpop.f32.mrf.mxu1 }
 0x5b2   : > { %v4618_v7 = vadd.f32 %v4580_v47, %v4384_v37  ;;  %v4807_v62 = vsel %vm498_vm4, %v4721_v31, 0.0  ;;  %v8538_v37 = vadd.f32 1.0, %v6303_v21  ;;  %v4117_v47 = vpop.f32.mrf.mxu3  ;;  %v8551_v43 = vpop.eup %6304 }
 0x5b3   : > { %4808 = vadd.xlane.f32.xlu0 %v4807_v62  ;;  %v6195_v62 = vmul.f32 -1.442695, %v4828_v49  ;;  %v8553_v9 = vpop.eup %6306  ;;  %v5000_v50 = vmul.f32 %v8551_v43, %v8525_v56  ;;  %vm5005_vm9 = vweird.f32 %v8551_v43 }
 0x5b4   : > { %v8533_v13 = vadd.f32 %v8193_v15, %v4618_v7  ;;  %v3917_v7 = vadd.f32 %v3882_v20, %v8184_v0  ;;  %6310 = vrcp.f32 %v8538_v37  ;;  %v6309_v0 = vpop.eup %6308  ;;  %v4985_v39 = vmul.f32 %v8553_v9, %v8530_v19  ;;  %vm8610_vm11 = vmor %vm5004_vm10, %vm5005_vm9 }
 0x5b5   : > { %6312 = vpow2.f32 %v6195_v62  ;;  %vm4990_vm8 = vweird.f32 %v8553_v9  ;;  %vm5019_vm15 = vweird.f32 %v8538_v37  ;;  %v5025_v45 = vand.u32 2147483648, %v8538_v37 }
 0x5b6   : > { %v9730_v53 = vmax.f32 %v8533_v13, 0.0  ;;  %v4152_v20 = vadd.f32 %v4117_v47, %v3917_v7  ;;  %v8568_v47 = vadd.f32 1.0, %v6309_v0  ;;  %6314 = vpow2.f32 %v6196_v58  ;;  %v4353_v58 = vpop.f32.mrf.mxu0  ;;  %vm8626_vm13 = vmor %vm4989_vm7, %vm4990_vm8  ;;  %v4758_v26 = vpop.xlane.xlu1 %4757 }
 0x5b7   : > { %v4986_v62 = vsub.f32 1.0, %v4985_v39  ;;  %v4993_v39 = vand.u32 2147483647, %v8530_v19 }
 0x5b8   : > { %v4722_v21 = vmul.f32 %v8203_v24, %v9730_v53  ;;  %v3884_v53 = vpop.f32.mrf.mxu2  ;;  %v4386_v11 = vadd.f32 %v4351_v33, %v4152_v20  ;;  %v5001_v33 = vsub.f32 1.0, %v5000_v50  ;;  %v6198_v20 = vmul.f32 -1.442695, %v4831_v18 }
 0x5b9   : > { %v4582_v30 = vpop.f32.mrf.mxu1  ;;  %6316 = vrcp.f32 %v8568_v47  ;;  %vm4994_vm1 = vcmp.eq.f32.partialorder %v4993_v39, 8.507059e+37  ;;  %vm5034_vm5 = vweird.f32 %v8568_v47 }
 0x5ba   : > { %v4619_v31 = vadd.f32 %v4582_v30, %v4385_v61  ;;  %v4830_v61 = vadd.f32 %v8499_v59, %v4746_v8  ;;  %v4810_v30 = vsel %vm498_vm4, %v4722_v21, 0.0  ;;  %v3918_v8 = vadd.f32 %v3884_v53, %v8188_v41 }
 0x5bb   : > { %4811 = vadd.xlane.f32.xlu1 %v4810_v30  ;;  %v4119_v30 = vpop.f32.mrf.mxu3  ;;  %v5002_v18 = vmul.f32 %v8551_v43, %v5001_v33  ;;  %v4987_v53 = vmul.f32 %v8553_v9, %v4986_v62 }
 0x5bc   : > { %v8556_v57 = vadd.f32 %v8193_v15, %v4619_v31  ;;  %v8566_v31 = vpop.eup %6310  ;;  %v6197_v25 = vmul.f32 -1.442695, %v4830_v61  ;;  %v4153_v42 = vadd.f32 %v4119_v30, %v3918_v8  ;;  %v5008_v8 = vand.u32 2147483647, %v8525_v56 }
 0x5bd   : > { %v5015_v0 = vmul.f32 %v8566_v31, %v8538_v37  ;;  %v6313_v46 = vpop.eup %6312  ;;  %vm5020_vm14 = vweird.f32 %v8566_v31 }
 0x5be   : > { %v9738_v49 = vmax.f32 %v8556_v57, 0.0  ;;  %6318 = vpow2.f32 %v6197_v25  ;;  %v4387_v50 = vadd.f32 %v4353_v58, %v4153_v42  ;;  %vm8614_vm12 = vcmp.eq.f32.partialorder %v5008_v8, 8.507059e+37  ;;  %vm8653_vm0 = vmor %vm5019_vm15, %vm5020_vm14 }
 0x5bf   : > { %6320 = vpow2.f32 %v6198_v20  ;;  %v5016_v61 = vsub.f32 1.0, %v5015_v0  ;;  %v5003_v20 = vadd.f32 %v8551_v43, %v5002_v18  ;;  %v4988_v0 = vadd.f32 %v8553_v9, %v4987_v53 }
 0x5c0   : > { %v4723_v21 = vmul.f32 %v8203_v24, %v9738_v49  ;;  %v4752_v49 = vpop.xlane.xlu2 %4751 }
 0x5c1   : > { %v4585_v7 = vpop.f32.mrf.mxu1  ;;  %v5017_v58 = vmul.f32 %v8566_v31, %v5016_v61 }
 0x5c2   : > { %v4620_v4 = vadd.f32 %v4585_v7, %v4386_v11  ;;  %v4813_v29 = vsel %vm498_vm4, %v4723_v21, 0.0  ;;  %v6315_v11 = vpop.eup %6314  ;;  %v8586_v7 = vadd.f32 1.0, %v6313_v46  ;;  %v4832_v21 = vadd.f32 %v8499_v59, %v4752_v49  ;;  %v4755_v49 = vpop.xlane.xlu0 %4754 }
 0x5c3   : > { %4814 = vadd.xlane.f32.xlu2 %v4813_v29  ;;  %v8590_v25 = vadd.f32 1.0, %v6315_v11  ;;  %v8595_v33 = vpop.eup %6316  ;;  %v5010_v46 = vand.u32 2147483648, %v8525_v56  ;;  %v4833_v61 = vadd.f32 %v8499_v59, %v4755_v49  ;;  %v4992_v49 = vsel %vm8626_vm13, %v8553_v9, %v4988_v0 }
 0x5c4   : > { %v8579_v41 = vadd.f32 %v8193_v15, %v4620_v4  ;;  %v6319_v62 = vpop.eup %6318  ;;  %6322 = vrcp.f32 %v8586_v7  ;;  %v6199_v18 = vmul.f32 -1.442695, %v4832_v21  ;;  %v5007_v21 = vsel %vm8610_vm11, %v8551_v43, %v5003_v20 }
 0x5c5   : > { %6324 = vrcp.f32 %v8590_v25  ;;  %v5011_v8 = vor.u32 1.1754944e-38, %v5010_v46  ;;  %v5023_v9 = vand.u32 2147483647, %v8538_v37  ;;  %vm5035_vm3 = vweird.f32 %v8595_v33 }
 0x5c6   : > { %v9739_v29 = vmax.f32 %v8579_v41, 0.0  ;;  %6326 = vpow2.f32 %v6199_v18  ;;  %v4834_v18 = vadd.f32 %v8499_v59, %v4758_v26  ;;  %vm8704_vm6 = vmor %vm5034_vm5, %vm5035_vm3  ;;  %vm5049_vm8 = vweird.f32 %v8586_v7 }
 0x5c7   : > { %v5012_v20 = vsel %vm8614_vm12, %v5011_v8, %v5007_v21  ;;  %v5026_v21 = vor.u32 1.1754944e-38, %v5025_v45  ;;  %vm5024_vm2 = vcmp.eq.f32.partialorder %v5023_v9, 8.507059e+37  ;;  %vm5064_vm13 = vweird.f32 %v8590_v25 }
 0x5c8   : > { %v4724_v42 = vmul.f32 %v8203_v24, %v9739_v29  ;;  %v4995_v29 = vand.u32 2147483648, %v8530_v19 }
 0x5c9   : > { %v4587_v4 = vpop.f32.mrf.mxu1 }
 0x5ca   : > { %v4621_v30 = vadd.f32 %v4587_v4, %v4387_v50  ;;  %v4816_v50 = vsel %vm498_vm4, %v4724_v42, 0.0  ;;  %v6321_v4 = vpop.eup %6320 }
 0x5cb   : > { %4817 = vadd.xlane.f32.xlu0 %v4816_v50  ;;  %v5018_v50 = vadd.f32 %v8566_v31, %v5017_v58  ;;  %v8641_v19 = vadd.f32 1.0, %v6321_v4  ;;  %v8651_v0 = vpop.eup %6322  ;;  %v4996_v58 = vor.u32 1.1754944e-38, %v4995_v29  ;;  %v4761_v29 = vpop.xlane.xlu2 %4760 }
 0x5cc   : > { %v8604_v11 = vadd.f32 %v8193_v15, %v4621_v30  ;;  %v5030_v15 = vmul.f32 %v8595_v33, %v8568_v47  ;;  %v8633_v30 = vadd.f32 1.0, %v6319_v62  ;;  %v6200_v62 = vmul.f32 -1.442695, %v4833_v61  ;;  %v8660_v56 = vpop.eup %6324 }
 0x5cd   : > { %v5022_v37 = vsel %vm8653_vm0, %v8566_v31, %v5018_v50  ;;  %v4997_v53 = vsel %vm4994_vm1, %v4996_v58, %v4992_v49  ;;  %v5045_v39 = vmul.f32 %v8651_v0, %v8586_v7  ;;  %v6327_v8 = vpop.eup %6326  ;;  %v5060_v31 = vmul.f32 %v8660_v56, %v8590_v25  ;;  %v4764_v58 = vpop.xlane.xlu0 %4763 }
 0x5ce   : > { %v9742_v42 = vmax.f32 %v8604_v11, 0.0  ;;  %v5031_v46 = vsub.f32 1.0, %v5030_v15  ;;  %6328 = vrcp.f32 %v8633_v30  ;;  %v9823_v15 = vmax.f32 %v8214_v28, 0.0 }
 0x5cf   : > { %6330 = vrcp.f32 %v8641_v19  ;;  %v6201_v50 = vmul.f32 -1.442695, %v4834_v18  ;;  %v4835_v49 = vadd.f32 %v8499_v59, %v4761_v29  ;;  %v9825_v28 = vmax.f32 %v8197_v16, 0.0 }
 0x5d0   : > { %v4725_v43 = vmul.f32 %v8203_v24, %v9742_v42  ;;  %v8668_v61 = vmul.f32 %v5012_v20, %v9823_v15  ;;  %v5032_v26 = vmul.f32 %v8595_v33, %v5031_v46  ;;  %6332 = vpow2.f32 %v6200_v62 }
 0x5d1   : > { %v8678_v20 = vmul.f32 %v4997_v53, %v9825_v28  ;;  %v5038_v46 = vand.u32 2147483647, %v8568_v47  ;;  %v5040_v62 = vand.u32 2147483648, %v8568_v47  ;;  %v9826_v18 = vmax.f32 %v8229_v10, 0.0 }
 0x5d2   : > { %v4819_v24 = vsel %vm498_vm4, %v4725_v43, 0.0  ;;  %9824 = vst [vmem:[#allocation22_spill] sm:$0xff] %v8668_v61  ;;  %v5027_v43 = vsel %vm5024_vm2, %v5026_v21, %v5022_v37  ;;  %v5497_v9 = vsel %vm498_vm4, %v8668_v61, 0.0  ;;  %v5033_v16 = vadd.f32 %v8595_v33, %v5032_v26 }
 0x5d3   : > { %4820 = vadd.xlane.f32.xlu1 %v4819_v24  ;;  %v8691_v24 = vmul.f32 %v5027_v43, %v9826_v18  ;;  %v5046_v37 = vsub.f32 1.0, %v5045_v39  ;;  %v8694_v29 = vadd.f32 1.0, %v6327_v8  ;;  %v5061_v53 = vsub.f32 1.0, %v5060_v31 }
 0x5d4   : > { %v8680_v45 = vpop.eup %6328  ;;  %6334 = vpow2.f32 %v6201_v50  ;;  %v6202_v15 = vmul.f32 -1.442695, %v4835_v49  ;;  %v5496_v28 = vsel %vm498_vm4, %v8678_v20, 0.0  ;;  %v4836_v10 = vadd.f32 %v8499_v59, %v4764_v58 }
 0x5d5   : > { %v8687_v4 = vpop.eup %6330  ;;  %9827 = vst [vmem:[#allocation10_spill] sm:$0xff] %v8691_v24  ;;  %v5075_v42 = vmul.f32 %v8680_v45, %v8633_v30  ;;  %v5498_v43 = vadd.f32 %v5497_v9, %v5496_v28  ;;  %vm8708_vm7 = vcmp.eq.f32.partialorder %v5038_v46, 8.507059e+37  ;;  %v5041_v8 = vor.u32 1.1754944e-38, %v5040_v62  ;;  %v4767_v62 = vpop.xlane.xlu1 %4766 }
 0x5d6   : > { %v6333_v21 = vpop.eup %6332  ;;  %v5090_v47 = vmul.f32 %v8687_v4, %v8641_v19  ;;  %v5499_v31 = vsel %vm498_vm4, %v8691_v24, 0.0  ;;  %v5037_v50 = vsel %vm8704_vm6, %v8595_v33, %v5033_v16  ;;  %v5047_v49 = vmul.f32 %v8651_v0, %v5046_v37 }
 0x5d7   : > { %6336 = vrcp.f32 %v8694_v29  ;;  %v5053_v9 = vand.u32 2147483647, %v8586_v7  ;;  %v5062_v46 = vmul.f32 %v8660_v56, %v5061_v53  ;;  %v8723_v58 = vadd.f32 1.0, %v6333_v21 }
 0x5d8   : > { %6338 = vpow2.f32 %v6202_v15  ;;  %v5055_v18 = vand.u32 2147483648, %v8586_v7  ;;  %v5076_v28 = vsub.f32 1.0, %v5075_v42  ;;  %v6203_v24 = vmul.f32 -1.442695, %v4836_v10 }
 0x5d9   : > { %v8727_v33 = vadd.f32 %v5499_v31, %v5498_v43  ;;  %v5042_v16 = vsel %vm8708_vm7, %v5041_v8, %v5037_v50  ;;  %v5068_v37 = vand.u32 2147483647, %v8590_v25  ;;  %v5091_v61 = vsub.f32 1.0, %v5090_v47  ;;  %v4770_v43 = vpop.xlane.xlu2 %4769 }
 0x5da   : > { %v6335_v26 = vpop.eup %6334  ;;  %v5048_v53 = vadd.f32 %v8651_v0, %v5047_v49  ;;  %vm5050_vm9 = vweird.f32 %v8651_v0  ;;  %v5070_v15 = vand.u32 2147483648, %v8590_v25  ;;  %v4837_v21 = vadd.f32 %v8499_v59, %v4767_v62 }
 0x5db   : > { %vm8736_vm10 = vcmp.eq.f32.partialorder %v5053_v9, 8.507059e+37  ;;  %v5063_v10 = vadd.f32 %v8660_v56, %v5062_v46  ;;  %vm5065_vm11 = vweird.f32 %v8660_v56  ;;  %6340 = vrcp.f32 %v8723_v58  ;;  %vm8756_vm12 = vmor %vm5049_vm8, %vm5050_vm9 }
 0x5dc   : > { %v5056_v8 = vor.u32 1.1754944e-38, %v5055_v18  ;;  %v5077_v47 = vmul.f32 %v8680_v45, %v5076_v28  ;;  %v8746_v31 = vadd.f32 1.0, %v6335_v26  ;;  %6342 = vpow2.f32 %v6203_v24  ;;  %vm8771_vm15 = vmor %vm5064_vm13, %vm5065_vm11 }
 0x5dd   : > { %v8743_v39 = vpop.eup %6336  ;;  %v9834_v49 = vmax.f32 %v8243_v22, 0.0  ;;  %vm8761_vm14 = vcmp.eq.f32.partialorder %v5068_v37, 8.507059e+37  ;;  %v5092_v24 = vmul.f32 %v8687_v4, %v5091_v61  ;;  %v5052_v22 = vsel %vm8756_vm12, %v8651_v0, %v5048_v53  ;;  %v4773_v53 = vpop.xlane.xlu0 %4772 }
 0x5de   : > { %v6339_v50 = vpop.eup %6338  ;;  %v5071_v18 = vor.u32 1.1754944e-38, %v5070_v15  ;;  %v6204_v28 = vmul.f32 -1.442695, %v4837_v21  ;;  %v4838_v25 = vadd.f32 %v8499_v59, %v4770_v43  ;;  %v5067_v26 = vsel %vm8771_vm15, %v8660_v56, %v5063_v10 }
 0x5df   : > { %v8750_v9 = vmul.f32 %v5042_v16, %v9834_v49  ;;  %vm5079_vm0 = vweird.f32 %v8633_v30  ;;  %v5083_v61 = vand.u32 2147483647, %v8633_v30  ;;  %v5105_v0 = vmul.f32 %v8743_v39, %v8694_v29 }
 0x5e0   : > { %v5078_v16 = vadd.f32 %v8680_v45, %v5077_v47  ;;  %vm5080_vm1 = vweird.f32 %v8680_v45  ;;  %6344 = vrcp.f32 %v8746_v31  ;;  %v8786_v37 = vadd.f32 1.0, %v6339_v50 }
 0x5e1   : > { %v8788_v15 = vpop.eup %6340  ;;  %v5057_v56 = vsel %vm8736_vm10, %v5056_v8, %v5052_v22  ;;  %v5085_v21 = vand.u32 2147483648, %v8633_v30  ;;  %v5093_v10 = vadd.f32 %v8687_v4, %v5092_v24  ;;  %vm5095_vm2 = vweird.f32 %v8687_v4  ;;  %vm8800_vm3 = vmor %vm5079_vm0, %vm5080_vm1 }
 0x5e2   : > { %v6343_v43 = vpop.eup %6342  ;;  %v5072_v47 = vsel %vm8761_vm14, %v5071_v18, %v5067_v26  ;;  %v5100_v49 = vand.u32 2147483648, %v8641_v19  ;;  %6346 = vpow2.f32 %v6204_v28  ;;  %v6205_v50 = vmul.f32 -1.442695, %v4838_v25 }
 0x5e3   : > { %vm5094_vm5 = vweird.f32 %v8641_v19  ;;  %v5098_v42 = vand.u32 2147483647, %v8641_v19  ;;  %v5106_v8 = vsub.f32 1.0, %v5105_v0  ;;  %v4839_v24 = vadd.f32 %v8499_v59, %v4773_v53 }
 0x5e4   : > { %v5501_v62 = vsel %vm498_vm4, %v8750_v9, 0.0  ;;  %v5082_v22 = vsel %vm8800_vm3, %v8680_v45, %v5078_v16  ;;  %vm8812_vm6 = vmor %vm5094_vm5, %vm5095_vm2  ;;  %v5120_v7 = vmul.f32 %v8788_v15, %v8723_v58  ;;  %6348 = vrcp.f32 %v8786_v37  ;;  %v4776_v45 = vpop.xlane.xlu1 %4775 }
 0x5e5   : > { %v9845_v19 = vmax.f32 %v8258_v34, 0.0  ;;  %v5086_v28 = vor.u32 1.1754944e-38, %v5085_v21  ;;  %v5097_v25 = vsel %vm8812_vm6, %v8687_v4, %v5093_v10  ;;  %v8826_v26 = vadd.f32 1.0, %v6343_v43 }
 0x5e6   : > { %v8828_v0 = vpop.eup %6344  ;;  %v9846_v16 = vmax.f32 %v8272_v54, 0.0  ;;  %vm5084_vm7 = vcmp.eq.f32.partialorder %v5083_v61, 8.507059e+37  ;;  %v5101_v46 = vor.u32 1.1754944e-38, %v5100_v49  ;;  %6350 = vpow2.f32 %v6205_v50 }
 0x5e7   : > { %v8821_v18 = vmul.f32 %v5057_v56, %v9845_v19  ;;  %v5087_v34 = vsel %vm5084_vm7, %v5086_v28, %v5082_v22  ;;  %vm5099_vm8 = vcmp.eq.f32.partialorder %v5098_v42, 8.507059e+37  ;;  %v5107_v56 = vmul.f32 %v8743_v39, %v5106_v8 }
 0x5e8   : > { %v8832_v53 = vmul.f32 %v5072_v47, %v9846_v16  ;;  %v6206_v21 = vmul.f32 -1.442695, %v4839_v24  ;;  %v6347_v19 = vpop.eup %6346  ;;  %v5102_v30 = vsel %vm5099_vm8, %v5101_v46, %v5097_v25  ;;  %v5121_v4 = vsub.f32 1.0, %v5120_v7  ;;  %v4779_v47 = vpop.xlane.xlu2 %4778 }
 0x5e9   : > { %v4840_v10 = vadd.f32 %v8499_v59, %v4776_v45  ;;  %v5502_v43 = vadd.f32 %v5501_v62, %v8727_v33  ;;  %v5503_v54 = vsel %vm498_vm4, %v8821_v18, 0.0  ;;  %v5135_v61 = vmul.f32 %v8828_v0, %v8746_v31 }
 0x5ea   : > { %6352 = vrcp.f32 %v8826_v26  ;;  %v8842_v49 = vpop.eup %6348  ;;  %v5505_v50 = vsel %vm498_vm4, %v8832_v53, 0.0  ;;  %v9847_v42 = vmax.f32 %v8285_v60, 0.0  ;;  %vm5110_vm9 = vweird.f32 %v8743_v39 }
 0x5eb   : > { %v5115_v33 = vand.u32 2147483648, %v8694_v29  ;;  %v9848_v24 = vmax.f32 %v8303_v14, 0.0  ;;  %v5108_v22 = vadd.f32 %v8743_v39, %v5107_v56  ;;  %v8857_v7 = vadd.f32 1.0, %v6347_v19 }
 0x5ec   : > { %v8848_v8 = vmul.f32 %v5087_v34, %v9847_v42  ;;  %6354 = vpow2.f32 %v6206_v21  ;;  %v6351_v28 = vpop.eup %6350  ;;  %v5504_v25 = vadd.f32 %v5503_v54, %v5502_v43  ;;  %v5122_v45 = vmul.f32 %v8788_v15, %v5121_v4 }
 0x5ed   : > { %v8854_v62 = vmul.f32 %v5102_v30, %v9848_v24  ;;  %v6207_v60 = vmul.f32 -1.442695, %v4840_v10  ;;  %v4841_v16 = vadd.f32 %v8499_v59, %v4779_v47  ;;  %vm5109_vm10 = vweird.f32 %v8694_v29 }
 0x5ee   : > { %v5136_v46 = vsub.f32 1.0, %v5135_v61  ;;  %v5150_v14 = vmul.f32 %v8842_v49, %v8786_v37  ;;  %v5506_v34 = vadd.f32 %v5505_v50, %v5504_v25  ;;  %v5507_v56 = vsel %vm498_vm4, %v8848_v8, 0.0  ;;  %vm8868_vm11 = vmor %vm5109_vm10, %vm5110_vm9  ;;  %v4782_v25 = vpop.xlane.xlu0 %4781 }
 0x5ef   : > { %v5113_v19 = vand.u32 2147483647, %v8694_v29  ;;  %v5116_v30 = vor.u32 1.1754944e-38, %v5115_v33  ;;  %v5509_v10 = vsel %vm498_vm4, %v8854_v62, 0.0  ;;  %v5112_v43 = vsel %vm8868_vm11, %v8743_v39, %v5108_v22  ;;  %v5567_v39 = vld [vmem:[%s9685_s7 + $0x8] sm:$0xff] }
 0x5f0   : > { %v8873_v4 = vpop.eup %6352  ;;  %6356 = vrcp.f32 %v8857_v7  ;;  %v8881_v54 = vadd.f32 1.0, %v6351_v28  ;;  %v5123_v61 = vadd.f32 %v8788_v15, %v5122_v45  ;;  %vm5125_vm12 = vweird.f32 %v8788_v15  ;;  %5588 = vmatpush.msrb.mxu2 %v5567_v39 }
 0x5f1   : > { %6358 = vpow2.f32 %v6207_v60  ;;  %v6208_v29 = vmul.f32 -1.442695, %v4841_v16  ;;  %v5508_v50 = vadd.f32 %v5507_v56, %v5506_v34  ;;  %v5130_v42 = vand.u32 2147483648, %v8723_v58 }
 0x5f2   : > { %v6355_v47 = vpop.eup %6354  ;;  %v5137_v33 = vmul.f32 %v8828_v0, %v5136_v46  ;;  %v5151_v24 = vsub.f32 1.0, %v5150_v14  ;;  %vm5114_vm13 = vcmp.eq.f32.partialorder %v5113_v19, 8.507059e+37  ;;  %vm5124_vm14 = vweird.f32 %v8723_v58 }
 0x5f3   : > { %v5128_v22 = vand.u32 2147483647, %v8723_v58  ;;  %v5165_v28 = vmul.f32 %v8873_v4, %v8826_v26  ;;  %v8894_v45 = vadd.f32 %v5509_v10, %v5508_v50  ;;  %v5117_v60 = vsel %vm5114_vm13, %v5116_v30, %v5112_v43  ;;  %vm8898_vm15 = vmor %vm5124_vm14, %vm5125_vm12  ;;  %v4785_v10 = vpop.xlane.xlu1 %4784 }
 0x5f4   : > { %v5143_v46 = vand.u32 2147483647, %v8746_v31  ;;  %6360 = vrcp.f32 %v8881_v54  ;;  %v5127_v58 = vsel %vm8898_vm15, %v8788_v15, %v5123_v61  ;;  %v8907_v14 = vadd.f32 1.0, %v6355_v47 }
 0x5f5   : > { %6362 = vpow2.f32 %v6208_v29  ;;  %v4842_v34 = vadd.f32 %v8499_v59, %v4782_v25  ;;  %v5131_v21 = vor.u32 1.1754944e-38, %v5130_v42  ;;  %v5138_v19 = vadd.f32 %v8828_v0, %v5137_v33 }
 0x5f6   : > { %v8910_v56 = vpop.eup %6356  ;;  %vm5140_vm0 = vweird.f32 %v8828_v0  ;;  %v5152_v30 = vmul.f32 %v8842_v49, %v5151_v24  ;;  %vm5129_vm1 = vcmp.eq.f32.partialorder %v5128_v22, 8.507059e+37  ;;  %vm5139_vm2 = vweird.f32 %v8746_v31  ;;  %v4788_v24 = vpop.xlane.xlu2 %4787 }
 0x5f7   : > { %v6359_v43 = vpop.eup %6358  ;;  %v5145_v15 = vand.u32 2147483648, %v8746_v31  ;;  %v5166_v61 = vsub.f32 1.0, %v5165_v28  ;;  %v9853_v29 = vmax.f32 %v8319_v51, 0.0  ;;  %v5132_v50 = vsel %vm5129_vm1, %v5131_v21, %v5127_v58  ;;  %vm8926_vm5 = vmor %vm5139_vm2, %vm5140_vm0 }
 0x5f8   : > { %vm8921_vm3 = vcmp.eq.f32.partialorder %v5143_v46, 8.507059e+37  ;;  %v5158_v33 = vand.u32 2147483647, %v8786_v37  ;;  %v5180_v31 = vmul.f32 %v8910_v56, %v8857_v7  ;;  %6364 = vrcp.f32 %v8907_v14 }
 0x5f9   : > { %v8919_v47 = vmul.f32 %v5117_v60, %v9853_v29  ;;  %v6209_v51 = vmul.f32 -1.442695, %v4842_v34  ;;  %v4843_v39 = vadd.f32 %v8499_v59, %v4785_v10  ;;  %v5142_v28 = vsel %vm8926_vm5, %v8828_v0, %v5138_v19 }
 0x5fa   : > { %v8934_v22 = vpop.eup %6360  ;;  %v5153_v60 = vadd.f32 %v8842_v49, %v5152_v30  ;;  %vm5155_vm6 = vweird.f32 %v8842_v49  ;;  %v8941_v16 = vadd.f32 1.0, %v6359_v43  ;;  %v5146_v58 = vor.u32 1.1754944e-38, %v5145_v15 }
 0x5fb   : > { %v6363_v46 = vpop.eup %6362  ;;  %v5160_v21 = vand.u32 2147483648, %v8786_v37  ;;  %v5167_v34 = vmul.f32 %v8873_v4, %v5166_v61  ;;  %v4844_v10 = vadd.f32 %v8499_v59, %v4788_v24  ;;  %v5511_v29 = vsel %vm498_vm4, %v8919_v47, 0.0 }
 0x5fc   : > { %v9858_v25 = vmax.f32 %v8334_v35, 0.0  ;;  %vm5154_vm7 = vweird.f32 %v8786_v37  ;;  %vm8953_vm8 = vcmp.eq.f32.partialorder %v5158_v33, 8.507059e+37  ;;  %v5147_v30 = vsel %vm8921_vm3, %v5146_v58, %v5142_v28  ;;  %v5596_v35 = vld [vmem:[%s9687_s9 + $0x8] sm:$0xff] }
 0x5fd   : > { %vm8959_vm9 = vmor %vm5154_vm7, %vm5155_vm6  ;;  %v5181_v15 = vsub.f32 1.0, %v5180_v31  ;;  %6366 = vpow2.f32 %v6209_v51  ;;  %v6210_v61 = vmul.f32 -1.442695, %v4843_v39  ;;  %v8972_v42 = vadd.f32 1.0, %v6363_v46  ;;  %5616 = vmatpush.msrb.mxu3 %v5596_v35 }
 0x5fe   : > { %v8950_v0 = vmul.f32 %v5132_v50, %v9858_v25  ;;  %v5157_v37 = vsel %vm8959_vm9, %v8842_v49, %v5153_v60  ;;  %v5195_v50 = vmul.f32 %v8934_v22, %v8881_v54  ;;  %6368 = vrcp.f32 %v8941_v16  ;;  %v8974_v33 = vpop.eup %6364  ;;  %v4791_v60 = vpop.xlane.xlu0 %4790 }
 0x5ff   : > { %v5161_v24 = vor.u32 1.1754944e-38, %v5160_v21  ;;  %v5168_v31 = vadd.f32 %v8873_v4, %v5167_v34  ;;  %vm5170_vm10 = vweird.f32 %v8873_v4  ;;  %v6211_v51 = vmul.f32 -1.442695, %v4844_v10 }
 0x600   : > { %v5513_v39 = vsel %vm498_vm4, %v8950_v0, 0.0  ;;  %vm5169_vm11 = vweird.f32 %v8826_v26  ;;  %v5173_v49 = vand.u32 2147483647, %v8826_v26  ;;  %v5175_v28 = vand.u32 2147483648, %v8826_v26 }
 0x601   : > { %v9863_v46 = vmax.f32 %v8346_v40, 0.0  ;;  %v5162_v21 = vsel %vm8953_vm8, %v5161_v24, %v5157_v37  ;;  %v5182_v34 = vmul.f32 %v8910_v56, %v5181_v15  ;;  %6370 = vpow2.f32 %v6210_v61  ;;  %vm8991_vm12 = vmor %vm5169_vm11, %vm5170_vm10  ;;  %v4794_v37 = vpop.xlane.xlu1 %4793 }
 0x602   : > { %v5512_v10 = vadd.f32 %v5511_v29, %v8894_v45  ;;  %v5196_v43 = vsub.f32 1.0, %v5195_v50  ;;  %v5210_v26 = vmul.f32 %v8974_v33, %v8907_v14  ;;  %6372 = vrcp.f32 %v8972_v42 }
 0x603   : > { %v8985_v58 = vmul.f32 %v5147_v30, %v9863_v46  ;;  %v6367_v40 = vpop.eup %6366  ;;  %v5172_v19 = vsel %vm8991_vm12, %v8873_v4, %v5168_v31  ;;  %6374 = vpow2.f32 %v6211_v51  ;;  %v4845_v30 = vadd.f32 %v8499_v59, %v4791_v60 }
 0x604   : > { %v9002_v15 = vpop.eup %6368  ;;  %v5514_v45 = vadd.f32 %v5513_v39, %v5512_v10  ;;  %v9866_v29 = vmax.f32 %v8359_v17, 0.0  ;;  %vm5174_vm13 = vcmp.eq.f32.partialorder %v5173_v49, 8.507059e+37  ;;  %v5176_v35 = vor.u32 1.1754944e-38, %v5175_v28 }
 0x605   : > { %v5515_v50 = vsel %vm498_vm4, %v8985_v58, 0.0  ;;  %v5183_v24 = vadd.f32 %v8910_v56, %v5182_v34  ;;  %vm5185_vm14 = vweird.f32 %v8910_v56  ;;  %v5190_v4 = vand.u32 2147483648, %v8857_v7 }
 0x606   : > { %v9006_v61 = vmul.f32 %v5162_v21, %v9866_v29  ;;  %v5177_v31 = vsel %vm5174_vm13, %v5176_v35, %v5172_v19  ;;  %v5197_v51 = vmul.f32 %v8934_v22, %v5196_v43  ;;  %v5211_v39 = vsub.f32 1.0, %v5210_v26 }
 0x607   : > { %v9014_v60 = vadd.f32 1.0, %v6367_v40  ;;  %v6371_v17 = vpop.eup %6370  ;;  %vm5184_vm15 = vweird.f32 %v8857_v7  ;;  %v5225_v49 = vmul.f32 %v9002_v15, %v8941_v16  ;;  %v6212_v28 = vmul.f32 -1.442695, %v4845_v30 }
 0x608   : > { %v4846_v46 = vadd.f32 %v8499_v59, %v4794_v37  ;;  %v9020_v21 = vpop.eup %6372  ;;  %v5516_v34 = vadd.f32 %v5515_v50, %v5514_v45  ;;  %v5517_v10 = vsel %vm498_vm4, %v9006_v61, 0.0  ;;  %vm9024_vm0 = vmor %vm5184_vm15, %vm5185_vm14  ;;  %v5188_v43 = vand.u32 2147483647, %v8857_v7  ;;  %v4797_v45 = vpop.xlane.xlu2 %4796 }
 0x609   : > { %v6375_v26 = vpop.eup %6374  ;;  %v9869_v40 = vmax.f32 %v8371_v32, 0.0  ;;  %v5187_v30 = vsel %vm9024_vm0, %v8910_v56, %v5183_v24  ;;  %v5191_v29 = vor.u32 1.1754944e-38, %v5190_v4  ;;  %vm5200_vm1 = vweird.f32 %v8934_v22 }
 0x60a   : > { %v5198_v35 = vadd.f32 %v8934_v22, %v5197_v51  ;;  %v5212_v37 = vmul.f32 %v8974_v33, %v5211_v39  ;;  %6376 = vrcp.f32 %v9014_v60  ;;  %v9040_v7 = vadd.f32 1.0, %v6371_v17 }
 0x60b   : > { %v9031_v19 = vmul.f32 %v5177_v31, %v9869_v40  ;;  %v5226_v50 = vsub.f32 1.0, %v5225_v49  ;;  %v5240_v32 = vmul.f32 %v9020_v21, %v8972_v42  ;;  %6378 = vpow2.f32 %v6212_v28 }
 0x60c   : > { %v6213_v31 = vmul.f32 -1.442695, %v4846_v46  ;;  %vm5199_vm2 = vweird.f32 %v8881_v54  ;;  %v5205_v56 = vand.u32 2147483648, %v8881_v54  ;;  %v9046_v24 = vadd.f32 1.0, %v6375_v26 }
 0x60d   : > { %v4847_v4 = vadd.f32 %v8499_v59, %v4797_v45  ;;  %v5518_v51 = vadd.f32 %v5517_v10, %v5516_v34  ;;  %v5519_v39 = vsel %vm498_vm4, %v9031_v19, 0.0  ;;  %vm5189_vm3 = vcmp.eq.f32.partialorder %v5188_v43, 8.507059e+37  ;;  %vm9053_vm5 = vmor %vm5199_vm2, %vm5200_vm1 }
 0x60e   : > { %v5203_v49 = vand.u32 2147483647, %v8881_v54  ;;  %v5192_v28 = vsel %vm5189_vm3, %v5191_v29, %v5187_v30  ;;  %v5202_v46 = vsel %vm9053_vm5, %v8934_v22, %v5198_v35  ;;  %vm5215_vm6 = vweird.f32 %v8974_v33  ;;  %v4800_v43 = vpop.xlane.xlu0 %4799 }
 0x60f   : > { %6380 = vrcp.f32 %v9040_v7  ;;  %v5213_v34 = vadd.f32 %v8974_v33, %v5212_v37  ;;  %v5227_v10 = vmul.f32 %v9002_v15, %v5226_v50  ;;  %v5241_v25 = vsub.f32 1.0, %v5240_v32 }
 0x610   : > { %6382 = vpow2.f32 %v6213_v31  ;;  %v9065_v26 = vpop.eup %6376  ;;  %v5206_v40 = vor.u32 1.1754944e-38, %v5205_v56  ;;  %v5220_v54 = vand.u32 2147483648, %v8907_v14  ;;  %v6214_v30 = vmul.f32 -1.442695, %v4847_v4 }
 0x611   : > { %6384 = vrcp.f32 %v9046_v24  ;;  %v6379_v22 = vpop.eup %6378  ;;  %v9872_v29 = vmax.f32 %v8384_v38, 0.0  ;;  %vm5204_vm7 = vcmp.eq.f32.partialorder %v5203_v49, 8.507059e+37  ;;  %vm5214_vm8 = vweird.f32 %v8907_v14 }
 0x612   : > { %v5218_v35 = vand.u32 2147483647, %v8907_v14  ;;  %v5520_v37 = vadd.f32 %v5519_v39, %v5518_v51  ;;  %v5207_v50 = vsel %vm5204_vm7, %v5206_v40, %v5202_v46  ;;  %vm9077_vm9 = vmor %vm5214_vm8, %vm5215_vm6  ;;  %v5235_v31 = vand.u32 2147483648, %v8941_v16 }
 0x613   : > { %v9071_v45 = vmul.f32 %v5192_v28, %v9872_v29  ;;  %v4848_v56 = vadd.f32 %v8499_v59, %v4800_v43  ;;  %v5217_v38 = vsel %vm9077_vm9, %v8974_v33, %v5213_v34  ;;  %v5228_v4 = vadd.f32 %v9002_v15, %v5227_v10 }
 0x614   : > { %vm5230_vm10 = vweird.f32 %v9002_v15  ;;  %v5242_v14 = vmul.f32 %v9020_v21, %v5241_v25  ;;  %v5221_v39 = vor.u32 1.1754944e-38, %v5220_v54  ;;  %v5255_v17 = vmul.f32 %v9065_v26, %v9014_v60 }
 0x615   : > { %v9089_v51 = vpop.eup %6380  ;;  %v9093_v49 = vadd.f32 1.0, %v6379_v22  ;;  %6386 = vpow2.f32 %v6214_v30  ;;  %v5521_v33 = vsel %vm498_vm4, %v9071_v45, 0.0  ;;  %vm5219_vm11 = vcmp.eq.f32.partialorder %v5218_v35, 8.507059e+37 }
 0x616   : > { %v4803_v28 = vpop.xlane.xlu1 %4802  ;;  %v6383_v46 = vpop.eup %6382  ;;  %vm5229_vm12 = vweird.f32 %v8941_v16  ;;  %v5233_v34 = vand.u32 2147483647, %v8941_v16  ;;  %v9875_v25 = vmax.f32 %v8394_v12, 0.0  ;;  %v5222_v40 = vsel %vm5219_vm11, %v5221_v39, %v5217_v38 }
 0x617   : > { %v9099_v10 = vpop.eup %6384  ;;  %vm9107_vm13 = vmor %vm5229_vm12, %vm5230_vm10  ;;  %v5236_v30 = vor.u32 1.1754944e-38, %v5235_v31  ;;  %v6215_v22 = vmul.f32 -1.442695, %v4848_v56  ;;  %v5243_v16 = vadd.f32 %v9020_v21, %v5242_v14  ;;  %vm5245_vm14 = vweird.f32 %v9020_v21 }
 0x618   : > { %v9103_v43 = vmul.f32 %v5207_v50, %v9875_v25  ;;  %v5232_v29 = vsel %vm9107_vm13, %v9002_v15, %v5228_v4  ;;  %v4849_v12 = vadd.f32 %v8499_v59, %v4803_v28  ;;  %v5256_v35 = vsub.f32 1.0, %v5255_v17 }
 0x619   : > { %v5270_v50 = vmul.f32 %v9089_v51, %v9040_v7  ;;  %6388 = vrcp.f32 %v9093_v49  ;;  %v9120_v32 = vadd.f32 1.0, %v6383_v46  ;;  %v9878_v31 = vmax.f32 %v8404_v44, 0.0 }
 0x61a   : > { %vm5244_vm15 = vweird.f32 %v8972_v42  ;;  %v5250_v15 = vand.u32 2147483648, %v8972_v42  ;;  %v5285_v38 = vmul.f32 %v9099_v10, %v9046_v24  ;;  %v5522_v39 = vadd.f32 %v5521_v33, %v5520_v37 }
 0x61b   : > { %v9124_v56 = vmul.f32 %v5222_v40, %v9878_v31  ;;  %v6387_v14 = vpop.eup %6386  ;;  %vm5234_vm0 = vcmp.eq.f32.partialorder %v5233_v34, 8.507059e+37  ;;  %vm9130_vm1 = vmor %vm5244_vm15, %vm5245_vm14  ;;  %v5248_v28 = vand.u32 2147483647, %v8972_v42  ;;  %6390 = vpow2.f32 %v6215_v22 }
 0x61c   : > { %v5523_v44 = vsel %vm498_vm4, %v9103_v43, 0.0  ;;  %v5237_v46 = vsel %vm5234_vm0, %v5236_v30, %v5232_v29  ;;  %v5247_v25 = vsel %vm9130_vm1, %v9020_v21, %v5243_v16  ;;  %v6216_v40 = vmul.f32 -1.442695, %v4849_v12 }
 0x61d   : > { %v5257_v54 = vmul.f32 %v9065_v26, %v5256_v35  ;;  %v5271_v37 = vsub.f32 1.0, %v5270_v50  ;;  %6392 = vrcp.f32 %v9120_v32  ;;  %v5525_v42 = vsel %vm498_vm4, %v9124_v56, 0.0 }
 0x61e   : > { %v4806_v4 = vpop.xlane.xlu2 %4805  ;;  %v5251_v34 = vor.u32 1.1754944e-38, %v5250_v15  ;;  %v5286_v22 = vsub.f32 1.0, %v5285_v38  ;;  %v9145_v31 = vadd.f32 1.0, %v6387_v14  ;;  %v9881_v29 = vmax.f32 %v8413_v5, 0.0 }
 0x61f   : > { %v4850_v33 = vadd.f32 %v8499_v59, %v4806_v4  ;;  %v9147_v30 = vpop.eup %6388  ;;  %vm5249_vm2 = vcmp.eq.f32.partialorder %v5248_v28, 8.507059e+37  ;;  %v5263_v16 = vand.u32 2147483647, %v9014_v60  ;;  %v5265_v12 = vand.u32 2147483648, %v9014_v60 }
 0x620   : > { %v9151_v21 = vmul.f32 %v5237_v46, %v9881_v29  ;;  %v5524_v35 = vadd.f32 %v5523_v44, %v5522_v39  ;;  %v5252_v50 = vsel %vm5249_vm2, %v5251_v34, %v5247_v25  ;;  %6394 = vpow2.f32 %v6216_v40 }
 0x621   : > { %v6391_v4 = vpop.eup %6390  ;;  %v5258_v15 = vadd.f32 %v9065_v26, %v5257_v54  ;;  %vm5260_vm3 = vweird.f32 %v9065_v26  ;;  %v5272_v38 = vmul.f32 %v9089_v51, %v5271_v37  ;;  %v6217_v14 = vmul.f32 -1.442695, %v4850_v33 }
 0x622   : > { %v5526_v17 = vadd.f32 %v5525_v42, %v5524_v35  ;;  %v5287_v5 = vmul.f32 %v9099_v10, %v5286_v22  ;;  %v5300_v28 = vmul.f32 %v9147_v30, %v9093_v49  ;;  %6396 = vrcp.f32 %v9145_v31 }
 0x623   : > { %v9162_v46 = vpop.eup %6392  ;;  %v5527_v39 = vsel %vm498_vm4, %v9151_v21, 0.0  ;;  %vm5259_vm5 = vweird.f32 %v9014_v60  ;;  %vm9167_vm6 = vcmp.eq.f32.partialorder %v5263_v16, 8.507059e+37  ;;  %v5266_v25 = vor.u32 1.1754944e-38, %v5265_v12 }
 0x624   : > { %v9884_v54 = vmax.f32 %v8422_v52, 0.0  ;;  %vm9175_vm7 = vmor %vm5259_vm5, %vm5260_vm3  ;;  %vm5275_vm8 = vweird.f32 %v9089_v51  ;;  %v9180_v42 = vadd.f32 1.0, %v6391_v4  ;;  %v5273_v22 = vadd.f32 %v9089_v51, %v5272_v38 }
 0x625   : > { %v5262_v34 = vsel %vm9175_vm7, %v9065_v26, %v5258_v15  ;;  %vm5290_vm9 = vweird.f32 %v9099_v10  ;;  %6398 = vpow2.f32 %v6217_v14  ;;  %v5288_v29 = vadd.f32 %v9099_v10, %v5287_v5 }
 0x626   : > { %v4809_v40 = vpop.xlane.xlu0 %4808  ;;  %v9173_v37 = vmul.f32 %v5252_v50, %v9884_v54  ;;  %v6395_v52 = vpop.eup %6394  ;;  %v5301_v16 = vsub.f32 1.0, %v5300_v28  ;;  %v5315_v12 = vmul.f32 %v9162_v46, %v9120_v32  ;;  %vm5274_vm10 = vweird.f32 %v9040_v7 }
 0x627   : > { %v4851_v60 = vadd.f32 %v8499_v59, %v4809_v40  ;;  %v5278_v50 = vand.u32 2147483647, %v9040_v7  ;;  %v5280_v4 = vand.u32 2147483648, %v9040_v7  ;;  %v5295_v26 = vand.u32 2147483648, %v9046_v24  ;;  %vm9201_vm11 = vmor %vm5274_vm10, %vm5275_vm8 }
 0x628   : > { %9885 = vst [vmem:[#allocation14_spill] sm:$0xff] %v9173_v37  ;;  %v9195_v15 = vpop.eup %6396  ;;  %v5267_v38 = vsel %vm9167_vm6, %v5266_v25, %v5262_v34  ;;  %vm5289_vm12 = vweird.f32 %v9046_v24  ;;  %v5293_v5 = vand.u32 2147483647, %v9046_v24  ;;  %6400 = vrcp.f32 %v9180_v42 }
 0x629   : > { %v6218_v35 = vmul.f32 -1.442695, %v4851_v60  ;;  %v5528_v7 = vadd.f32 %v5527_v39, %v5526_v17  ;;  %v5529_v28 = vsel %vm498_vm4, %v9173_v37, 0.0  ;;  %vm9212_vm13 = vmor %vm5289_vm12, %vm5290_vm9  ;;  %v9216_v25 = vadd.f32 1.0, %v6395_v52 }
 0x62a   : > { %v5277_v40 = vsel %vm9201_vm11, %v9089_v51, %v5273_v22  ;;  %v5292_v24 = vsel %vm9212_vm13, %v9099_v10, %v5288_v29  ;;  %v5302_v17 = vmul.f32 %v9147_v30, %v5301_v16  ;;  %v5316_v39 = vsub.f32 1.0, %v5315_v12 }
 0x62b   : > { %6402 = vpow2.f32 %v6218_v35  ;;  %v6399_v54 = vpop.eup %6398  ;;  %v9892_v33 = vmax.f32 %v8431_v48, 0.0  ;;  %v5281_v34 = vor.u32 1.1754944e-38, %v5280_v4  ;;  %v5296_v52 = vor.u32 1.1754944e-38, %v5295_v26 }
 0x62c   : > { %v5330_v35 = vmul.f32 %v9195_v15, %v9145_v31  ;;  %v5530_v37 = vadd.f32 %v5529_v28, %v5528_v7  ;;  %vm5279_vm14 = vcmp.eq.f32.partialorder %v5278_v50, 8.507059e+37  ;;  %vm5294_vm15 = vcmp.eq.f32.partialorder %v5293_v5, 8.507059e+37 }
 0x62d   : > { %v9227_v60 = vmul.f32 %v5267_v38, %v9892_v33  ;;  %v5282_v22 = vsel %vm5279_vm14, %v5281_v34, %v5277_v40  ;;  %v5297_v14 = vsel %vm5294_vm15, %v5296_v52, %v5292_v24  ;;  %6404 = vrcp.f32 %v9216_v25 }
 0x62e   : > { %v4812_v51 = vpop.xlane.xlu1 %4811  ;;  %v9233_v29 = vpop.eup %6400  ;;  %v5303_v48 = vadd.f32 %v9147_v30, %v5302_v17  ;;  %vm5305_vm0 = vweird.f32 %v9147_v30  ;;  %v5317_v16 = vmul.f32 %v9162_v46, %v5316_v39  ;;  %v9238_v12 = vadd.f32 1.0, %v6399_v54 }
 0x62f   : > { %v4852_v10 = vadd.f32 %v8499_v59, %v4812_v51  ;;  %v5531_v50 = vsel %vm498_vm4, %v9227_v60, 0.0  ;;  %v5310_v26 = vand.u32 2147483648, %v9093_v49  ;;  %v5331_v38 = vsub.f32 1.0, %v5330_v35 }
 0x630   : > { %v9893_v7 = vmax.f32 %v8439_v6, 0.0  ;;  %v9894_v44 = vmax.f32 %v8449_v55, 0.0  ;;  %vm5304_vm1 = vweird.f32 %v9093_v49  ;;  %v5308_v24 = vand.u32 2147483647, %v9093_v49 }
 0x631   : > { %v6403_v4 = vpop.eup %6402  ;;  %v6219_v5 = vmul.f32 -1.442695, %v4852_v10  ;;  %vm9253_vm2 = vmor %vm5304_vm1, %vm5305_vm0  ;;  %v5323_v39 = vand.u32 2147483647, %v9120_v32  ;;  %v5345_v54 = vmul.f32 %v9233_v29, %v9180_v42  ;;  %v5318_v34 = vadd.f32 %v9162_v46, %v5317_v16 }
 0x632   : > { %v9245_v28 = vmul.f32 %v5282_v22, %v9893_v7  ;;  %v9249_v40 = vmul.f32 %v5297_v14, %v9894_v44  ;;  %v9260_v6 = vadd.f32 1.0, %v6403_v4  ;;  %v5307_v55 = vsel %vm9253_vm2, %v9147_v30, %v5303_v48  ;;  %v5566_v30 = vld [vmem:[%s9685_s7] sm:$0xff] }
 0x633   : > { %6406 = vpow2.f32 %v6219_v5  ;;  %vm5320_vm3 = vweird.f32 %v9162_v46  ;;  %v9268_v49 = vpop.eup %6404  ;;  %v5311_v52 = vor.u32 1.1754944e-38, %v5310_v26  ;;  %v5325_v35 = vand.u32 2147483648, %v9120_v32  ;;  %5589 = vmatpush.msrb.mxu2 %v5566_v30 }
 0x634   : > { %6408 = vrcp.f32 %v9238_v12  ;;  %v5332_v51 = vmul.f32 %v9195_v15, %v5331_v38  ;;  %v5532_v14 = vadd.f32 %v5531_v50, %v5530_v37  ;;  %v5533_v10 = vsel %vm498_vm4, %v9245_v28, 0.0 }
 0x635   : > { %vm5309_vm5 = vcmp.eq.f32.partialorder %v5308_v24, 8.507059e+37  ;;  %vm5319_vm6 = vweird.f32 %v9120_v32  ;;  %v5346_v4 = vsub.f32 1.0, %v5345_v54  ;;  %6410 = vrcp.f32 %v9260_v6 }
 0x636   : > { %v4815_v33 = vpop.xlane.xlu2 %4814  ;;  %v5312_v48 = vsel %vm5309_vm5, %v5311_v52, %v5307_v55  ;;  %vm9279_vm7 = vmor %vm5319_vm6, %vm5320_vm3  ;;  %v5535_v37 = vsel %vm498_vm4, %v9249_v40, 0.0  ;;  %vm5324_vm8 = vcmp.eq.f32.partialorder %v5323_v39, 8.507059e+37  ;;  %v5360_v50 = vmul.f32 %v9268_v49, %v9216_v25 }
 0x637   : > { %v4853_v22 = vadd.f32 %v8499_v59, %v4815_v33  ;;  %v5322_v32 = vsel %vm9279_vm7, %v9162_v46, %v5318_v34  ;;  %v5326_v5 = vor.u32 1.1754944e-38, %v5325_v35  ;;  %v5333_v7 = vadd.f32 %v9195_v15, %v5332_v51 }
 0x638   : > { %vm5335_vm9 = vweird.f32 %v9195_v15  ;;  %v9899_v24 = vmax.f32 %v8460_v23, 0.0  ;;  %v5338_v54 = vand.u32 2147483647, %v9145_v31  ;;  %v5340_v46 = vand.u32 2147483648, %v9145_v31 }
 0x639   : > { %v6220_v26 = vmul.f32 -1.442695, %v4853_v22  ;;  %v6407_v38 = vpop.eup %6406  ;;  %v5534_v33 = vadd.f32 %v5533_v10, %v5532_v14  ;;  %v5327_v55 = vsel %vm5324_vm8, %v5326_v5, %v5322_v32  ;;  %vm5334_vm10 = vweird.f32 %v9145_v31 }
 0x63a   : > { %v9293_v44 = vpop.eup %6408  ;;  %v9297_v17 = vmul.f32 %v5312_v48, %v9899_v24  ;;  %v9301_v39 = vadd.f32 1.0, %v6407_v38  ;;  %v5347_v34 = vmul.f32 %v9233_v29, %v5346_v4  ;;  %vm9305_vm11 = vmor %vm5334_vm10, %vm5335_vm9  ;;  %v5361_v35 = vsub.f32 1.0, %v5360_v50 }
 0x63b   : > { %6412 = vpow2.f32 %v6220_v26  ;;  %v9310_v51 = vpop.eup %6410  ;;  %v5536_v22 = vadd.f32 %v5535_v37, %v5534_v33  ;;  %v5337_v14 = vsel %vm9305_vm11, %v9195_v15, %v5333_v7  ;;  %v5375_v31 = vmul.f32 %v9293_v44, %v9238_v12 }
 0x63c   : > { %6414 = vrcp.f32 %v9301_v39  ;;  %v5537_v30 = vsel %vm498_vm4, %v9297_v17, 0.0  ;;  %v9902_v48 = vmax.f32 %v8470_v3, 0.0  ;;  %vm5339_vm12 = vcmp.eq.f32.partialorder %v5338_v54, 8.507059e+37 }
 0x63d   : > { %v5341_v4 = vor.u32 1.1754944e-38, %v5340_v46  ;;  %v5348_v37 = vadd.f32 %v9233_v29, %v5347_v34  ;;  %vm5350_vm13 = vweird.f32 %v9233_v29  ;;  %v5353_v15 = vand.u32 2147483647, %v9180_v42 }
 0x63e   : > { %v4818_v23 = vpop.xlane.xlu0 %4817  ;;  %v9322_v16 = vmul.f32 %v5327_v55, %v9902_v48  ;;  %v5362_v38 = vmul.f32 %v9268_v49, %v5361_v35  ;;  %v5390_v5 = vmul.f32 %v9310_v51, %v9260_v6  ;;  %vm5349_vm14 = vweird.f32 %v9180_v42 }
 0x63f   : > { %v4854_v10 = vadd.f32 %v8499_v59, %v4818_v23  ;;  %v5342_v50 = vsel %vm5339_vm12, %v5341_v4, %v5337_v14  ;;  %v5355_v3 = vand.u32 2147483648, %v9180_v42  ;;  %v5376_v24 = vsub.f32 1.0, %v5375_v31  ;;  %vm9338_vm15 = vmor %vm5349_vm14, %vm5350_vm13 }
 0x640   : > { %v5538_v46 = vadd.f32 %v5537_v30, %v5536_v22  ;;  %v5539_v33 = vsel %vm498_vm4, %v9322_v16, 0.0  ;;  %v5370_v34 = vand.u32 2147483648, %v9216_v25  ;;  %v9905_v52 = vmax.f32 %v8478_v1, 0.0 }
 0x641   : > { %v6413_v26 = vpop.eup %6412  ;;  %v6221_v32 = vmul.f32 -1.442695, %v4854_v10  ;;  %v5352_v42 = vsel %vm9338_vm15, %v9233_v29, %v5348_v37  ;;  %vm9351_vm0 = vcmp.eq.f32.partialorder %v5353_v15, 8.507059e+37  ;;  %v5363_v31 = vadd.f32 %v9268_v49, %v5362_v38 }
 0x642   : > { %v9330_v7 = vadd.f32 1.0, %v6413_v26  ;;  %v9334_v54 = vpop.eup %6414  ;;  %v9346_v35 = vmul.f32 %v5342_v50, %v9905_v52  ;;  %vm5365_vm1 = vweird.f32 %v9268_v49  ;;  %v5391_v10 = vsub.f32 1.0, %v5390_v5 }
 0x643   : > { %6416 = vpow2.f32 %v6221_v32  ;;  %v5405_v22 = vmul.f32 %v9334_v54, %v9301_v39  ;;  %v5540_v30 = vadd.f32 %v5539_v33, %v5538_v46  ;;  %v5356_v48 = vor.u32 1.1754944e-38, %v5355_v3 }
 0x644   : > { %6418 = vrcp.f32 %v9330_v7  ;;  %v5377_v4 = vmul.f32 %v9293_v44, %v5376_v24  ;;  %vm5364_vm2 = vweird.f32 %v9216_v25  ;;  %v5368_v26 = vand.u32 2147483647, %v9216_v25 }
 0x645   : > { %v5406_v29 = vsub.f32 1.0, %v5405_v22  ;;  %v5371_v37 = vor.u32 1.1754944e-38, %v5370_v34  ;;  %v5541_v50 = vsel %vm498_vm4, %v9346_v35, 0.0  ;;  %v5357_v38 = vsel %vm9351_vm0, %v5356_v48, %v5352_v42  ;;  %vm9367_vm3 = vmor %vm5364_vm2, %vm5365_vm1 }
 0x646   : > { %v4821_v14 = vpop.xlane.xlu1 %4820  ;;  %v5383_v5 = vand.u32 2147483647, %v9238_v12  ;;  %v5385_v3 = vand.u32 2147483648, %v9238_v12  ;;  %v5367_v25 = vsel %vm9367_vm3, %v9268_v49, %v5363_v31  ;;  %v5392_v46 = vmul.f32 %v9310_v51, %v5391_v10 }
 0x647   : > { %v4855_v1 = vadd.f32 %v8499_v59, %v4821_v14  ;;  %v5378_v55 = vadd.f32 %v9293_v44, %v5377_v4  ;;  %vm5380_vm5 = vweird.f32 %v9293_v44  ;;  %v5407_v34 = vmul.f32 %v9334_v54, %v5406_v29 }
 0x648   : > { %v5542_v42 = vadd.f32 %v5541_v50, %v5540_v30  ;;  %vm5369_vm6 = vcmp.eq.f32.partialorder %v5368_v26, 8.507059e+37  ;;  %vm5379_vm7 = vweird.f32 %v9238_v12  ;;  %v9910_v49 = vmax.f32 %v8487_v36, 0.0 }
 0x649   : > { %v6222_v15 = vmul.f32 -1.442695, %v4855_v1  ;;  %v6417_v32 = vpop.eup %6416  ;;  %v5372_v22 = vsel %vm5369_vm6, %v5371_v37, %v5367_v25  ;;  %v5400_v14 = vand.u32 2147483648, %v9260_v6  ;;  %vm9393_vm8 = vmor %vm5379_vm7, %vm5380_vm5  ;;  %vm9397_vm9 = vcmp.eq.f32.partialorder %v5383_v5, 8.507059e+37 }
 0x64a   : > { %v9373_v24 = vpop.eup %6418  ;;  %v9379_v33 = vadd.f32 1.0, %v6417_v32  ;;  %v9390_v23 = vmul.f32 %v5357_v38, %v9910_v49  ;;  %v5386_v30 = vor.u32 1.1754944e-38, %v5385_v3  ;;  %v5393_v12 = vadd.f32 %v9310_v51, %v5392_v46 }
 0x64b   : > { %6420 = vpow2.f32 %v6222_v15  ;;  %v5420_v52 = vmul.f32 %v9373_v24, %v9330_v7  ;;  %vm5395_vm10 = vweird.f32 %v9310_v51  ;;  %v5382_v36 = vsel %vm9393_vm8, %v9293_v44, %v5378_v55 }
 0x64c   : > { %6422 = vrcp.f32 %v9379_v33  ;;  %v5408_v48 = vadd.f32 %v9334_v54, %v5407_v34  ;;  %vm5410_vm11 = vweird.f32 %v9334_v54  ;;  %v9915_v26 = vmax.f32 %v8497_v2, 0.0 }
 0x64d   : > { %v5421_v31 = vsub.f32 1.0, %v5420_v52  ;;  %vm5394_vm12 = vweird.f32 %v9260_v6  ;;  %v5398_v15 = vand.u32 2147483647, %v9260_v6  ;;  %v5415_v32 = vand.u32 2147483648, %v9301_v39 }
 0x64e   : > { %v9411_v37 = vmul.f32 %v5372_v22, %v9915_v26  ;;  %vm9416_vm13 = vmor %vm5394_vm12, %vm5395_vm10  ;;  %v5401_v44 = vor.u32 1.1754944e-38, %v5400_v14  ;;  %vm5409_vm14 = vweird.f32 %v9301_v39  ;;  %v5413_v38 = vand.u32 2147483647, %v9301_v39 }
 0x64f   : > { %v5422_v4 = vmul.f32 %v9373_v24, %v5421_v31  ;;  %v5387_v5 = vsel %vm9397_vm9, %v5386_v30, %v5382_v36  ;;  %v5397_v6 = vsel %vm9416_vm13, %v9310_v51, %v5393_v12  ;;  %vm9431_vm15 = vmor %vm5409_vm14, %vm5410_vm11  ;;  %vm5425_vm0 = vweird.f32 %v9373_v24 }
 0x650   : > { %v5412_v39 = vsel %vm9431_vm15, %v9334_v54, %v5408_v48  ;;  %v5430_v46 = vand.u32 2147483648, %v9330_v7  ;;  %vm5399_vm1 = vcmp.eq.f32.partialorder %v5398_v15, 8.507059e+37  ;;  %v5416_v51 = vor.u32 1.1754944e-38, %v5415_v32  ;;  %v5595_v48 = vld [vmem:[%s9687_s9] sm:$0xff] }
 0x651   : > { %v6421_v29 = vpop.eup %6420  ;;  %v5423_v25 = vadd.f32 %v9373_v24, %v5422_v4  ;;  %vm5424_vm2 = vweird.f32 %v9330_v7  ;;  %v5428_v34 = vand.u32 2147483647, %v9330_v7  ;;  %v5543_v52 = vsel %vm498_vm4, %v9390_v23, 0.0  ;;  %5617 = vmatpush.msrb.mxu3 %v5595_v48 }
 0x652   : > { %v9422_v59 = vadd.f32 1.0, %v6421_v29  ;;  %v6423_v2 = vpop.eup %6422  ;;  %v5402_v49 = vsel %vm5399_vm1, %v5401_v44, %v5397_v6  ;;  %vm5414_vm3 = vcmp.eq.f32.partialorder %v5413_v38, 8.507059e+37  ;;  %vm9447_vm5 = vmor %vm5424_vm2, %vm5425_vm0  ;;  %v9922_v14 = vmax.f32 %v8509_v27, 0.0 }
 0x653   : > { %v5435_v55 = vmul.f32 %v6423_v2, %v9379_v33  ;;  %v5417_v10 = vsel %vm5414_vm3, %v5416_v51, %v5412_v39  ;;  %v5427_v1 = vsel %vm9447_vm5, %v9373_v24, %v5423_v25  ;;  %v5445_v7 = vand.u32 2147483648, %v9379_v33 }
 0x654   : > { %6424 = vrcp.f32 %v9422_v59  ;;  %v9453_v31 = vmul.f32 %v5387_v5, %v9922_v14  ;;  %v5431_v30 = vor.u32 1.1754944e-38, %v5430_v46  ;;  %vm5440_vm6 = vweird.f32 %v6423_v2 }
 0x655   : > { %v5436_v54 = vsub.f32 1.0, %v5435_v55  ;;  %v5443_v36 = vand.u32 2147483647, %v9379_v33  ;;  %v5544_v4 = vadd.f32 %v5543_v52, %v5542_v42  ;;  %v5545_v27 = vsel %vm498_vm4, %v9411_v37, 0.0 }
 0x656   : > { %v9923_v29 = vmax.f32 %v8520_v63, 0.0  ;;  %vm5429_vm7 = vcmp.eq.f32.partialorder %v5428_v34, 8.507059e+37  ;;  %v9924_v15 = vmax.f32 %v8533_v13, 0.0  ;;  %vm5439_vm8 = vweird.f32 %v9379_v33 }
 0x657   : > { %v5437_v12 = vmul.f32 %v6423_v2, %v5436_v54  ;;  %v5432_v50 = vsel %vm5429_vm7, %v5431_v30, %v5427_v1  ;;  %v5547_v42 = vsel %vm498_vm4, %v9453_v31, 0.0  ;;  %vm5441_vm9 = vmor %vm5439_vm8, %vm5440_vm6  ;;  %v5446_v38 = vor.u32 1.1754944e-38, %v5445_v7 }
 0x658   : > { %v9467_v26 = vmul.f32 %v5402_v49, %v9923_v29  ;;  %v9471_v32 = vmul.f32 %v5417_v10, %v9924_v15  ;;  %v5546_v5 = vadd.f32 %v5545_v27, %v5544_v4  ;;  %vm5444_vm10 = vcmp.eq.f32.partialorder %v5443_v36, 8.507059e+37 }
 0x659   : > { %v5438_v44 = vadd.f32 %v6423_v2, %v5437_v12  ;;  %v9925_v13 = vmax.f32 %v8556_v57, 0.0  ;;  %v5460_v51 = vand.u32 2147483648, %v9422_v59  ;;  %v9926_v34 = vmax.f32 %v8579_v41, 0.0 }
 0x65a   : > { %v6425_v24 = vpop.eup %6424  ;;  %v5549_v3 = vsel %vm498_vm4, %v9467_v26, 0.0  ;;  %v5548_v33 = vadd.f32 %v5547_v42, %v5546_v5  ;;  %v5551_v55 = vsel %vm498_vm4, %v9471_v32, 0.0  ;;  %v5458_v49 = vand.u32 2147483647, %v9422_v59 }
 0x65b   : > { %v5450_v63 = vmul.f32 %v6425_v24, %v9422_v59  ;;  %v5442_v6 = vsel %vm5441_vm9, %v6423_v2, %v5438_v44  ;;  %v9481_v25 = vmul.f32 %v5432_v50, %v9925_v13  ;;  %vm5455_vm11 = vweird.f32 %v6425_v24 }
 0x65c   : > { %v5447_v39 = vsel %vm5444_vm10, %v5446_v38, %v5442_v6  ;;  %v5550_v22 = vadd.f32 %v5549_v3, %v5548_v33  ;;  %vm5454_vm12 = vweird.f32 %v9422_v59  ;;  %v5461_v10 = vor.u32 1.1754944e-38, %v5460_v51  ;;  %v5597_v6 = vld [vmem:[%s9688_s10] sm:$0x1] }
 0x65d   : > { %v5451_v46 = vsub.f32 1.0, %v5450_v63  ;;  %v9488_v52 = vmul.f32 %v5447_v39, %v9926_v34  ;;  %v5553_v57 = vsel %vm498_vm4, %v9481_v25, 0.0  ;;  %vm5456_vm13 = vmor %vm5454_vm12, %vm5455_vm11  ;;  %vm5459_vm14 = vcmp.eq.f32.partialorder %v5458_v49, 8.507059e+37 }
 0x65e   : > { %v5552_v14 = vadd.f32 %v5551_v55, %v5550_v22  ;;  %v9927_v12 = vmax.f32 %v8604_v11, 0.0  ;;  %v5570_v11 = vld [vmem:[%s9686_s8] sm:$0x1]  ;;  %vm5598_vm15 = vcmask 130048  }
 0x65f   : > { %v5452_v2 = vmul.f32 %v6425_v24, %v5451_v46  ;;  %v5555_v1 = vsel %vm498_vm4, %v9488_v52, 0.0 }
 0x660   : > { %v5554_v7 = vadd.f32 %v5553_v57, %v5552_v14 }
 0x661   : > { %v5453_v54 = vadd.f32 %v6425_v24, %v5452_v2 }
 0x662   : > { %v5556_v48 = vadd.f32 %v5555_v1, %v5554_v7  ;;  %v9928_v7 = vld [vmem:[#allocation22_spill] sm:$0xff] }
 0x663   : > { %v5457_v41 = vsel %vm5456_vm13, %v6425_v24, %v5453_v54 }
 0x664   : > { %v5462_v30 = vsel %vm5459_vm14, %v5461_v10, %v5457_v41 }
 0x665   : > { %v9498_v36 = vmul.f32 %v5462_v30, %v9927_v12  ;;  %v9929_v12 = vld [vmem:[#allocation10_spill] sm:$0xff] }
 0x667   : > { %v5557_v4 = vsel %vm498_vm4, %v9498_v36, 0.0 }
 0x668   : > { %v5558_v27 = vadd.f32 %v5557_v4, %v5556_v48 }
 0x66a   : > { %v5559_v59 = vrot.slane %v5558_v27, 4 }
 0x66c   : > { %v5560_v29 = vadd.f32 %v5559_v59, %v5558_v27 }
 0x66e   : > { %v5561_v15 = vrot.slane %v5560_v29, 2 }
 0x670   : > { %v5562_v50 = vadd.f32 %v5561_v15, %v5560_v29 }
 0x672   : > { %v5563_v44 = vrot.slane %v5562_v50, 1 }
 0x674   : > { %v5564_v42 = vadd.f32 %v5563_v44, %v5562_v50 }
 0x676   : > { %v5565_v38 = vmul.f32 0.00390625, %v5564_v42 }
 0x678   : > { %6223 = vmatmul.msk.f32.vlgmr.msrb.gmra.mxu2 %vm498_vm4, %v5565_v38 }
 0x6fb   : > { %v5591_v24 = vpop.f32.mrf.mxu2 }
 0x6fc   : > { %v5592_v63 = vadd.f32 %v5591_v24, %v5570_v11 }
 0x6fe   : > { %v5594_v5 = vmax.f32 %v5592_v63, 0.0 }
 0x700   : > { %6224 = vmatmul.msk.f32.vlgmr.msrb.gmra.mxu3 %vm5598_vm15, %v5594_v5 }
 0x783   : > { %v5619_v3 = vpop.f32.mrf.mxu3 }
 0x784   : > { %v5620_v13 = vadd.f32 %v5619_v3, %v5597_v6 }
 0x786   : > { %v6225_v39 = vmul.f32 -1.442695, %v5620_v13 }
 0x788   : > { %6426 = vpow2.f32 %v6225_v39 }
 0x78e   : > { %v6427_v46 = vpop.eup %6426 }
 0x78f   : > { %v5625_v33 = vadd.f32 1.0, %v6427_v46 }
 0x791   : > { %6428 = vrcp.f32 %v5625_v33  ;;  %v5637_v2 = vand.u32 2147483648, %v5625_v33  ;;  %v5635_v22 = vand.u32 2147483647, %v5625_v33  ;;  %vm5631_vm1 = vweird.f32 %v5625_v33 }
 0x793   : > { %v5638_v54 = vor.u32 1.1754944e-38, %v5637_v2  ;;  %vm5636_vm3 = vcmp.eq.f32.partialorder %v5635_v22, 8.507059e+37 }
 0x797   : > { %v6429_v55 = vpop.eup %6428 }
 0x798   : > { %v5627_v51 = vmul.f32 %v6429_v55, %v5625_v33  ;;  %vm5632_vm0 = vweird.f32 %v6429_v55 }
 0x799   : > { %vm5633_vm2 = vmor %vm5631_vm1, %vm5632_vm0 }
 0x79a   : > { %v5628_v34 = vsub.f32 1.0, %v5627_v51 }
 0x79c   : > { %v5629_v49 = vmul.f32 %v6429_v55, %v5628_v34 }
 0x79e   : > { %v5630_v57 = vadd.f32 %v6429_v55, %v5629_v49 }
 0x7a0   : > { %v5634_v14 = vsel %vm5633_vm2, %v6429_v55, %v5630_v57 }
 0x7a1   : > { %v5639_v10 = vsel %vm5636_vm3, %v5638_v54, %v5634_v14 }
 0x7a2   : > { %v9512_v1 = vperm.slane %v5639_v10, 0 }
 0x7a4   : > { %v5642_v41 = vmul.f32 %v9512_v1, %v8678_v20  ;;  %v5643_v30 = vmul.f32 %v9512_v1, %v9928_v7  ;;  %v5644_v48 = vmul.f32 %v9512_v1, %v9929_v12  ;;  %v5645_v4 = vmul.f32 %v9512_v1, %v8750_v9 }
 0x7a5   : > { %v5646_v27 = vmul.f32 %v9512_v1, %v8821_v18  ;;  %v5647_v20 = vmul.f32 %v9512_v1, %v8832_v53  ;;  %v5648_v9 = vmul.f32 %v9512_v1, %v8848_v8  ;;  %v5649_v18 = vmul.f32 %v9512_v1, %v8854_v62 }
 0x7a6   : > { %5674 = vst.msk [vmem:[%s9524_s25] sm:$0xff] %vm498_vm4, %v5642_v41  ;;  %v5650_v59 = vmul.f32 %v9512_v1, %v8919_v47  ;;  %v5651_v53 = vmul.f32 %v9512_v1, %v8950_v0  ;;  %v5652_v8 = vmul.f32 %v9512_v1, %v8985_v58  ;;  %v5653_v62 = vmul.f32 %v9512_v1, %v9006_v61 }
 0x7a7   : > { %5675 = vst.msk [vmem:[%s9524_s25 + $0x8] sm:$0xff] %vm498_vm4, %v5643_v30  ;;  %v5654_v47 = vmul.f32 %v9512_v1, %v9031_v19  ;;  %v5655_v0 = vmul.f32 %v9512_v1, %v9071_v45  ;;  %v5656_v58 = vmul.f32 %v9512_v1, %v9103_v43  ;;  %v5657_v61 = vmul.f32 %v9512_v1, %v9124_v56  ;;  %v9930_v45 = vld [vmem:[#allocation14_spill] sm:$0xff] }
 0x7a8   : > { %5676 = vst.msk [vmem:[%s9524_s25 + $0x10] sm:$0xff] %vm498_vm4, %v5644_v48  ;;  %v5658_v19 = vmul.f32 %v9512_v1, %v9151_v21  ;;  %v5659_v29 = vmul.f32 %v9512_v1, %v9930_v45  ;;  %v5660_v43 = vmul.f32 %v9512_v1, %v9227_v60  ;;  %v5661_v56 = vmul.f32 %v9512_v1, %v9245_v28 }
 0x7a9   : > { %5677 = vst.msk [vmem:[%s9524_s25 + $0x18] sm:$0xff] %vm498_vm4, %v5645_v4  ;;  %v5662_v21 = vmul.f32 %v9512_v1, %v9249_v40  ;;  %v5663_v15 = vmul.f32 %v9512_v1, %v9297_v17  ;;  %v5664_v60 = vmul.f32 %v9512_v1, %v9322_v16  ;;  %v5665_v28 = vmul.f32 %v9512_v1, %v9346_v35 }
 0x7aa   : > { %5678 = vst.msk [vmem:[%s9524_s25 + $0x20] sm:$0xff] %vm498_vm4, %v5646_v27  ;;  %v5666_v40 = vmul.f32 %v9512_v1, %v9390_v23  ;;  %v5667_v17 = vmul.f32 %v9512_v1, %v9411_v37  ;;  %v5668_v16 = vmul.f32 %v9512_v1, %v9453_v31  ;;  %v5669_v35 = vmul.f32 %v9512_v1, %v9467_v26 }
 0x7ab   : > { %5679 = vst.msk [vmem:[%s9524_s25 + $0x28] sm:$0xff] %vm498_vm4, %v5647_v20  ;;  %v5670_v23 = vmul.f32 %v9512_v1, %v9471_v32  ;;  %v5671_v37 = vmul.f32 %v9512_v1, %v9481_v25  ;;  %v5672_v31 = vmul.f32 %v9512_v1, %v9488_v52  ;;  %v5673_v26 = vmul.f32 %v9512_v1, %v9498_v36 }
 0x7ac   : > { %5680 = vst.msk [vmem:[%s9524_s25 + $0x30] sm:$0xff] %vm498_vm4, %v5648_v9 }
 0x7ad   : > { %5681 = vst.msk [vmem:[%s9524_s25 + $0x38] sm:$0xff] %vm498_vm4, %v5649_v18 }
 0x7ae   : > { %5682 = vst.msk [vmem:[%s9524_s25 + $0x40] sm:$0xff] %vm498_vm4, %v5650_v59 }
 0x7af   : > { %5683 = vst.msk [vmem:[%s9524_s25 + $0x48] sm:$0xff] %vm498_vm4, %v5651_v53 }
 0x7b0   : > { %5684 = vst.msk [vmem:[%s9524_s25 + $0x50] sm:$0xff] %vm498_vm4, %v5652_v8 }
 0x7b1   : > { %5685 = vst.msk [vmem:[%s9524_s25 + $0x58] sm:$0xff] %vm498_vm4, %v5653_v62 }
 0x7b2   : > { %5686 = vst.msk [vmem:[%s9524_s25 + $0x60] sm:$0xff] %vm498_vm4, %v5654_v47 }
 0x7b3   : > { %5687 = vst.msk [vmem:[%s9524_s25 + $0x68] sm:$0xff] %vm498_vm4, %v5655_v0 }
 0x7b4   : > { %5688 = vst.msk [vmem:[%s9524_s25 + $0x70] sm:$0xff] %vm498_vm4, %v5656_v58 }
 0x7b5   : > { %5689 = vst.msk [vmem:[%s9524_s25 + $0x78] sm:$0xff] %vm498_vm4, %v5657_v61 }
 0x7b6   : > { %5690 = vst.msk [vmem:[%s9524_s25 + $0x80] sm:$0xff] %vm498_vm4, %v5658_v19 }
 0x7b7   : > { %5691 = vst.msk [vmem:[%s9524_s25 + $0x88] sm:$0xff] %vm498_vm4, %v5659_v29 }
 0x7b8   : > { %5692 = vst.msk [vmem:[%s9524_s25 + $0x90] sm:$0xff] %vm498_vm4, %v5660_v43 }
 0x7b9   : > { %5693 = vst.msk [vmem:[%s9524_s25 + $0x98] sm:$0xff] %vm498_vm4, %v5661_v56 }
 0x7ba   : > { %5694 = vst.msk [vmem:[%s9524_s25 + $0xa0] sm:$0xff] %vm498_vm4, %v5662_v21 }
 0x7bb   : > { %5695 = vst.msk [vmem:[%s9524_s25 + $0xa8] sm:$0xff] %vm498_vm4, %v5663_v15 }
 0x7bc   : > { %5696 = vst.msk [vmem:[%s9524_s25 + $0xb0] sm:$0xff] %vm498_vm4, %v5664_v60 }
 0x7bd   : > { %5697 = vst.msk [vmem:[%s9524_s25 + $0xb8] sm:$0xff] %vm498_vm4, %v5665_v28 }
 0x7be   : > { %5698 = vst.msk [vmem:[%s9524_s25 + $0xc0] sm:$0xff] %vm498_vm4, %v5666_v40 }
 0x7bf   : > { %5699 = vst.msk [vmem:[%s9524_s25 + $0xc8] sm:$0xff] %vm498_vm4, %v5667_v17 }
 0x7c0   : > { %5700 = vst.msk [vmem:[%s9524_s25 + $0xd0] sm:$0xff] %vm498_vm4, %v5668_v16 }
 0x7c1   : > { %5701 = vst.msk [vmem:[%s9524_s25 + $0xd8] sm:$0xff] %vm498_vm4, %v5669_v35 }
 0x7c2   : > { %5702 = vst.msk [vmem:[%s9524_s25 + $0xe0] sm:$0xff] %vm498_vm4, %v5670_v23 }
 0x7c3   : > { %5703 = vst.msk [vmem:[%s9524_s25 + $0xe8] sm:$0xff] %vm498_vm4, %v5671_v37 }
 0x7c4   : > { %5704 = vst.msk [vmem:[%s9524_s25 + $0xf0] sm:$0xff] %vm498_vm4, %v5672_v31 }
 0x7c5   : > { %5705 = vst.msk [vmem:[%s9524_s25 + $0xf8] sm:$0xff] %vm498_vm4, %v5673_v26 }
 0x7c6   : > { %6458 = shalt.err (!%p6455_p3)
}
 0x7c7   : > { %s6496_s18 = smov 128   ;;  %s6497_s25 = smov 8  }
 0x7c8   : > { %6253 = dma.vmem_to_hbm [thread:$0]  (%p6599_p5), %s5720_s14, 4096, %s5722_s26, %s5707_s15, %s6496_s18, %s6496_s18, %s6497_s25  }
 0x7c9 PF: > { %p6259_p4 = scmp.ge.s32.totalorder %s6493_s22, 2  ;;  %s5736_s23 = sand.u32 1, %s6481_s19  }
 0x7ca   : > { %s5737_s30 = scalar_lea.sflag [#allocation6], %s5736_s23 }
 0x7cb   : > { %p6256_p7 = pnand %p6259_p4, %p6603_p6 }
 0x7cd   : > { %p6257_p8 = pneg %p6256_p7 }
 0x7cf   : > { %6476 = dma.done.wait (%p6257_p8), %s5737_s30, 4096  }
 0x7d0   : > { %6478 = vsyncadd (%p6257_p8), %s5737_s30, 4294963200  ;;  %p22_p9 = scmp.ge.s32.totalorder %s6586_s24, 4   ;;  %s9931_s19 = smov %s6485_s20 }
 0x7d1   : > { %s9932_s20 = smov %s6489_s21  ;;  %s9933_s21 = smov %s6597_s27 }
 0x7d2   : > { %s9934_s22 = smov %s6586_s24  ;;  %24 = sbr.rel (!%p22_p9) target bundleno = 5 (0x5), region = 121 }
 0x7d7   :  { %5743 = vsyncpa [#allocation6], 1 }
 0x7d8   :  { %5745 = vsyncpa [#allocation6 + $0x1], 1 }

</bundles_post_ra>
